<compile_context>
chip_gen: v7x
topology: tpu7x:2x2x1
jax: 0.10.0
libtpu: 0.0.40
codegen_flags: <defaults>
</compile_context>

<pallas_src>
import math
import jax
import jax.numpy as jnp
from jax.experimental import pallas as pl
from jax.experimental.pallas import tpu as pltpu


# ---------------------------------------------------------------------------
# helpers (plain python / JAX glue)
# ---------------------------------------------------------------------------
def make_divisible(v, divisor=8, min_value=None):
    if min_value is None:
        min_value = divisor
    new_v = max(min_value, int(v + divisor / 2) // divisor * divisor)
    if new_v < 0.9 * v:
        new_v += divisor
    return new_v


def _silu(x):
    return x * jax.nn.sigmoid(x)


def fold_bn(w, gamma, beta, mean, var, eps=1e-3):
    """Fold inference BatchNorm into a bias-free 1x1 conv given as (Cin, Cout).

    eps=1e-3 matches BaseConv2d / ultralytics Conv BN defaults.
    """
    scale = gamma / jnp.sqrt(var + eps)          # (Cout,)
    w_f = w * scale[None, :]
    b_f = beta - mean * scale
    return w_f, b_f[None, :]                     # bias kept 2-D: (1, Cout)


# ---------------------------------------------------------------------------
# Pallas kernel: one grid step = block_b batch elements, everything in VMEM
# ---------------------------------------------------------------------------
def psmoca_kernel(x_ref,
                  w1a_ref, b1a_ref, w1b_ref, b1b_ref,
                  wse1_ref, bse1_ref, wse2_ref, bse2_ref,
                  wf1_ref, bf1_ref, wf2_ref, bf2_ref,
                  w2a_ref, w2b_ref, b2_ref,
                  o_ref):
    bblk, hw, c1 = x_ref.shape
    c = w1a_ref.shape[1]
    bf16 = jnp.bfloat16

    # f32 comes straight from HBM (no separate wrapper cast pass); cast to bf16
    # on the VPU right before the MXU.  (bblk, hw, c1) -> (bblk*hw, c1) is a
    # leading-dim merge only (lane dim unchanged) -> no relayout; it grows the
    # matmul M dim and amortizes per-step pipeline overhead.
    x = x_ref[...].astype(bf16).reshape(bblk * hw, c1)

    # cv1 (BN folded) + SiLU as two lane-aligned column blocks: avoids the
    # non-128-aligned a/b lane slice of a fused 2c-wide output (c=32 here).
    a = _silu(jnp.dot(x, w1a_ref[...],
                      preferred_element_type=jnp.float32) + b1a_ref[...])
    b = _silu(jnp.dot(x, w1b_ref[...],
                      preferred_element_type=jnp.float32) + b1b_ref[...])

    # MoCAttention (inference Pool1 path), vectorized over the images in the
    # block: per-image GAP over the hw (sublane) axis, SE MLP, sigmoid gate.
    # No per-image slicing / concatenation -> no extra VMEM copies of b.
    b3 = b.reshape(bblk, hw, c)                                   # view, lane dim kept
    gap = jnp.mean(b3, axis=1)                                    # (bblk, c) f32
    s1 = jnp.maximum(
        jnp.dot(gap.astype(bf16), wse1_ref[...],
                preferred_element_type=jnp.float32) + bse1_ref[...], 0.0)
    s2 = jax.nn.sigmoid(
        jnp.dot(s1.astype(bf16), wse2_ref[...],
                preferred_element_type=jnp.float32) + bse2_ref[...])  # (bblk, c)
    b = (b3 * (1.0 + s2[:, None, :])).reshape(bblk * hw, c)       # b + b*attn(b)

    # FFN: Conv(c->2c)+SiLU then Conv(2c->c) (act=False), residual.
    f = _silu(jnp.dot(b.astype(bf16), wf1_ref[...],
                      preferred_element_type=jnp.float32) + bf1_ref[...])
    f = jnp.dot(f.astype(bf16), wf2_ref[...],
                preferred_element_type=jnp.float32) + bf2_ref[...]
    b = b + f

    # cv2 on concat(a, b): weights split by rows to avoid an explicit concat.
    out = (jnp.dot(a.astype(bf16), w2a_ref[...], preferred_element_type=jnp.float32)
           + jnp.dot(b.astype(bf16), w2b_ref[...], preferred_element_type=jnp.float32)
           + b2_ref[...])
    out = _silu(out)                                              # (bblk*hw, c1)
    o_ref[...] = out.reshape(bblk, hw, c1).astype(o_ref.dtype)    # bf16 store


WEIGHT_KEYS = ("w1a", "b1a", "w1b", "b1b",
               "wse1", "bse1", "wse2", "bse2",
               "wf1", "bf1", "wf2", "bf2",
               "w2a", "w2b", "b2")


def psmoca_forward(x_flat, params, *, block_b=1, out_dtype=jnp.bfloat16):
    """x_flat: (B, H*W, C1) float32.  Returns (B, H*W, C1) in `out_dtype`."""
    B, HW, C1 = x_flat.shape
    assert B % block_b == 0, "block_b must divide the batch size"
    assert HW % 8 == 0, "H*W must be a multiple of 8 (sublane alignment)"
    # TODO(synk): pad HW to a multiple of 8 for odd spatial sizes (e.g. 13x13).

    def prep(name, arr):
        if name.startswith("w"):
            return arr.astype(jnp.bfloat16)      # matmul operands: bf16 (MXU-native)
        return arr.astype(jnp.float32)           # biases stay f32 (post-accum add)

    weights = [prep(k, params[k]) for k in WEIGHT_KEYS]

    def build_in_specs(single_buffer):
        def const_spec(arr):
            nd = arr.ndim

            def idx(i):
                return (0,) * nd

            if single_buffer:
                # Constant across the grid -> one VMEM buffer is enough.
                return pl.BlockSpec(arr.shape, idx, pipeline_mode=pl.Buffered(1))
            return pl.BlockSpec(arr.shape, idx)

        return [pl.BlockSpec((block_b, HW, C1), lambda i: (i, 0, 0))] + \
               [const_spec(w) for w in weights]

    def run(single_buffer):
        return pl.pallas_call(
            psmoca_kernel,
            out_shape=jax.ShapeDtypeStruct((B, HW, C1), out_dtype),
            grid_spec=pltpu.PrefetchScalarGridSpec(
                num_scalar_prefetch=0,
                grid=(B // block_b,),            # block_b=1 -> >=2 steps per TC on v7x
                in_specs=build_in_specs(single_buffer),
                out_specs=pl.BlockSpec((block_b, HW, C1), lambda i: (i, 0, 0)),
            ),
            compiler_params=pltpu.CompilerParams(
                dimension_semantics=("parallel",),      # shard B-blocks across v7x TCs
                vmem_limit_bytes=48 * 1024 * 1024,      # headroom under v7x's 64 MiB
            ),
        )(x_flat, *weights)                              # x stays f32; cast in-kernel

    if hasattr(pl, "Buffered"):
        try:
            return run(True)
        except Exception:
            # pipeline_mode=pl.Buffered(1) not supported on this jax version;
            # fall back to default double-buffered weight blocks.
            pass
    return run(False)


# ---------------------------------------------------------------------------
# Parameter construction (deterministic, synthetic; BN stats = PyTorch defaults)
# ---------------------------------------------------------------------------
def init_params(key, c1, e=0.5):
    c = int(c1 * e)
    hid = max(make_divisible(c // 4, 8), 32)
    keys = jax.random.split(key, 8)

    def u(k, shape, fan_in):
        bound = 1.0 / math.sqrt(fan_in)
        return jax.random.uniform(k, shape, jnp.float32, -bound, bound)

    def bn_ident(n):
        return (jnp.ones((n,), jnp.float32), jnp.zeros((n,), jnp.float32),
                jnp.zeros((n,), jnp.float32), jnp.ones((n,), jnp.float32))

    # cv1: Conv(c1 -> 2c, no bias) + BN + SiLU; fold BN, split columns into a/b halves
    w1 = u(keys[0], (c1, 2 * c), c1)
    w1, b1 = fold_bn(w1, *bn_ident(2 * c))
    w1a, w1b = w1[:, :c], w1[:, c:]
    b1a, b1b = b1[:, :c], b1[:, c:]

    # MoCAttention SELayer: BaseConv2d(c->hid, bias, ReLU), BaseConv2d(hid->c, bias, Sigmoid)
    wse1 = u(keys[1], (c, hid), c)
    bse1 = u(keys[2], (1, hid), c)
    wse2 = u(keys[3], (hid, c), hid)
    bse2 = u(keys[4], (1, c), hid)

    # ffn: Conv(c->2c, BN, SiLU), Conv(2c->c, BN, act=False)
    wf1 = u(keys[5], (c, 2 * c), c)
    wf1, bf1 = fold_bn(wf1, *bn_ident(2 * c))
    wf2 = u(keys[6], (2 * c, c), 2 * c)
    wf2, bf2 = fold_bn(wf2, *bn_ident(c))

    # cv2: Conv(2c -> c1, no bias) + BN + SiLU; fold BN, split rows for a/b halves
    w2 = u(keys[7], (2 * c, c1), 2 * c)
    w2, b2 = fold_bn(w2, *bn_ident(c1))
    w2a, w2b = w2[:c], w2[c:]

    return dict(c=c, hid=hid,
                w1a=w1a, b1a=b1a, w1b=w1b, b1b=b1b,
                wse1=wse1, bse1=bse1, wse2=wse2, bse2=bse2,
                wf1=wf1, bf1=bf1, wf2=wf2, bf2=bf2,
                w2a=w2a, w2b=w2b, b2=b2)


# ---------------------------------------------------------------------------
# Pure-JAX reference mirroring the kernel's numerics (bf16 operands, f32 accum,
# f32 elementwise tail); the kernel additionally rounds its output to bf16.
# ---------------------------------------------------------------------------
def psmoca_reference(x, p):
    bf16 = jnp.bfloat16

    def dot(lhs, w):
        return jnp.dot(lhs.astype(bf16), w.astype(bf16),
                       preferred_element_type=jnp.float32)

    a = _silu(dot(x, p["w1a"]) + p["b1a"])
    b = _silu(dot(x, p["w1b"]) + p["b1b"])
    gap = jnp.mean(b, axis=1, keepdims=True)                      # (B,1,c)
    s1 = jnp.maximum(dot(gap, p["wse1"]) + p["bse1"], 0.0)
    s2 = jax.nn.sigmoid(dot(s1, p["wse2"]) + p["bse2"])
    b = b + b * s2
    f = dot(_silu(dot(b, p["wf1"]) + p["bf1"]), p["wf2"]) + p["bf2"]
    b = b + f
    return _silu(dot(a, p["w2a"]) + dot(b, p["w2b"]) + p["b2"])


# ---------------------------------------------------------------------------
if __name__ == "__main__":
    key = jax.random.PRNGKey(0)
    k_x, k_p = jax.random.split(key)

    # Small but representative: C1=64 -> c=32, hid=32; HW=256 rows per image.
    # block_b=1 -> grid of 4 steps (2 per TensorCore on v7x, 4 on single-TC).
    B, C1, H, W = 4, 64, 16, 16
    x_nchw = jax.random.normal(k_x, (B, C1, H, W), jnp.float32)

    params = init_params(k_p, C1, e=0.5)

    # layout: NCHW -> (B, H*W, C1)
    x_flat = jnp.transpose(x_nchw, (0, 2, 3, 1)).reshape(B, H * W, C1)

    out = psmoca_forward(x_flat, params, block_b=1)
    out = jax.block_until_ready(out)

    ref = psmoca_reference(x_flat, params)
    assert out.shape == (B, H * W, C1)
    out_f32 = out.astype(jnp.float32)
    max_err = float(jnp.max(jnp.abs(out_f32 - ref)))
    # bf16 output rounding + bf16 matmul operands -> loosened tolerance.
    assert jnp.allclose(out_f32, ref, atol=2.5e-2, rtol=2e-2), \
        f"mismatch vs JAX reference (max abs err {max_err})"

    # back to NCHW if the caller wants PyTorch layout
    out_nchw = jnp.transpose(out_f32.reshape(B, H, W, C1), (0, 3, 1, 2))
    jax.block_until_ready(out_nchw)

    print("KERNEL_OK")
</pallas_src>

<mosaic_0001>
module attributes {stable_mosaic.version = 11 : i64} {
  func.func @psmoca_kernel(%arg0: i32, %arg1: memref<1x256x64xf32, #tpu.memory_space<vmem>>, %arg2: memref<64x32xbf16, #tpu.memory_space<vmem>>, %arg3: memref<1x32xf32, #tpu.memory_space<vmem>>, %arg4: memref<64x32xbf16, #tpu.memory_space<vmem>>, %arg5: memref<1x32xf32, #tpu.memory_space<vmem>>, %arg6: memref<32x32xbf16, #tpu.memory_space<vmem>>, %arg7: memref<1x32xf32, #tpu.memory_space<vmem>>, %arg8: memref<32x32xbf16, #tpu.memory_space<vmem>>, %arg9: memref<1x32xf32, #tpu.memory_space<vmem>>, %arg10: memref<32x64xbf16, #tpu.memory_space<vmem>>, %arg11: memref<1x64xf32, #tpu.memory_space<vmem>>, %arg12: memref<64x32xbf16, #tpu.memory_space<vmem>>, %arg13: memref<1x32xf32, #tpu.memory_space<vmem>>, %arg14: memref<32x64xbf16, #tpu.memory_space<vmem>>, %arg15: memref<32x64xbf16, #tpu.memory_space<vmem>>, %arg16: memref<1x64xf32, #tpu.memory_space<vmem>>, %arg17: memref<1x256x64xbf16, #tpu.memory_space<vmem>>) attributes {dimension_semantics = [#tpu.dimension_semantics<parallel>], iteration_bounds = array<i64: 4>, scalar_prefetch = 0 : i64, scratch_operands = 0 : i64, tpu.core_type = #tpu.core_type<tc>, window_params = [{transform_indices = @transform_0, window_bounds = array<i64: 1, 256, 64>}, {pipeline_mode = #tpu.pipeline_mode<synchronous>, transform_indices = @transform_1, window_bounds = array<i64: 64, 32>}, {pipeline_mode = #tpu.pipeline_mode<synchronous>, transform_indices = @transform_2, window_bounds = array<i64: 1, 32>}, {pipeline_mode = #tpu.pipeline_mode<synchronous>, transform_indices = @transform_3, window_bounds = array<i64: 64, 32>}, {pipeline_mode = #tpu.pipeline_mode<synchronous>, transform_indices = @transform_4, window_bounds = array<i64: 1, 32>}, {pipeline_mode = #tpu.pipeline_mode<synchronous>, transform_indices = @transform_5, window_bounds = array<i64: 32, 32>}, {pipeline_mode = #tpu.pipeline_mode<synchronous>, transform_indices = @transform_6, window_bounds = array<i64: 1, 32>}, {pipeline_mode = #tpu.pipeline_mode<synchronous>, transform_indices = @transform_7, window_bounds = array<i64: 32, 32>}, {pipeline_mode = #tpu.pipeline_mode<synchronous>, transform_indices = @transform_8, window_bounds = array<i64: 1, 32>}, {pipeline_mode = #tpu.pipeline_mode<synchronous>, transform_indices = @transform_9, window_bounds = array<i64: 32, 64>}, {pipeline_mode = #tpu.pipeline_mode<synchronous>, transform_indices = @transform_10, window_bounds = array<i64: 1, 64>}, {pipeline_mode = #tpu.pipeline_mode<synchronous>, transform_indices = @transform_11, window_bounds = array<i64: 64, 32>}, {pipeline_mode = #tpu.pipeline_mode<synchronous>, transform_indices = @transform_12, window_bounds = array<i64: 1, 32>}, {pipeline_mode = #tpu.pipeline_mode<synchronous>, transform_indices = @transform_13, window_bounds = array<i64: 32, 64>}, {pipeline_mode = #tpu.pipeline_mode<synchronous>, transform_indices = @transform_14, window_bounds = array<i64: 32, 64>}, {pipeline_mode = #tpu.pipeline_mode<synchronous>, transform_indices = @transform_15, window_bounds = array<i64: 1, 64>}, {transform_indices = @transform_16, window_bounds = array<i64: 1, 256, 64>}]} {
    %c0 = arith.constant 0 : index
    %c0_0 = arith.constant 0 : index
    %c0_1 = arith.constant 0 : index
    %0 = vector.load %arg1[%c0, %c0_0, %c0_1] : memref<1x256x64xf32, #tpu.memory_space<vmem>>, vector<1x256x64xf32>
    %1 = arith.truncf %0 : vector<1x256x64xf32> to vector<1x256x64xbf16>
    %2 = vector.shape_cast %1 : vector<1x256x64xbf16> to vector<256x64xbf16>
    %c0_2 = arith.constant 0 : index
    %c0_3 = arith.constant 0 : index
    %3 = vector.load %arg2[%c0_2, %c0_3] : memref<64x32xbf16, #tpu.memory_space<vmem>>, vector<64x32xbf16>
    %cst = arith.constant dense<0.000000e+00> : vector<256x32xf32>
    %4 = tpu.matmul %2, %3, %cst {dimension_numbers = #tpu.dot_dimension_numbers<[1], [0], [0], [1], [0, 0, 1, 1], [], []>} : vector<256x64xbf16>, vector<64x32xbf16>, vector<256x32xf32> -> vector<256x32xf32>
    %c0_4 = arith.constant 0 : index
    %c0_5 = arith.constant 0 : index
    %5 = vector.load %arg3[%c0_4, %c0_5] : memref<1x32xf32, #tpu.memory_space<vmem>>, vector<1x32xf32>
    %6 = vector.broadcast %5 : vector<1x32xf32> to vector<256x32xf32>
    %7 = arith.addf %4, %6 : vector<256x32xf32>
    %8 = arith.negf %7 : vector<256x32xf32>
    %9 = math.exp %8 : vector<256x32xf32>
    %cst_6 = arith.constant 1.000000e+00 : f32
    %10 = vector.broadcast %cst_6 : f32 to vector<256x32xf32>
    %11 = arith.addf %10, %9 : vector<256x32xf32>
    %12 = arith.divf %10, %11 : vector<256x32xf32>
    %13 = arith.mulf %7, %12 : vector<256x32xf32>
    %c0_7 = arith.constant 0 : index
    %c0_8 = arith.constant 0 : index
    %14 = vector.load %arg4[%c0_7, %c0_8] : memref<64x32xbf16, #tpu.memory_space<vmem>>, vector<64x32xbf16>
    %cst_9 = arith.constant dense<0.000000e+00> : vector<256x32xf32>
    %15 = tpu.matmul %2, %14, %cst_9 {dimension_numbers = #tpu.dot_dimension_numbers<[1], [0], [0], [1], [0, 0, 1, 1], [], []>} : vector<256x64xbf16>, vector<64x32xbf16>, vector<256x32xf32> -> vector<256x32xf32>
    %c0_10 = arith.constant 0 : index
    %c0_11 = arith.constant 0 : index
    %16 = vector.load %arg5[%c0_10, %c0_11] : memref<1x32xf32, #tpu.memory_space<vmem>>, vector<1x32xf32>
    %17 = vector.broadcast %16 : vector<1x32xf32> to vector<256x32xf32>
    %18 = arith.addf %15, %17 : vector<256x32xf32>
    %19 = arith.negf %18 : vector<256x32xf32>
    %20 = math.exp %19 : vector<256x32xf32>
    %cst_12 = arith.constant 1.000000e+00 : f32
    %21 = vector.broadcast %cst_12 : f32 to vector<256x32xf32>
    %22 = arith.addf %21, %20 : vector<256x32xf32>
    %23 = arith.divf %21, %22 : vector<256x32xf32>
    %24 = arith.mulf %18, %23 : vector<256x32xf32>
    %25 = vector.shape_cast %24 : vector<256x32xf32> to vector<1x256x32xf32>
    %cst_13 = arith.constant dense<0.000000e+00> : vector<1x32xf32>
    %26 = vector.multi_reduction <add>, %25, %cst_13 [1] : vector<1x256x32xf32> to vector<1x32xf32>
    %cst_14 = arith.constant 2.560000e+02 : f32
    %27 = vector.broadcast %cst_14 : f32 to vector<1x32xf32>
    %28 = arith.divf %26, %27 : vector<1x32xf32>
    %29 = arith.truncf %28 : vector<1x32xf32> to vector<1x32xbf16>
    %c0_15 = arith.constant 0 : index
    %c0_16 = arith.constant 0 : index
    %30 = vector.load %arg6[%c0_15, %c0_16] : memref<32x32xbf16, #tpu.memory_space<vmem>>, vector<32x32xbf16>
    %cst_17 = arith.constant dense<0.000000e+00> : vector<1x32xf32>
    %31 = tpu.matmul %29, %30, %cst_17 {dimension_numbers = #tpu.dot_dimension_numbers<[1], [0], [0], [1], [0, 0, 1, 1], [], []>} : vector<1x32xbf16>, vector<32x32xbf16>, vector<1x32xf32> -> vector<1x32xf32>
    %c0_18 = arith.constant 0 : index
    %c0_19 = arith.constant 0 : index
    %32 = vector.load %arg7[%c0_18, %c0_19] : memref<1x32xf32, #tpu.memory_space<vmem>>, vector<1x32xf32>
    %33 = arith.addf %31, %32 : vector<1x32xf32>
    %cst_20 = arith.constant 0.000000e+00 : f32
    %34 = vector.broadcast %cst_20 : f32 to vector<1x32xf32>
    %35 = arith.maximumf %33, %34 : vector<1x32xf32>
    %36 = arith.truncf %35 : vector<1x32xf32> to vector<1x32xbf16>
    %c0_21 = arith.constant 0 : index
    %c0_22 = arith.constant 0 : index
    %37 = vector.load %arg8[%c0_21, %c0_22] : memref<32x32xbf16, #tpu.memory_space<vmem>>, vector<32x32xbf16>
    %cst_23 = arith.constant dense<0.000000e+00> : vector<1x32xf32>
    %38 = tpu.matmul %36, %37, %cst_23 {dimension_numbers = #tpu.dot_dimension_numbers<[1], [0], [0], [1], [0, 0, 1, 1], [], []>} : vector<1x32xbf16>, vector<32x32xbf16>, vector<1x32xf32> -> vector<1x32xf32>
    %c0_24 = arith.constant 0 : index
    %c0_25 = arith.constant 0 : index
    %39 = vector.load %arg9[%c0_24, %c0_25] : memref<1x32xf32, #tpu.memory_space<vmem>>, vector<1x32xf32>
    %40 = arith.addf %38, %39 : vector<1x32xf32>
    %41 = arith.negf %40 : vector<1x32xf32>
    %42 = math.exp %41 : vector<1x32xf32>
    %cst_26 = arith.constant 1.000000e+00 : f32
    %43 = vector.broadcast %cst_26 : f32 to vector<1x32xf32>
    %44 = arith.addf %43, %42 : vector<1x32xf32>
    %45 = arith.divf %43, %44 : vector<1x32xf32>
    %46 = vector.shape_cast %45 : vector<1x32xf32> to vector<1x1x32xf32>
    %cst_27 = arith.constant 1.000000e+00 : f32
    %47 = vector.broadcast %cst_27 : f32 to vector<1x1x32xf32>
    %48 = arith.addf %47, %46 : vector<1x1x32xf32>
    %49 = vector.broadcast %48 : vector<1x1x32xf32> to vector<1x256x32xf32>
    %50 = arith.mulf %25, %49 : vector<1x256x32xf32>
    %51 = vector.shape_cast %50 : vector<1x256x32xf32> to vector<256x32xf32>
    %52 = arith.truncf %51 : vector<256x32xf32> to vector<256x32xbf16>
    %c0_28 = arith.constant 0 : index
    %c0_29 = arith.constant 0 : index
    %53 = vector.load %arg10[%c0_28, %c0_29] : memref<32x64xbf16, #tpu.memory_space<vmem>>, vector<32x64xbf16>
    %cst_30 = arith.constant dense<0.000000e+00> : vector<256x64xf32>
    %54 = tpu.matmul %52, %53, %cst_30 {dimension_numbers = #tpu.dot_dimension_numbers<[1], [0], [0], [1], [0, 0, 1, 1], [], []>} : vector<256x32xbf16>, vector<32x64xbf16>, vector<256x64xf32> -> vector<256x64xf32>
    %c0_31 = arith.constant 0 : index
    %c0_32 = arith.constant 0 : index
    %55 = vector.load %arg11[%c0_31, %c0_32] : memref<1x64xf32, #tpu.memory_space<vmem>>, vector<1x64xf32>
    %56 = vector.broadcast %55 : vector<1x64xf32> to vector<256x64xf32>
    %57 = arith.addf %54, %56 : vector<256x64xf32>
    %58 = arith.negf %57 : vector<256x64xf32>
    %59 = math.exp %58 : vector<256x64xf32>
    %cst_33 = arith.constant 1.000000e+00 : f32
    %60 = vector.broadcast %cst_33 : f32 to vector<256x64xf32>
    %61 = arith.addf %60, %59 : vector<256x64xf32>
    %62 = arith.divf %60, %61 : vector<256x64xf32>
    %63 = arith.mulf %57, %62 : vector<256x64xf32>
    %64 = arith.truncf %63 : vector<256x64xf32> to vector<256x64xbf16>
    %c0_34 = arith.constant 0 : index
    %c0_35 = arith.constant 0 : index
    %65 = vector.load %arg12[%c0_34, %c0_35] : memref<64x32xbf16, #tpu.memory_space<vmem>>, vector<64x32xbf16>
    %cst_36 = arith.constant dense<0.000000e+00> : vector<256x32xf32>
    %66 = tpu.matmul %64, %65, %cst_36 {dimension_numbers = #tpu.dot_dimension_numbers<[1], [0], [0], [1], [0, 0, 1, 1], [], []>} : vector<256x64xbf16>, vector<64x32xbf16>, vector<256x32xf32> -> vector<256x32xf32>
    %c0_37 = arith.constant 0 : index
    %c0_38 = arith.constant 0 : index
    %67 = vector.load %arg13[%c0_37, %c0_38] : memref<1x32xf32, #tpu.memory_space<vmem>>, vector<1x32xf32>
    %68 = vector.broadcast %67 : vector<1x32xf32> to vector<256x32xf32>
    %69 = arith.addf %66, %68 : vector<256x32xf32>
    %70 = arith.addf %51, %69 : vector<256x32xf32>
    %71 = arith.truncf %13 : vector<256x32xf32> to vector<256x32xbf16>
    %c0_39 = arith.constant 0 : index
    %c0_40 = arith.constant 0 : index
    %72 = vector.load %arg14[%c0_39, %c0_40] : memref<32x64xbf16, #tpu.memory_space<vmem>>, vector<32x64xbf16>
    %cst_41 = arith.constant dense<0.000000e+00> : vector<256x64xf32>
    %73 = tpu.matmul %71, %72, %cst_41 {dimension_numbers = #tpu.dot_dimension_numbers<[1], [0], [0], [1], [0, 0, 1, 1], [], []>} : vector<256x32xbf16>, vector<32x64xbf16>, vector<256x64xf32> -> vector<256x64xf32>
    %74 = arith.truncf %70 : vector<256x32xf32> to vector<256x32xbf16>
    %c0_42 = arith.constant 0 : index
    %c0_43 = arith.constant 0 : index
    %75 = vector.load %arg15[%c0_42, %c0_43] : memref<32x64xbf16, #tpu.memory_space<vmem>>, vector<32x64xbf16>
    %cst_44 = arith.constant dense<0.000000e+00> : vector<256x64xf32>
    %76 = tpu.matmul %74, %75, %cst_44 {dimension_numbers = #tpu.dot_dimension_numbers<[1], [0], [0], [1], [0, 0, 1, 1], [], []>} : vector<256x32xbf16>, vector<32x64xbf16>, vector<256x64xf32> -> vector<256x64xf32>
    %77 = arith.addf %73, %76 : vector<256x64xf32>
    %c0_45 = arith.constant 0 : index
    %c0_46 = arith.constant 0 : index
    %78 = vector.load %arg16[%c0_45, %c0_46] : memref<1x64xf32, #tpu.memory_space<vmem>>, vector<1x64xf32>
    %79 = vector.broadcast %78 : vector<1x64xf32> to vector<256x64xf32>
    %80 = arith.addf %77, %79 : vector<256x64xf32>
    %81 = arith.negf %80 : vector<256x64xf32>
    %82 = math.exp %81 : vector<256x64xf32>
    %cst_47 = arith.constant 1.000000e+00 : f32
    %83 = vector.broadcast %cst_47 : f32 to vector<256x64xf32>
    %84 = arith.addf %83, %82 : vector<256x64xf32>
    %85 = arith.divf %83, %84 : vector<256x64xf32>
    %86 = arith.mulf %80, %85 : vector<256x64xf32>
    %87 = vector.shape_cast %86 : vector<256x64xf32> to vector<1x256x64xf32>
    %88 = arith.truncf %87 : vector<1x256x64xf32> to vector<1x256x64xbf16>
    %c0_48 = arith.constant 0 : index
    %c0_49 = arith.constant 0 : index
    %c0_50 = arith.constant 0 : index
    %89 = vector.load %arg17[%c0_48, %c0_49, %c0_50] : memref<1x256x64xbf16, #tpu.memory_space<vmem>>, vector<1x256x64xbf16>
    tpu.vector_store %arg17[%c0_48, %c0_49, %c0_50], %88 {strides = array<i32>} : memref<1x256x64xbf16, #tpu.memory_space<vmem>>, vector<1x256x64xbf16>,
    return
  }
  func.func @transform_0(%arg0: i32) -> (i32, i32, i32) {
    %c0_i32 = arith.constant 0 : i32
    %c0_i32_0 = arith.constant 0 : i32
    %c0_i32_1 = arith.constant 0 : i32
    return %arg0, %c0_i32, %c0_i32_0 : i32, i32, i32
  }
  func.func @transform_1(%arg0: i32) -> (i32, i32) {
    %c0_i32 = arith.constant 0 : i32
    %c0_i32_0 = arith.constant 0 : i32
    %c0_i32_1 = arith.constant 0 : i32
    return %c0_i32, %c0_i32_0 : i32, i32
  }
  func.func @transform_2(%arg0: i32) -> (i32, i32) {
    %c0_i32 = arith.constant 0 : i32
    %c0_i32_0 = arith.constant 0 : i32
    %c0_i32_1 = arith.constant 0 : i32
    return %c0_i32, %c0_i32_0 : i32, i32
  }
  func.func @transform_3(%arg0: i32) -> (i32, i32) {
    %c0_i32 = arith.constant 0 : i32
    %c0_i32_0 = arith.constant 0 : i32
    %c0_i32_1 = arith.constant 0 : i32
    return %c0_i32, %c0_i32_0 : i32, i32
  }
  func.func @transform_4(%arg0: i32) -> (i32, i32) {
    %c0_i32 = arith.constant 0 : i32
    %c0_i32_0 = arith.constant 0 : i32
    %c0_i32_1 = arith.constant 0 : i32
    return %c0_i32, %c0_i32_0 : i32, i32
  }
  func.func @transform_5(%arg0: i32) -> (i32, i32) {
    %c0_i32 = arith.constant 0 : i32
    %c0_i32_0 = arith.constant 0 : i32
    %c0_i32_1 = arith.constant 0 : i32
    return %c0_i32, %c0_i32_0 : i32, i32
  }
  func.func @transform_6(%arg0: i32) -> (i32, i32) {
    %c0_i32 = arith.constant 0 : i32
    %c0_i32_0 = arith.constant 0 : i32
    %c0_i32_1 = arith.constant 0 : i32
    return %c0_i32, %c0_i32_0 : i32, i32
  }
  func.func @transform_7(%arg0: i32) -> (i32, i32) {
    %c0_i32 = arith.constant 0 : i32
    %c0_i32_0 = arith.constant 0 : i32
    %c0_i32_1 = arith.constant 0 : i32
    return %c0_i32, %c0_i32_0 : i32, i32
  }
  func.func @transform_8(%arg0: i32) -> (i32, i32) {
    %c0_i32 = arith.constant 0 : i32
    %c0_i32_0 = arith.constant 0 : i32
    %c0_i32_1 = arith.constant 0 : i32
    return %c0_i32, %c0_i32_0 : i32, i32
  }
  func.func @transform_9(%arg0: i32) -> (i32, i32) {
    %c0_i32 = arith.constant 0 : i32
    %c0_i32_0 = arith.constant 0 : i32
    %c0_i32_1 = arith.constant 0 : i32
    return %c0_i32, %c0_i32_0 : i32, i32
  }
  func.func @transform_10(%arg0: i32) -> (i32, i32) {
    %c0_i32 = arith.constant 0 : i32
    %c0_i32_0 = arith.constant 0 : i32
    %c0_i32_1 = arith.constant 0 : i32
    return %c0_i32, %c0_i32_0 : i32, i32
  }
  func.func @transform_11(%arg0: i32) -> (i32, i32) {
    %c0_i32 = arith.constant 0 : i32
    %c0_i32_0 = arith.constant 0 : i32
    %c0_i32_1 = arith.constant 0 : i32
    return %c0_i32, %c0_i32_0 : i32, i32
  }
  func.func @transform_12(%arg0: i32) -> (i32, i32) {
    %c0_i32 = arith.constant 0 : i32
    %c0_i32_0 = arith.constant 0 : i32
    %c0_i32_1 = arith.constant 0 : i32
    return %c0_i32, %c0_i32_0 : i32, i32
  }
  func.func @transform_13(%arg0: i32) -> (i32, i32) {
    %c0_i32 = arith.constant 0 : i32
    %c0_i32_0 = arith.constant 0 : i32
    %c0_i32_1 = arith.constant 0 : i32
    return %c0_i32, %c0_i32_0 : i32, i32
  }
  func.func @transform_14(%arg0: i32) -> (i32, i32) {
    %c0_i32 = arith.constant 0 : i32
    %c0_i32_0 = arith.constant 0 : i32
    %c0_i32_1 = arith.constant 0 : i32
    return %c0_i32, %c0_i32_0 : i32, i32
  }
  func.func @transform_15(%arg0: i32) -> (i32, i32) {
    %c0_i32 = arith.constant 0 : i32
    %c0_i32_0 = arith.constant 0 : i32
    %c0_i32_1 = arith.constant 0 : i32
    return %c0_i32, %c0_i32_0 : i32, i32
  }
  func.func @transform_16(%arg0: i32) -> (i32, i32, i32) {
    %c0_i32 = arith.constant 0 : i32
    %c0_i32_0 = arith.constant 0 : i32
    %c0_i32_1 = arith.constant 0 : i32
    return %arg0, %c0_i32, %c0_i32_0 : i32, i32, i32
  }
}

module attributes {stable_mosaic.version = 11 : i64} {
  func.func @psmoca_kernel(%arg0: i32, %arg1: memref<1x256x64xf32, #tpu.memory_space<vmem>>, %arg2: memref<64x32xbf16, #tpu.memory_space<vmem>>, %arg3: memref<1x32xf32, #tpu.memory_space<vmem>>, %arg4: memref<64x32xbf16, #tpu.memory_space<vmem>>, %arg5: memref<1x32xf32, #tpu.memory_space<vmem>>, %arg6: memref<32x32xbf16, #tpu.memory_space<vmem>>, %arg7: memref<1x32xf32, #tpu.memory_space<vmem>>, %arg8: memref<32x32xbf16, #tpu.memory_space<vmem>>, %arg9: memref<1x32xf32, #tpu.memory_space<vmem>>, %arg10: memref<32x64xbf16, #tpu.memory_space<vmem>>, %arg11: memref<1x64xf32, #tpu.memory_space<vmem>>, %arg12: memref<64x32xbf16, #tpu.memory_space<vmem>>, %arg13: memref<1x32xf32, #tpu.memory_space<vmem>>, %arg14: memref<32x64xbf16, #tpu.memory_space<vmem>>, %arg15: memref<32x64xbf16, #tpu.memory_space<vmem>>, %arg16: memref<1x64xf32, #tpu.memory_space<vmem>>, %arg17: memref<1x256x64xbf16, #tpu.memory_space<vmem>>) attributes {dimension_semantics = [#tpu.dimension_semantics<parallel>], iteration_bounds = array<i64: 4>, scalar_prefetch = 0 : i64, scratch_operands = 0 : i64, tpu.core_type = #tpu.core_type<tc>, window_params = [{transform_indices = @transform_0, window_bounds = array<i64: 1, 256, 64>}, {pipeline_mode = #tpu.pipeline_mode<synchronous>, transform_indices = @transform_1, window_bounds = array<i64: 64, 32>}, {pipeline_mode = #tpu.pipeline_mode<synchronous>, transform_indices = @transform_2, window_bounds = array<i64: 1, 32>}, {pipeline_mode = #tpu.pipeline_mode<synchronous>, transform_indices = @transform_3, window_bounds = array<i64: 64, 32>}, {pipeline_mode = #tpu.pipeline_mode<synchronous>, transform_indices = @transform_4, window_bounds = array<i64: 1, 32>}, {pipeline_mode = #tpu.pipeline_mode<synchronous>, transform_indices = @transform_5, window_bounds = array<i64: 32, 32>}, {pipeline_mode = #tpu.pipeline_mode<synchronous>, transform_indices = @transform_6, window_bounds = array<i64: 1, 32>}, {pipeline_mode = #tpu.pipeline_mode<synchronous>, transform_indices = @transform_7, window_bounds = array<i64: 32, 32>}, {pipeline_mode = #tpu.pipeline_mode<synchronous>, transform_indices = @transform_8, window_bounds = array<i64: 1, 32>}, {pipeline_mode = #tpu.pipeline_mode<synchronous>, transform_indices = @transform_9, window_bounds = array<i64: 32, 64>}, {pipeline_mode = #tpu.pipeline_mode<synchronous>, transform_indices = @transform_10, window_bounds = array<i64: 1, 64>}, {pipeline_mode = #tpu.pipeline_mode<synchronous>, transform_indices = @transform_11, window_bounds = array<i64: 64, 32>}, {pipeline_mode = #tpu.pipeline_mode<synchronous>, transform_indices = @transform_12, window_bounds = array<i64: 1, 32>}, {pipeline_mode = #tpu.pipeline_mode<synchronous>, transform_indices = @transform_13, window_bounds = array<i64: 32, 64>}, {pipeline_mode = #tpu.pipeline_mode<synchronous>, transform_indices = @transform_14, window_bounds = array<i64: 32, 64>}, {pipeline_mode = #tpu.pipeline_mode<synchronous>, transform_indices = @transform_15, window_bounds = array<i64: 1, 64>}, {transform_indices = @transform_16, window_bounds = array<i64: 1, 256, 64>}]} {
    %c0 = arith.constant 0 : index
    %c0_0 = arith.constant 0 : index
    %c0_1 = arith.constant 0 : index
    %0 = vector.load %arg1[%c0, %c0_0, %c0_1] : memref<1x256x64xf32, #tpu.memory_space<vmem>>, vector<1x256x64xf32>
    %1 = arith.truncf %0 : vector<1x256x64xf32> to vector<1x256x64xbf16>
    %2 = vector.shape_cast %1 : vector<1x256x64xbf16> to vector<256x64xbf16>
    %c0_2 = arith.constant 0 : index
    %c0_3 = arith.constant 0 : index
    %3 = vector.load %arg2[%c0_2, %c0_3] : memref<64x32xbf16, #tpu.memory_space<vmem>>, vector<64x32xbf16>
    %cst = arith.constant dense<0.000000e+00> : vector<256x32xf32>
    %4 = tpu.matmul %2, %3, %cst {dimension_numbers = #tpu.dot_dimension_numbers<[1], [0], [0], [1], [0, 0, 1, 1], [], []>} : vector<256x64xbf16>, vector<64x32xbf16>, vector<256x32xf32> -> vector<256x32xf32>
    %c0_4 = arith.constant 0 : index
    %c0_5 = arith.constant 0 : index
    %5 = vector.load %arg3[%c0_4, %c0_5] : memref<1x32xf32, #tpu.memory_space<vmem>>, vector<1x32xf32>
    %6 = vector.broadcast %5 : vector<1x32xf32> to vector<256x32xf32>
    %7 = arith.addf %4, %6 : vector<256x32xf32>
    %8 = arith.negf %7 : vector<256x32xf32>
    %9 = math.exp %8 : vector<256x32xf32>
    %cst_6 = arith.constant 1.000000e+00 : f32
    %10 = vector.broadcast %cst_6 : f32 to vector<256x32xf32>
    %11 = arith.addf %10, %9 : vector<256x32xf32>
    %12 = arith.divf %10, %11 : vector<256x32xf32>
    %13 = arith.mulf %7, %12 : vector<256x32xf32>
    %c0_7 = arith.constant 0 : index
    %c0_8 = arith.constant 0 : index
    %14 = vector.load %arg4[%c0_7, %c0_8] : memref<64x32xbf16, #tpu.memory_space<vmem>>, vector<64x32xbf16>
    %cst_9 = arith.constant dense<0.000000e+00> : vector<256x32xf32>
    %15 = tpu.matmul %2, %14, %cst_9 {dimension_numbers = #tpu.dot_dimension_numbers<[1], [0], [0], [1], [0, 0, 1, 1], [], []>} : vector<256x64xbf16>, vector<64x32xbf16>, vector<256x32xf32> -> vector<256x32xf32>
    %c0_10 = arith.constant 0 : index
    %c0_11 = arith.constant 0 : index
    %16 = vector.load %arg5[%c0_10, %c0_11] : memref<1x32xf32, #tpu.memory_space<vmem>>, vector<1x32xf32>
    %17 = vector.broadcast %16 : vector<1x32xf32> to vector<256x32xf32>
    %18 = arith.addf %15, %17 : vector<256x32xf32>
    %19 = arith.negf %18 : vector<256x32xf32>
    %20 = math.exp %19 : vector<256x32xf32>
    %cst_12 = arith.constant 1.000000e+00 : f32
    %21 = vector.broadcast %cst_12 : f32 to vector<256x32xf32>
    %22 = arith.addf %21, %20 : vector<256x32xf32>
    %23 = arith.divf %21, %22 : vector<256x32xf32>
    %24 = arith.mulf %18, %23 : vector<256x32xf32>
    %25 = vector.shape_cast %24 : vector<256x32xf32> to vector<1x256x32xf32>
    %cst_13 = arith.constant dense<0.000000e+00> : vector<1x32xf32>
    %26 = vector.multi_reduction <add>, %25, %cst_13 [1] : vector<1x256x32xf32> to vector<1x32xf32>
    %cst_14 = arith.constant 2.560000e+02 : f32
    %27 = vector.broadcast %cst_14 : f32 to vector<1x32xf32>
    %28 = arith.divf %26, %27 : vector<1x32xf32>
    %29 = arith.truncf %28 : vector<1x32xf32> to vector<1x32xbf16>
    %c0_15 = arith.constant 0 : index
    %c0_16 = arith.constant 0 : index
    %30 = vector.load %arg6[%c0_15, %c0_16] : memref<32x32xbf16, #tpu.memory_space<vmem>>, vector<32x32xbf16>
    %cst_17 = arith.constant dense<0.000000e+00> : vector<1x32xf32>
    %31 = tpu.matmul %29, %30, %cst_17 {dimension_numbers = #tpu.dot_dimension_numbers<[1], [0], [0], [1], [0, 0, 1, 1], [], []>} : vector<1x32xbf16>, vector<32x32xbf16>, vector<1x32xf32> -> vector<1x32xf32>
    %c0_18 = arith.constant 0 : index
    %c0_19 = arith.constant 0 : index
    %32 = vector.load %arg7[%c0_18, %c0_19] : memref<1x32xf32, #tpu.memory_space<vmem>>, vector<1x32xf32>
    %33 = arith.addf %31, %32 : vector<1x32xf32>
    %cst_20 = arith.constant 0.000000e+00 : f32
    %34 = vector.broadcast %cst_20 : f32 to vector<1x32xf32>
    %35 = arith.maximumf %33, %34 : vector<1x32xf32>
    %36 = arith.truncf %35 : vector<1x32xf32> to vector<1x32xbf16>
    %c0_21 = arith.constant 0 : index
    %c0_22 = arith.constant 0 : index
    %37 = vector.load %arg8[%c0_21, %c0_22] : memref<32x32xbf16, #tpu.memory_space<vmem>>, vector<32x32xbf16>
    %cst_23 = arith.constant dense<0.000000e+00> : vector<1x32xf32>
    %38 = tpu.matmul %36, %37, %cst_23 {dimension_numbers = #tpu.dot_dimension_numbers<[1], [0], [0], [1], [0, 0, 1, 1], [], []>} : vector<1x32xbf16>, vector<32x32xbf16>, vector<1x32xf32> -> vector<1x32xf32>
    %c0_24 = arith.constant 0 : index
    %c0_25 = arith.constant 0 : index
    %39 = vector.load %arg9[%c0_24, %c0_25] : memref<1x32xf32, #tpu.memory_space<vmem>>, vector<1x32xf32>
    %40 = arith.addf %38, %39 : vector<1x32xf32>
    %41 = arith.negf %40 : vector<1x32xf32>
    %42 = math.exp %41 : vector<1x32xf32>
    %cst_26 = arith.constant 1.000000e+00 : f32
    %43 = vector.broadcast %cst_26 : f32 to vector<1x32xf32>
    %44 = arith.addf %43, %42 : vector<1x32xf32>
    %45 = arith.divf %43, %44 : vector<1x32xf32>
    %46 = vector.shape_cast %45 : vector<1x32xf32> to vector<1x1x32xf32>
    %cst_27 = arith.constant 1.000000e+00 : f32
    %47 = vector.broadcast %cst_27 : f32 to vector<1x1x32xf32>
    %48 = arith.addf %47, %46 : vector<1x1x32xf32>
    %49 = vector.broadcast %48 : vector<1x1x32xf32> to vector<1x256x32xf32>
    %50 = arith.mulf %25, %49 : vector<1x256x32xf32>
    %51 = vector.shape_cast %50 : vector<1x256x32xf32> to vector<256x32xf32>
    %52 = arith.truncf %51 : vector<256x32xf32> to vector<256x32xbf16>
    %c0_28 = arith.constant 0 : index
    %c0_29 = arith.constant 0 : index
    %53 = vector.load %arg10[%c0_28, %c0_29] : memref<32x64xbf16, #tpu.memory_space<vmem>>, vector<32x64xbf16>
    %cst_30 = arith.constant dense<0.000000e+00> : vector<256x64xf32>
    %54 = tpu.matmul %52, %53, %cst_30 {dimension_numbers = #tpu.dot_dimension_numbers<[1], [0], [0], [1], [0, 0, 1, 1], [], []>} : vector<256x32xbf16>, vector<32x64xbf16>, vector<256x64xf32> -> vector<256x64xf32>
    %c0_31 = arith.constant 0 : index
    %c0_32 = arith.constant 0 : index
    %55 = vector.load %arg11[%c0_31, %c0_32] : memref<1x64xf32, #tpu.memory_space<vmem>>, vector<1x64xf32>
    %56 = vector.broadcast %55 : vector<1x64xf32> to vector<256x64xf32>
    %57 = arith.addf %54, %56 : vector<256x64xf32>
    %58 = arith.negf %57 : vector<256x64xf32>
    %59 = math.exp %58 : vector<256x64xf32>
    %cst_33 = arith.constant 1.000000e+00 : f32
    %60 = vector.broadcast %cst_33 : f32 to vector<256x64xf32>
    %61 = arith.addf %60, %59 : vector<256x64xf32>
    %62 = arith.divf %60, %61 : vector<256x64xf32>
    %63 = arith.mulf %57, %62 : vector<256x64xf32>
    %64 = arith.truncf %63 : vector<256x64xf32> to vector<256x64xbf16>
    %c0_34 = arith.constant 0 : index
    %c0_35 = arith.constant 0 : index
    %65 = vector.load %arg12[%c0_34, %c0_35] : memref<64x32xbf16, #tpu.memory_space<vmem>>, vector<64x32xbf16>
    %cst_36 = arith.constant dense<0.000000e+00> : vector<256x32xf32>
    %66 = tpu.matmul %64, %65, %cst_36 {dimension_numbers = #tpu.dot_dimension_numbers<[1], [0], [0], [1], [0, 0, 1, 1], [], []>} : vector<256x64xbf16>, vector<64x32xbf16>, vector<256x32xf32> -> vector<256x32xf32>
    %c0_37 = arith.constant 0 : index
    %c0_38 = arith.constant 0 : index
    %67 = vector.load %arg13[%c0_37, %c0_38] : memref<1x32xf32, #tpu.memory_space<vmem>>, vector<1x32xf32>
    %68 = vector.broadcast %67 : vector<1x32xf32> to vector<256x32xf32>
    %69 = arith.addf %66, %68 : vector<256x32xf32>
    %70 = arith.addf %51, %69 : vector<256x32xf32>
    %71 = arith.truncf %13 : vector<256x32xf32> to vector<256x32xbf16>
    %c0_39 = arith.constant 0 : index
    %c0_40 = arith.constant 0 : index
    %72 = vector.load %arg14[%c0_39, %c0_40] : memref<32x64xbf16, #tpu.memory_space<vmem>>, vector<32x64xbf16>
    %cst_41 = arith.constant dense<0.000000e+00> : vector<256x64xf32>
    %73 = tpu.matmul %71, %72, %cst_41 {dimension_numbers = #tpu.dot_dimension_numbers<[1], [0], [0], [1], [0, 0, 1, 1], [], []>} : vector<256x32xbf16>, vector<32x64xbf16>, vector<256x64xf32> -> vector<256x64xf32>
    %74 = arith.truncf %70 : vector<256x32xf32> to vector<256x32xbf16>
    %c0_42 = arith.constant 0 : index
    %c0_43 = arith.constant 0 : index
    %75 = vector.load %arg15[%c0_42, %c0_43] : memref<32x64xbf16, #tpu.memory_space<vmem>>, vector<32x64xbf16>
    %cst_44 = arith.constant dense<0.000000e+00> : vector<256x64xf32>
    %76 = tpu.matmul %74, %75, %cst_44 {dimension_numbers = #tpu.dot_dimension_numbers<[1], [0], [0], [1], [0, 0, 1, 1], [], []>} : vector<256x32xbf16>, vector<32x64xbf16>, vector<256x64xf32> -> vector<256x64xf32>
    %77 = arith.addf %73, %76 : vector<256x64xf32>
    %c0_45 = arith.constant 0 : index
    %c0_46 = arith.constant 0 : index
    %78 = vector.load %arg16[%c0_45, %c0_46] : memref<1x64xf32, #tpu.memory_space<vmem>>, vector<1x64xf32>
    %79 = vector.broadcast %78 : vector<1x64xf32> to vector<256x64xf32>
    %80 = arith.addf %77, %79 : vector<256x64xf32>
    %81 = arith.negf %80 : vector<256x64xf32>
    %82 = math.exp %81 : vector<256x64xf32>
    %cst_47 = arith.constant 1.000000e+00 : f32
    %83 = vector.broadcast %cst_47 : f32 to vector<256x64xf32>
    %84 = arith.addf %83, %82 : vector<256x64xf32>
    %85 = arith.divf %83, %84 : vector<256x64xf32>
    %86 = arith.mulf %80, %85 : vector<256x64xf32>
    %87 = vector.shape_cast %86 : vector<256x64xf32> to vector<1x256x64xf32>
    %88 = arith.truncf %87 : vector<1x256x64xf32> to vector<1x256x64xbf16>
    %c0_48 = arith.constant 0 : index
    %c0_49 = arith.constant 0 : index
    %c0_50 = arith.constant 0 : index
    %89 = vector.load %arg17[%c0_48, %c0_49, %c0_50] : memref<1x256x64xbf16, #tpu.memory_space<vmem>>, vector<1x256x64xbf16>
    tpu.vector_store %arg17[%c0_48, %c0_49, %c0_50], %88 {strides = array<i32>} : memref<1x256x64xbf16, #tpu.memory_space<vmem>>, vector<1x256x64xbf16>,
    return
  }
  func.func @transform_0(%arg0: i32) -> (i32, i32, i32) {
    %c0_i32 = arith.constant 0 : i32
    %c0_i32_0 = arith.constant 0 : i32
    %c0_i32_1 = arith.constant 0 : i32
    return %arg0, %c0_i32, %c0_i32_0 : i32, i32, i32
  }
  func.func @transform_1(%arg0: i32) -> (i32, i32) {
    %c0_i32 = arith.constant 0 : i32
    %c0_i32_0 = arith.constant 0 : i32
    %c0_i32_1 = arith.constant 0 : i32
    return %c0_i32, %c0_i32_0 : i32, i32
  }
  func.func @transform_2(%arg0: i32) -> (i32, i32) {
    %c0_i32 = arith.constant 0 : i32
    %c0_i32_0 = arith.constant 0 : i32
    %c0_i32_1 = arith.constant 0 : i32
    return %c0_i32, %c0_i32_0 : i32, i32
  }
  func.func @transform_3(%arg0: i32) -> (i32, i32) {
    %c0_i32 = arith.constant 0 : i32
    %c0_i32_0 = arith.constant 0 : i32
    %c0_i32_1 = arith.constant 0 : i32
    return %c0_i32, %c0_i32_0 : i32, i32
  }
  func.func @transform_4(%arg0: i32) -> (i32, i32) {
    %c0_i32 = arith.constant 0 : i32
    %c0_i32_0 = arith.constant 0 : i32
    %c0_i32_1 = arith.constant 0 : i32
    return %c0_i32, %c0_i32_0 : i32, i32
  }
  func.func @transform_5(%arg0: i32) -> (i32, i32) {
    %c0_i32 = arith.constant 0 : i32
    %c0_i32_0 = arith.constant 0 : i32
    %c0_i32_1 = arith.constant 0 : i32
    return %c0_i32, %c0_i32_0 : i32, i32
  }
  func.func @transform_6(%arg0: i32) -> (i32, i32) {
    %c0_i32 = arith.constant 0 : i32
    %c0_i32_0 = arith.constant 0 : i32
    %c0_i32_1 = arith.constant 0 : i32
    return %c0_i32, %c0_i32_0 : i32, i32
  }
  func.func @transform_7(%arg0: i32) -> (i32, i32) {
    %c0_i32 = arith.constant 0 : i32
    %c0_i32_0 = arith.constant 0 : i32
    %c0_i32_1 = arith.constant 0 : i32
    return %c0_i32, %c0_i32_0 : i32, i32
  }
  func.func @transform_8(%arg0: i32) -> (i32, i32) {
    %c0_i32 = arith.constant 0 : i32
    %c0_i32_0 = arith.constant 0 : i32
    %c0_i32_1 = arith.constant 0 : i32
    return %c0_i32, %c0_i32_0 : i32, i32
  }
  func.func @transform_9(%arg0: i32) -> (i32, i32) {
    %c0_i32 = arith.constant 0 : i32
    %c0_i32_0 = arith.constant 0 : i32
    %c0_i32_1 = arith.constant 0 : i32
    return %c0_i32, %c0_i32_0 : i32, i32
  }
  func.func @transform_10(%arg0: i32) -> (i32, i32) {
    %c0_i32 = arith.constant 0 : i32
    %c0_i32_0 = arith.constant 0 : i32
    %c0_i32_1 = arith.constant 0 : i32
    return %c0_i32, %c0_i32_0 : i32, i32
  }
  func.func @transform_11(%arg0: i32) -> (i32, i32) {
    %c0_i32 = arith.constant 0 : i32
    %c0_i32_0 = arith.constant 0 : i32
    %c0_i32_1 = arith.constant 0 : i32
    return %c0_i32, %c0_i32_0 : i32, i32
  }
  func.func @transform_12(%arg0: i32) -> (i32, i32) {
    %c0_i32 = arith.constant 0 : i32
    %c0_i32_0 = arith.constant 0 : i32
    %c0_i32_1 = arith.constant 0 : i32
    return %c0_i32, %c0_i32_0 : i32, i32
  }
  func.func @transform_13(%arg0: i32) -> (i32, i32) {
    %c0_i32 = arith.constant 0 : i32
    %c0_i32_0 = arith.constant 0 : i32
    %c0_i32_1 = arith.constant 0 : i32
    return %c0_i32, %c0_i32_0 : i32, i32
  }
  func.func @transform_14(%arg0: i32) -> (i32, i32) {
    %c0_i32 = arith.constant 0 : i32
    %c0_i32_0 = arith.constant 0 : i32
    %c0_i32_1 = arith.constant 0 : i32
    return %c0_i32, %c0_i32_0 : i32, i32
  }
  func.func @transform_15(%arg0: i32) -> (i32, i32) {
    %c0_i32 = arith.constant 0 : i32
    %c0_i32_0 = arith.constant 0 : i32
    %c0_i32_1 = arith.constant 0 : i32
    return %c0_i32, %c0_i32_0 : i32, i32
  }
  func.func @transform_16(%arg0: i32) -> (i32, i32, i32) {
    %c0_i32 = arith.constant 0 : i32
    %c0_i32_0 = arith.constant 0 : i32
    %c0_i32_1 = arith.constant 0 : i32
    return %arg0, %c0_i32, %c0_i32_0 : i32, i32, i32
  }
}

</mosaic_0001>

<bundles_post_ra>
// kernel: tpu_custom_call.1
= control target key start
LH: loop header
LB: loop body
LE: loop exit
PB: predicated region body
PF: predicated region fallthrough
CT: control target
= control target key end

     0   :  { %s4805_s21 = smov 0   ;;  %s6273_s0 = inlined_call_operand.vmem [shape: f32[4,256,64], index: 0, kind: input, shape index: {}]   ;;  %s6274_s1 = inlined_call_operand.vmem [shape: bf16[64,32], index: 1, kind: input, shape index: {}]   ;;  %s6275_s2 = inlined_call_operand.vmem [shape: f32[1,32], index: 2, kind: input, shape index: {}]   ;;  %s6276_s3 = inlined_call_operand.vmem [shape: bf16[64,32], index: 3, kind: input, shape index: {}]   ;;  %s6277_s4 = inlined_call_operand.vmem [shape: f32[1,32], index: 4, kind: input, shape index: {}]   ;;  %s6278_s5 = inlined_call_operand.vmem [shape: bf16[32,32], index: 5, kind: input, shape index: {}]   ;;  %s6279_s6 = inlined_call_operand.vmem [shape: f32[1,32], index: 6, kind: input, shape index: {}]   ;;  %s6280_s7 = inlined_call_operand.vmem [shape: bf16[32,32], index: 7, kind: input, shape index: {}]   ;;  %s6281_s8 = inlined_call_operand.vmem [shape: f32[1,32], index: 8, kind: input, shape index: {}]   ;;  %s6282_s9 = inlined_call_operand.vmem [shape: bf16[32,64], index: 9, kind: input, shape index: {}]   ;;  %s6283_s10 = inlined_call_operand.vmem [shape: f32[1,64], index: 10, kind: input, shape index: {}]   ;;  %s6284_s11 = inlined_call_operand.vmem [shape: bf16[64,32], index: 11, kind: input, shape index: {}]   ;;  %s6285_s12 = inlined_call_operand.vmem [shape: f32[1,32], index: 12, kind: input, shape index: {}]   ;;  %s6286_s13 = inlined_call_operand.vmem [shape: bf16[32,64], index: 13, kind: input, shape index: {}]   ;;  %s6287_s14 = inlined_call_operand.vmem [shape: bf16[32,64], index: 14, kind: input, shape index: {}]   ;;  %s6288_s15 = inlined_call_operand.vmem [shape: f32[1,64], index: 15, kind: input, shape index: {}]   ;;  %s6289_s16 = inlined_call_operand.vmem [shape: bf16[4,256,64], index: 16, kind: output, shape index: {}]  }
   0x1   :  { %6329 = sst [smem:[#allocation39_spill]] %s6273_s0 }
   0x2 LB: > { %s3435_s22 = sadd.s32 4294967295, %s4716_s21   ;;  %p3439_p0 = scmp.ge.s32.totalorder %s4716_s21, 1  ;;  %s4716_s21 = sphi %s4805_s21, %s26_s21  }
   0x3   : > { %p462_p1 = scmp.lt.s32.totalorder %s4716_s21, 5 }
   0x5   : > { %p463_p2 = pnand %p3439_p0, %p462_p1 }
   0x7   : > { %466 = sbr.rel (%p463_p2) target bundleno = 1670 (0x686), region = 84 }
   0xe   : > { %v4172_v0 = vld [vmem:[%s6276_s3] sm:$0xff]   ;;  %p512_p3 = scmp.lt.s32.totalorder %s3435_s22, 3  ;;  %v4173_v1 = vld [vmem:[%s6276_s3 + $0x8] sm:$0xff]   ;;  %v4174_v2 = vld [vmem:[%s6276_s3 + $0x10] sm:$0xff]   ;;  %s6330_s17 = sld [smem:[#allocation39_spill]]  ;;  %vm610_vm0 = vcmask 523264  }
   0xf   : > { %3926 = vmatprep.subr.bf16.mxu1 %v4172_v0  ;;  %v4175_v6 = vld [vmem:[%s6276_s3 + $0x18] sm:$0xff]   ;;  %v4176_v52 = vld [vmem:[%s6274_s1] sm:$0xff]   ;;  %v4177_v53 = vld [vmem:[%s6274_s1 + $0x8] sm:$0xff]   ;;  %v4718_v56 = vmov 0.0   ;;  %vm4719_vm1 = vmmov 0   ;;  %vm1468_vm2 = vcmask 261120  }
  0x10   : > { %s6426_s22 = smov (!%p512_p3, %s3435_s22), 3  ;;  %3927 = vmatpush3.bf16.msra.mxu1 %v4172_v0  ;;  %3886 = vmatprep.subr.bf16.mxu0 %v4176_v52  ;;  %v4178_v54 = vld [vmem:[%s6274_s1 + $0x10] sm:$0xff]   ;;  %v4179_v55 = vld [vmem:[%s6274_s1 + $0x18] sm:$0xff]   ;;  %v4180_v57 = vld [vmem:[%s6278_s5] sm:$0xff]   ;;  %vm3347_vm3 = vcmask 519168  }
  0x11   : > { %3928 = vmatprep.subr.bf16.mxu1 %v4173_v1  ;;  %s3732_s29 = sshll.u32 %s6426_s22, 8  ;;  %3887 = vmatpush3.bf16.msra.mxu0 %v4176_v52  ;;  %v4181_v58 = vld [vmem:[%s6278_s5 + $0x8] sm:$0xff]   ;;  %v4931_v59 = vld [vmem:[%s6277_s4] ss:$0 sm:$0xff]  ;;  %s3733_s19 = sshll.u32 %s6426_s22, 7 }
  0x12   : > { %3888 = vmatprep.subr.bf16.mxu0 %v4177_v53  ;;  %s6108_s23 = scalar_lea.vmem %s6289_s16, %s3733_s19 }
  0x14   : > { %s4828_s18 = scalar_lea.vmem %s6330_s17, %s3732_s29  ;;  %3929 = vmatpush3.bf16.msra.mxu1 %v4173_v1 }
  0x15   : > { %v523_v3 = vld [vmem:[%s4828_s18] sm:$0xff]  ;;  %v524_v4 = vld [vmem:[%s4828_s18 + $0x8] sm:$0xff]  ;;  %3930 = vmatprep.subr.bf16.mxu1 %v4174_v2  ;;  %v525_v7 = vld [vmem:[%s4828_s18 + $0x10] sm:$0xff]  ;;  %3889 = vmatpush3.bf16.msra.mxu0 %v4177_v53 }
  0x16   : > { %v555_v5 = vpack.c.bf16 %v524_v4, %v523_v3  ;;  %v526_v8 = vld [vmem:[%s4828_s18 + $0x18] sm:$0xff]  ;;  %v527_v9 = vld [vmem:[%s4828_s18 + $0x20] sm:$0xff]  ;;  %v528_v10 = vld [vmem:[%s4828_s18 + $0x28] sm:$0xff]  ;;  %3890 = vmatprep.subr.bf16.mxu0 %v4178_v54 }
  0x17   : > { %v4841_v11 = vpack.c.bf16 %v526_v8, %v525_v7  ;;  %v4843_v12 = vpack.c.bf16 %v528_v10, %v527_v9  ;;  %v529_v13 = vld [vmem:[%s4828_s18 + $0x30] sm:$0xff]  ;;  %v530_v14 = vld [vmem:[%s4828_s18 + $0x38] sm:$0xff]  ;;  %v531_v15 = vld [vmem:[%s4828_s18 + $0x40] sm:$0xff] }
  0x18   : > { %3934 = vmatprep.mubr.msk.bf16.mxu1 %vm610_vm0, %v555_v5  ;;  %3894 = vmatprep.mubr.msk.bf16.mxu0 %vm610_vm0, %v555_v5  ;;  %v532_v16 = vld [vmem:[%s4828_s18 + $0x48] sm:$0xff]  ;;  %v558_v17 = vpack.c.bf16 %v530_v14, %v529_v13  ;;  %v533_v19 = vld [vmem:[%s4828_s18 + $0x50] sm:$0xff]  ;;  %v534_v20 = vld [vmem:[%s4828_s18 + $0x58] sm:$0xff] }
  0x19   : > { %3931 = vmatpush3.bf16.msra.mxu1 %v4174_v2  ;;  %v559_v18 = vpack.c.bf16 %v532_v16, %v531_v15  ;;  %v535_v21 = vld [vmem:[%s4828_s18 + $0x60] sm:$0xff]  ;;  %v536_v22 = vld [vmem:[%s4828_s18 + $0x68] sm:$0xff]  ;;  %v560_v23 = vpack.c.bf16 %v534_v20, %v533_v19  ;;  %v537_v25 = vld [vmem:[%s4828_s18 + $0x70] sm:$0xff]  ;;  %3891 = vmatpush3.bf16.msra.mxu0 %v4178_v54 }
  0x1a   : > { %3932 = vmatprep.subr.bf16.mxu1 %v4175_v6  ;;  %v561_v24 = vpack.c.bf16 %v536_v22, %v535_v21  ;;  %v538_v26 = vld [vmem:[%s4828_s18 + $0x78] sm:$0xff]  ;;  %v539_v27 = vld [vmem:[%s4828_s18 + $0x80] sm:$0xff]  ;;  %v540_v28 = vld [vmem:[%s4828_s18 + $0x88] sm:$0xff]  ;;  %3892 = vmatprep.subr.bf16.mxu0 %v4179_v55 }
  0x1b   : > { %v562_v29 = vpack.c.bf16 %v538_v26, %v537_v25  ;;  %v563_v30 = vpack.c.bf16 %v540_v28, %v539_v27  ;;  %v541_v31 = vld [vmem:[%s4828_s18 + $0x90] sm:$0xff]  ;;  %v542_v32 = vld [vmem:[%s4828_s18 + $0x98] sm:$0xff]  ;;  %v543_v33 = vld [vmem:[%s4828_s18 + $0xa0] sm:$0xff] }
  0x1c   : > { %v544_v34 = vld [vmem:[%s4828_s18 + $0xa8] sm:$0xff]  ;;  %v564_v35 = vpack.c.bf16 %v542_v32, %v541_v31  ;;  %v545_v37 = vld [vmem:[%s4828_s18 + $0xb0] sm:$0xff]  ;;  %v546_v38 = vld [vmem:[%s4828_s18 + $0xb8] sm:$0xff] }
  0x1d   : > { %3933 = vmatpush3.bf16.msra.mxu1 %v4175_v6  ;;  %v565_v36 = vpack.c.bf16 %v544_v34, %v543_v33  ;;  %v547_v39 = vld [vmem:[%s4828_s18 + $0xc0] sm:$0xff]  ;;  %v548_v40 = vld [vmem:[%s4828_s18 + $0xc8] sm:$0xff]  ;;  %v566_v41 = vpack.c.bf16 %v546_v38, %v545_v37  ;;  %v549_v43 = vld [vmem:[%s4828_s18 + $0xd0] sm:$0xff]  ;;  %3893 = vmatpush3.bf16.msra.mxu0 %v4179_v55 }
  0x1e   : > { %v567_v42 = vpack.c.bf16 %v548_v40, %v547_v39  ;;  %v550_v44 = vld [vmem:[%s4828_s18 + $0xd8] sm:$0xff]  ;;  %v551_v45 = vld [vmem:[%s4828_s18 + $0xe0] sm:$0xff]  ;;  %v552_v46 = vld [vmem:[%s4828_s18 + $0xe8] sm:$0xff]  ;;  %3966 = vmatprep.subr.bf16.mxu0 %v4718_v56  ;;  %3974 = vmatprep.subr.bf16.mxu1 %v4718_v56 }
  0x1f   : > { %v568_v47 = vpack.c.bf16 %v550_v44, %v549_v43  ;;  %v569_v48 = vpack.c.bf16 %v552_v46, %v551_v45  ;;  %v553_v49 = vld [vmem:[%s4828_s18 + $0xf0] sm:$0xff]  ;;  %v554_v50 = vld [vmem:[%s4828_s18 + $0xf8] sm:$0xff] }
  0x20   : > { %3935 = vmatmul.mubr.msk.bf16.vlgmr.msra.gmra.mrb[0].mxu1 %vm610_vm0, %v4841_v11  ;;  %v570_v51 = vpack.c.bf16 %v554_v50, %v553_v49  ;;  %3895 = vmatmul.mubr.msk.bf16.vlgmr.msra.gmra.mrb[0].mxu0 %vm610_vm0, %v4841_v11 }
  0x21   : > { %3938 = vmatprep.mubr.msk.bf16.mxu1 %vm610_vm0, %v4843_v12  ;;  %3898 = vmatprep.mubr.msk.bf16.mxu0 %vm610_vm0, %v4843_v12 }
  0x22   : > { %3967 = vmatpush3.bf16.msra.mxu0 %v4180_v57 }
  0x23   : > { %3968 = vmatprep.subr.bf16.mxu0 %v4718_v56 }
  0x26   : > { %3969 = vmatpush3.bf16.msra.mxu0 %v4181_v58 }
  0x28   : > { %3939 = vmatmul.mubr.msk.bf16.gmra.mrb[4].mxu1 %vm610_vm0, %v558_v17  ;;  %3899 = vmatmul.mubr.msk.bf16.gmra.mrb[4].mxu0 %vm610_vm0, %v558_v17 }
  0x29   : > { %3942 = vmatprep.mubr.msk.bf16.mxu1 %vm610_vm0, %v559_v18  ;;  %3902 = vmatprep.mubr.msk.bf16.mxu0 %vm610_vm0, %v559_v18 }
  0x30   : > { %3943 = vmatmul.mubr.msk.bf16.gmra.mrb[8].mxu1 %vm610_vm0, %v560_v23  ;;  %3903 = vmatmul.mubr.msk.bf16.gmra.mrb[8].mxu0 %vm610_vm0, %v560_v23 }
  0x31   : > { %3946 = vmatprep.mubr.msk.bf16.mxu1 %vm610_vm0, %v561_v24  ;;  %3906 = vmatprep.mubr.msk.bf16.mxu0 %vm610_vm0, %v561_v24 }
  0x38   : > { %3947 = vmatmul.mubr.msk.bf16.gmra.mrb[12].mxu1 %vm610_vm0, %v562_v29  ;;  %3907 = vmatmul.mubr.msk.bf16.gmra.mrb[12].mxu0 %vm610_vm0, %v562_v29 }
  0x39   : > { %3950 = vmatprep.mubr.msk.bf16.mxu1 %vm610_vm0, %v563_v30  ;;  %3910 = vmatprep.mubr.msk.bf16.mxu0 %vm610_vm0, %v563_v30 }
  0x40   : > { %3951 = vmatmul.mubr.msk.bf16.gmra.mrb[16].mxu1 %vm610_vm0, %v564_v35  ;;  %3911 = vmatmul.mubr.msk.bf16.gmra.mrb[16].mxu0 %vm610_vm0, %v564_v35 }
  0x41   : > { %3954 = vmatprep.mubr.msk.bf16.mxu1 %vm610_vm0, %v565_v36  ;;  %3914 = vmatprep.mubr.msk.bf16.mxu0 %vm610_vm0, %v565_v36 }
  0x48   : > { %3955 = vmatmul.mubr.msk.bf16.gmra.mrb[20].mxu1 %vm610_vm0, %v566_v41  ;;  %3915 = vmatmul.mubr.msk.bf16.gmra.mrb[20].mxu0 %vm610_vm0, %v566_v41 }
  0x49   : > { %3958 = vmatprep.mubr.msk.bf16.mxu1 %vm610_vm0, %v567_v42  ;;  %3918 = vmatprep.mubr.msk.bf16.mxu0 %vm610_vm0, %v567_v42 }
  0x50   : > { %3959 = vmatmul.mubr.msk.bf16.gmra.mrb[24].mxu1 %vm610_vm0, %v568_v47  ;;  %3919 = vmatmul.mubr.msk.bf16.gmra.mrb[24].mxu0 %vm610_vm0, %v568_v47 }
  0x51   : > { %3962 = vmatprep.mubr.msk.bf16.mxu1 %vm610_vm0, %v569_v48  ;;  %3922 = vmatprep.mubr.msk.bf16.mxu0 %vm610_vm0, %v569_v48 }
  0x58   : > { %3963 = vmatmul.mubr.msk.bf16.gmra.mrb[28].mxu1 %vm610_vm0, %v570_v51  ;;  %3923 = vmatmul.mubr.msk.bf16.gmra.mrb[28].mxu0 %vm610_vm0, %v570_v51 }
  0x59   : > { %3970 = vmatprep.mubr.msk.bf16.mxu0 %vm4719_vm1, %v4718_v56  ;;  %3978 = vmatprep.mubr.msk.bf16.mxu1 %vm4719_vm1, %v4718_v56 }
  0xf3   : > { %v3936_v60 = vpop.f32.mrb[0].mxu1 }
  0xf4   : > { %v4934_v61 = vadd.f32 %v3936_v60, %v4931_v59  ;;  %v1117_v62 = vpop.f32.mrb[1].mxu1 }
  0xf5   : > { %v4937_v63 = vadd.f32 %v4931_v59, %v1117_v62  ;;  %v3937_v0 = vpop.f32.mrb[2].mxu1 }
  0xf6   : > { %v3520_v1 = vmul.f32 -1.442695, %v4934_v61  ;;  %v4941_v2 = vadd.f32 %v3937_v0, %v4931_v59  ;;  %v1120_v3 = vpop.f32.mrb[3].mxu1 }
  0xf7   : > { %v3518_v4 = vmul.f32 -1.442695, %v4937_v63  ;;  %v4945_v5 = vadd.f32 %v4931_v59, %v1120_v3 }
  0xf8   : > { %4194 = vpow2.f32 %v3520_v1  ;;  %v3521_v6 = vmul.f32 -1.442695, %v4941_v2 }
  0xf9   : > { %4196 = vpow2.f32 %v3518_v4  ;;  %v3519_v7 = vmul.f32 -1.442695, %v4945_v5 }
  0xfa   : > { %4198 = vpow2.f32 %v3521_v6 }
  0xfb   : > { %4200 = vpow2.f32 %v3519_v7  ;;  %v3940_v8 = vpop.f32.mrb[4].mxu1 }
  0xfc   : > { %v4950_v9 = vadd.f32 %v3940_v8, %v4931_v59  ;;  %v1133_v10 = vpop.f32.mrb[5].mxu1 }
  0xfd   : > { %v4953_v11 = vadd.f32 %v4931_v59, %v1133_v10  ;;  %v3941_v12 = vpop.f32.mrb[6].mxu1 }
  0xfe   : > { %v3524_v13 = vmul.f32 -1.442695, %v4950_v9  ;;  %v4957_v14 = vadd.f32 %v3941_v12, %v4931_v59  ;;  %v1136_v15 = vpop.f32.mrb[7].mxu1 }
  0xff   : > { %v3522_v16 = vmul.f32 -1.442695, %v4953_v11  ;;  %v4961_v17 = vadd.f32 %v4931_v59, %v1136_v15 }
 0x100   : > { %4202 = vpow2.f32 %v3524_v13  ;;  %v3525_v18 = vmul.f32 -1.442695, %v4957_v14 }
 0x101   : > { %4204 = vpow2.f32 %v3522_v16  ;;  %v3523_v19 = vmul.f32 -1.442695, %v4961_v17 }
 0x102   : > { %v4195_v20 = vpop.eup %4194  ;;  %4206 = vpow2.f32 %v3525_v18 }
 0x103   : > { %v4197_v21 = vpop.eup %4196  ;;  %v1342_v22 = vadd.f32 1.0, %v4195_v20  ;;  %4208 = vpow2.f32 %v3523_v19  ;;  %v3944_v23 = vpop.f32.mrb[8].mxu1 }
 0x104   : > { %v4199_v24 = vpop.eup %4198  ;;  %v1340_v25 = vadd.f32 1.0, %v4197_v21  ;;  %v4966_v26 = vadd.f32 %v3944_v23, %v4931_v59  ;;  %v1149_v27 = vpop.f32.mrb[9].mxu1 }
 0x105   : > { %v4201_v28 = vpop.eup %4200  ;;  %4210 = vrcp.f32 %v1342_v22  ;;  %v1343_v29 = vadd.f32 1.0, %v4199_v24  ;;  %v4969_v30 = vadd.f32 %v4931_v59, %v1149_v27  ;;  %v3945_v31 = vpop.f32.mrb[10].mxu1 }
 0x106   : > { %4212 = vrcp.f32 %v1340_v25  ;;  %v1341_v32 = vadd.f32 1.0, %v4201_v28  ;;  %v3528_v33 = vmul.f32 -1.442695, %v4966_v26  ;;  %v4973_v34 = vadd.f32 %v3945_v31, %v4931_v59  ;;  %v1152_v35 = vpop.f32.mrb[11].mxu1 }
 0x107   : > { %4214 = vrcp.f32 %v1343_v29  ;;  %v3526_v36 = vmul.f32 -1.442695, %v4969_v30  ;;  %v4977_v37 = vadd.f32 %v4931_v59, %v1152_v35 }
 0x108   : > { %4216 = vrcp.f32 %v1341_v32  ;;  %v3529_v38 = vmul.f32 -1.442695, %v4973_v34 }
 0x109   : > { %4218 = vpow2.f32 %v3528_v33  ;;  %v3527_v39 = vmul.f32 -1.442695, %v4977_v37 }
 0x10a   : > { %v4203_v40 = vpop.eup %4202  ;;  %4220 = vpow2.f32 %v3526_v36 }
 0x10b   : > { %v4205_v41 = vpop.eup %4204  ;;  %v1346_v42 = vadd.f32 1.0, %v4203_v40  ;;  %4222 = vpow2.f32 %v3529_v38  ;;  %v3948_v43 = vpop.f32.mrb[12].mxu1 }
 0x10c   : > { %v4207_v44 = vpop.eup %4206  ;;  %v1344_v45 = vadd.f32 1.0, %v4205_v41  ;;  %4224 = vpow2.f32 %v3527_v39  ;;  %v4982_v46 = vadd.f32 %v3948_v43, %v4931_v59  ;;  %v1165_v47 = vpop.f32.mrb[13].mxu1 }
 0x10d   : > { %v4209_v48 = vpop.eup %4208  ;;  %4226 = vrcp.f32 %v1346_v42  ;;  %v1347_v49 = vadd.f32 1.0, %v4207_v44  ;;  %v4985_v50 = vadd.f32 %v4931_v59, %v1165_v47  ;;  %v3949_v51 = vpop.f32.mrb[14].mxu1 }
 0x10e   : > { %4228 = vrcp.f32 %v1344_v45  ;;  %v1345_v52 = vadd.f32 1.0, %v4209_v48  ;;  %v3532_v53 = vmul.f32 -1.442695, %v4982_v46  ;;  %v4989_v54 = vadd.f32 %v3949_v51, %v4931_v59  ;;  %v1168_v55 = vpop.f32.mrb[15].mxu1 }
 0x10f   : > { %v4211_v57 = vpop.eup %4210  ;;  %4230 = vrcp.f32 %v1347_v49  ;;  %v3530_v58 = vmul.f32 -1.442695, %v4985_v50  ;;  %v4993_v60 = vadd.f32 %v4931_v59, %v1168_v55 }
 0x110   : > { %v4213_v62 = vpop.eup %4212  ;;  %v4996_v0 = vmul.f32 %v4211_v57, %v4934_v61  ;;  %4232 = vrcp.f32 %v1345_v52  ;;  %v3533_v1 = vmul.f32 -1.442695, %v4989_v54 }
 0x111   : > { %v4215_v3 = vpop.eup %4214  ;;  %v5000_v4 = vmul.f32 %v4213_v62, %v4937_v63  ;;  %4234 = vpow2.f32 %v3532_v53  ;;  %v3531_v6 = vmul.f32 -1.442695, %v4993_v60 }
 0x112   : > { %v4217_v7 = vpop.eup %4216  ;;  %4236 = vpow2.f32 %v3530_v58  ;;  %v1472_v10 = vsel %vm1468_vm2, %v4996_v0, 0.0  ;;  %v5009_v15 = vmul.f32 %v4215_v3, %v4941_v2 }
 0x113   : > { %v4219_v8 = vpop.eup %4218  ;;  %v5006_v61 = vmul.f32 %v4217_v7, %v4945_v5  ;;  %4238 = vpow2.f32 %v3533_v1  ;;  %v3952_v12 = vpop.f32.mrb[16].mxu1  ;;  %v1469_v20 = vsel %vm1468_vm2, %v5000_v4, 0.0 }
 0x114   : > { %v4221_v13 = vpop.eup %4220  ;;  %v1350_v63 = vadd.f32 1.0, %v4219_v8  ;;  %4240 = vpow2.f32 %v3531_v6  ;;  %v5012_v16 = vadd.f32 %v3952_v12, %v4931_v59  ;;  %v1181_v18 = vpop.f32.mrb[17].mxu1  ;;  %v1474_v41 = vsel %vm1468_vm2, %v5009_v15, 0.0 }
 0x115   : > { %v4223_v19 = vpop.eup %4222  ;;  %v1470_v5 = vsel %vm1468_vm2, %v5006_v61, 0.0  ;;  %v1348_v21 = vadd.f32 1.0, %v4221_v13  ;;  %v5019_v22 = vadd.f32 %v4931_v59, %v1181_v18  ;;  %v3953_v23 = vpop.f32.mrb[18].mxu1  ;;  %v4182_v13 = vld [vmem:[%s6280_s7] sm:$0xff]  }
 0x116   : > { %v4225_v2 = vpop.eup %4224  ;;  %v1471_v24 = vadd.f32 %v1470_v5, %v1469_v20  ;;  %4242 = vrcp.f32 %v1350_v63  ;;  %v1351_v25 = vadd.f32 1.0, %v4223_v19  ;;  %v3536_v27 = vmul.f32 -1.442695, %v5012_v16  ;;  %v1184_v28 = vpop.f32.mrb[19].mxu1  ;;  %3975 = vmatpush3.bf16.msra.mxu1 %v4182_v13 }
 0x117   : > { %v4227_v29 = vpop.eup %4226  ;;  %4244 = vrcp.f32 %v1348_v21  ;;  %v1349_v31 = vadd.f32 1.0, %v4225_v2  ;;  %v3534_v32 = vmul.f32 -1.442695, %v5019_v22  ;;  %v5024_v33 = vadd.f32 %v3953_v23, %v4931_v59  ;;  %3976 = vmatprep.subr.bf16.mxu1 %v4718_v56 }
 0x118   : > { %v4229_v35 = vpop.eup %4228  ;;  %v1473_v36 = vadd.f32 %v1472_v10, %v1471_v24  ;;  %v5027_v38 = vmul.f32 %v4227_v29, %v4950_v9  ;;  %4246 = vrcp.f32 %v1351_v25  ;;  %v5030_v39 = vadd.f32 %v4931_v59, %v1184_v28 }
 0x119   : > { %v4231_v40 = vpop.eup %4230  ;;  %v5035_v42 = vmul.f32 %v4229_v35, %v4953_v11  ;;  %4248 = vrcp.f32 %v1349_v31  ;;  %v3537_v43 = vmul.f32 -1.442695, %v5024_v33 }
 0x11a   : > { %v4233_v44 = vpop.eup %4232  ;;  %v1480_v45 = vsel %vm1468_vm2, %v5027_v38, 0.0  ;;  %v1475_v9 = vadd.f32 %v1474_v41, %v1473_v36  ;;  %4250 = vpow2.f32 %v3536_v27  ;;  %v3535_v11 = vmul.f32 -1.442695, %v5030_v39 }
 0x11b   : > { %v4235_v47 = vpop.eup %4234  ;;  %v1476_v48 = vsel %vm1468_vm2, %v5035_v42, 0.0  ;;  %v5043_v49 = vmul.f32 %v4233_v44, %v4961_v17  ;;  %4252 = vpow2.f32 %v3534_v32  ;;  %v3956_v51 = vpop.f32.mrb[20].mxu1  ;;  %v5047_v55 = vmul.f32 %v4231_v40, %v4957_v14 }
 0x11c   : > { %v4237_v52 = vpop.eup %4236  ;;  %v1477_v53 = vadd.f32 %v1476_v48, %v1475_v9  ;;  %v1354_v57 = vadd.f32 1.0, %v4235_v47  ;;  %4254 = vpow2.f32 %v3537_v43  ;;  %v1197_v58 = vpop.f32.mrb[21].mxu1  ;;  %v5052_v17 = vadd.f32 %v3956_v51, %v4931_v59 }
 0x11d   : > { %v4239_v62 = vpop.eup %4238  ;;  %v1478_v1 = vsel %vm1468_vm2, %v5043_v49, 0.0  ;;  %v1352_v3 = vadd.f32 1.0, %v4237_v52  ;;  %4256 = vpow2.f32 %v3535_v11  ;;  %v3957_v6 = vpop.f32.mrb[22].mxu1  ;;  %v5055_v14 = vadd.f32 %v4931_v59, %v1197_v58 }
 0x11e   : > { %v4241_v7 = vpop.eup %4240  ;;  %v1479_v8 = vadd.f32 %v1478_v1, %v1477_v53  ;;  %4258 = vrcp.f32 %v1354_v57  ;;  %v1355_v10 = vadd.f32 1.0, %v4239_v62  ;;  %v1200_v12 = vpop.f32.mrb[23].mxu1  ;;  %v3540_v18 = vmul.f32 -1.442695, %v5052_v17 }
 0x11f   : > { %4260 = vrcp.f32 %v1352_v3  ;;  %v1353_v63 = vadd.f32 1.0, %v4241_v7  ;;  %v5062_v19 = vadd.f32 %v3957_v6, %v4931_v59  ;;  %v3538_v21 = vmul.f32 -1.442695, %v5055_v14 }
 0x120   : > { %v4243_v20 = vpop.eup %4242  ;;  %v1481_v5 = vadd.f32 %v1480_v45, %v1479_v8  ;;  %4262 = vrcp.f32 %v1355_v10  ;;  %v5066_v23 = vadd.f32 %v4931_v59, %v1200_v12  ;;  %v1482_v24 = vsel %vm1468_vm2, %v5047_v55, 0.0 }
 0x121   : > { %v4245_v2 = vpop.eup %4244  ;;  %v5071_v25 = vmul.f32 %v4243_v20, %v4966_v26  ;;  %4264 = vrcp.f32 %v1353_v63  ;;  %v3541_v27 = vmul.f32 -1.442695, %v5062_v19 }
 0x122   : > { %v4247_v28 = vpop.eup %4246  ;;  %v5076_v29 = vmul.f32 %v4245_v2, %v4969_v30  ;;  %v1483_v31 = vadd.f32 %v1482_v24, %v1481_v5  ;;  %4266 = vpow2.f32 %v3540_v18  ;;  %v3539_v32 = vmul.f32 -1.442695, %v5066_v23 }
 0x123   : > { %v4249_v35 = vpop.eup %4248  ;;  %v1488_v36 = vsel %vm1468_vm2, %v5071_v25, 0.0  ;;  %4268 = vpow2.f32 %v3538_v21  ;;  %v3960_v26 = vpop.f32.mrb[24].mxu1  ;;  %v5090_v9 = vmul.f32 %v4247_v28, %v4973_v34 }
 0x124   : > { %v4251_v40 = vpop.eup %4250  ;;  %v1484_v41 = vsel %vm1468_vm2, %v5076_v29, 0.0  ;;  %v5084_v56 = vmul.f32 %v4249_v35, %v4977_v37  ;;  %4270 = vpow2.f32 %v3541_v27  ;;  %v5087_v30 = vadd.f32 %v3960_v26, %v4931_v59  ;;  %v1213_v43 = vpop.f32.mrb[25].mxu1 }
 0x125   : > { %v4253_v44 = vpop.eup %4252  ;;  %v1485_v45 = vadd.f32 %v1484_v41, %v1483_v31  ;;  %v1358_v47 = vadd.f32 1.0, %v4251_v40  ;;  %4272 = vpow2.f32 %v3539_v32  ;;  %v3961_v48 = vpop.f32.mrb[26].mxu1  ;;  %v5096_v53 = vadd.f32 %v4931_v59, %v1213_v43 }
 0x126   : > { %v4255_v11 = vpop.eup %4254  ;;  %v1486_v51 = vsel %vm1468_vm2, %v5084_v56, 0.0  ;;  %v1356_v52 = vadd.f32 1.0, %v4253_v44  ;;  %v3544_v37 = vmul.f32 -1.442695, %v5087_v30  ;;  %v1216_v57 = vpop.f32.mrb[27].mxu1  ;;  %v5099_v34 = vadd.f32 %v3961_v48, %v4931_v59 }
 0x127   : > { %v4257_v58 = vpop.eup %4256  ;;  %v1487_v62 = vadd.f32 %v1486_v51, %v1485_v45  ;;  %4274 = vrcp.f32 %v1358_v47  ;;  %v1359_v1 = vadd.f32 1.0, %v4255_v11  ;;  %v3542_v7 = vmul.f32 -1.442695, %v5096_v53 }
 0x128   : > { %v4259_v3 = vpop.eup %4258  ;;  %4276 = vrcp.f32 %v1356_v52  ;;  %v1357_v6 = vadd.f32 1.0, %v4257_v58  ;;  %v5103_v8 = vadd.f32 %v4931_v59, %v1216_v57  ;;  %v3545_v63 = vmul.f32 -1.442695, %v5099_v34 }
 0x129   : > { %v4261_v10 = vpop.eup %4260  ;;  %v1489_v12 = vadd.f32 %v1488_v36, %v1487_v62  ;;  %v5106_v13 = vmul.f32 %v4259_v3, %v4982_v46  ;;  %4278 = vrcp.f32 %v1359_v1  ;;  %v1490_v20 = vsel %vm1468_vm2, %v5090_v9, 0.0 }
 0x12a   : > { %v4263_v18 = vpop.eup %4262  ;;  %v5112_v5 = vmul.f32 %v4261_v10, %v4985_v50  ;;  %4280 = vrcp.f32 %v1357_v6  ;;  %v3543_v21 = vmul.f32 -1.442695, %v5103_v8 }
 0x12b   : > { %v4265_v2 = vpop.eup %4264  ;;  %v1496_v24 = vsel %vm1468_vm2, %v5106_v13, 0.0  ;;  %v1491_v27 = vadd.f32 %v1490_v20, %v1489_v12  ;;  %4282 = vpow2.f32 %v3544_v37  ;;  %v3964_v46 = vpop.f32.mrb[28].mxu1  ;;  %v5126_v40 = vmul.f32 %v4263_v18, %v4989_v54 }
 0x12c   : > { %v4267_v28 = vpop.eup %4266  ;;  %v1492_v31 = vsel %vm1468_vm2, %v5112_v5, 0.0  ;;  %v5120_v32 = vmul.f32 %v4265_v2, %v4993_v60  ;;  %4284 = vpow2.f32 %v3542_v7  ;;  %v5123_v50 = vadd.f32 %v3964_v46, %v4931_v59  ;;  %v1229_v35 = vpop.f32.mrb[29].mxu1 }
 0x12d   : > { %v4269_v36 = vpop.eup %4268  ;;  %v1493_v26 = vadd.f32 %v1492_v31, %v1491_v27  ;;  %v1362_v41 = vadd.f32 1.0, %v4267_v28  ;;  %4286 = vpow2.f32 %v3545_v63  ;;  %v3965_v43 = vpop.f32.mrb[30].mxu1  ;;  %v5132_v37 = vadd.f32 %v4931_v59, %v1229_v35 }
 0x12e   : > { %v4271_v44 = vpop.eup %4270  ;;  %v1494_v45 = vsel %vm1468_vm2, %v5120_v32, 0.0  ;;  %v1360_v47 = vadd.f32 1.0, %v4269_v36  ;;  %4288 = vpow2.f32 %v3543_v21  ;;  %v3548_v60 = vmul.f32 -1.442695, %v5123_v50  ;;  %v1232_v48 = vpop.f32.mrb[31].mxu1 }
 0x12f   : > { %v4273_v11 = vpop.eup %4272  ;;  %v1495_v51 = vadd.f32 %v1494_v45, %v1493_v26  ;;  %4290 = vrcp.f32 %v1362_v41  ;;  %v1363_v52 = vadd.f32 1.0, %v4271_v44  ;;  %v5135_v57 = vadd.f32 %v3965_v43, %v4931_v59  ;;  %v4183_v26 = vld [vmem:[%s6280_s7 + $0x8] sm:$0xff]  }
 0x130   : > { %4292 = vrcp.f32 %v1360_v47  ;;  %v1361_v54 = vadd.f32 1.0, %v4273_v11  ;;  %v5138_v58 = vadd.f32 %v4931_v59, %v1232_v48  ;;  %v3546_v3 = vmul.f32 -1.442695, %v5132_v37  ;;  %3977 = vmatpush3.bf16.msra.mxu1 %v4183_v26 }
 0x131   : > { %v4275_v62 = vpop.eup %4274  ;;  %v1497_v1 = vadd.f32 %v1496_v24, %v1495_v51  ;;  %4294 = vrcp.f32 %v1363_v52  ;;  %v1498_v7 = vsel %vm1468_vm2, %v5126_v40, 0.0  ;;  %v3549_v10 = vmul.f32 -1.442695, %v5135_v57 }
 0x132   : > { %v4277_v6 = vpop.eup %4276  ;;  %4296 = vrcp.f32 %v1361_v54  ;;  %v3547_v12 = vmul.f32 -1.442695, %v5138_v58  ;;  %v5149_v2 = vmul.f32 %v4275_v62, %v5012_v16 }
 0x133   : > { %v4279_v63 = vpop.eup %4278  ;;  %v5146_v18 = vmul.f32 %v4277_v6, %v5019_v22  ;;  %v1499_v59 = vadd.f32 %v1498_v7, %v1497_v1  ;;  %4298 = vpow2.f32 %v3548_v60 }
 0x134   : > { %v4281_v20 = vpop.eup %4280  ;;  %4300 = vpow2.f32 %v3546_v3  ;;  %v5157_v35 = vmul.f32 %v4279_v63, %v5024_v33  ;;  %v1504_v45 = vsel %vm1468_vm2, %v5149_v2, 0.0 }
 0x135   : > { %v4283_v21 = vpop.eup %4282  ;;  %v1500_v24 = vsel %vm1468_vm2, %v5146_v18, 0.0  ;;  %v5154_v27 = vmul.f32 %v4281_v20, %v5030_v39  ;;  %4302 = vpow2.f32 %v3549_v10 }
 0x136   : > { %v4285_v46 = vpop.eup %4284  ;;  %v1501_v28 = vadd.f32 %v1500_v24, %v1499_v59  ;;  %v1366_v31 = vadd.f32 1.0, %v4283_v21  ;;  %4304 = vpow2.f32 %v3547_v12  ;;  %v1506_v11 = vsel %vm1468_vm2, %v5157_v35, 0.0 }
 0x137   : > { %v4287_v22 = vpop.eup %4286  ;;  %v1502_v36 = vsel %vm1468_vm2, %v5154_v27, 0.0  ;;  %v1364_v16 = vadd.f32 1.0, %v4285_v46 }
 0x138   : > { %v4289_v41 = vpop.eup %4288  ;;  %v1503_v39 = vadd.f32 %v1502_v36, %v1501_v28  ;;  %4306 = vrcp.f32 %v1366_v31  ;;  %v1367_v43 = vadd.f32 1.0, %v4287_v22 }
 0x139   : > { %v4291_v44 = vpop.eup %4290  ;;  %4308 = vrcp.f32 %v1364_v16  ;;  %v1365_v47 = vadd.f32 1.0, %v4289_v41 }
 0x13a   : > { %v4293_v33 = vpop.eup %4292  ;;  %v1505_v60 = vadd.f32 %v1504_v45, %v1503_v39  ;;  %4310 = vrcp.f32 %v1367_v43  ;;  %v5172_v1 = vmul.f32 %v4291_v44, %v5052_v17 }
 0x13b   : > { %v4295_v48 = vpop.eup %4294  ;;  %v5169_v51 = vmul.f32 %v4293_v33, %v5055_v14  ;;  %4312 = vrcp.f32 %v1365_v47 }
 0x13c   : > { %v4297_v52 = vpop.eup %4296  ;;  %v1507_v54 = vadd.f32 %v1506_v11, %v1505_v60  ;;  %v5180_v14 = vmul.f32 %v4295_v48, %v5062_v19  ;;  %v1512_v46 = vsel %vm1468_vm2, %v5172_v1, 0.0 }
 0x13d   : > { %v4299_v62 = vpop.eup %4298  ;;  %v1508_v3 = vsel %vm1468_vm2, %v5169_v51, 0.0  ;;  %v5177_v6 = vmul.f32 %v4297_v52, %v5066_v23 }
 0x13e   : > { %v4301_v7 = vpop.eup %4300  ;;  %v1509_v10 = vadd.f32 %v1508_v3, %v1507_v54  ;;  %v1370_v12 = vadd.f32 1.0, %v4299_v62  ;;  %v1514_v19 = vsel %vm1468_vm2, %v5180_v14, 0.0 }
 0x13f   : > { %v4303_v63 = vpop.eup %4302  ;;  %v1510_v59 = vsel %vm1468_vm2, %v5177_v6, 0.0  ;;  %v1368_v20 = vadd.f32 1.0, %v4301_v7 }
 0x140   : > { %v4305_v21 = vpop.eup %4304  ;;  %v1511_v17 = vadd.f32 %v1510_v59, %v1509_v10  ;;  %4314 = vrcp.f32 %v1370_v12  ;;  %v1371_v24 = vadd.f32 1.0, %v4303_v63 }
 0x141   : > { %4316 = vrcp.f32 %v1368_v20  ;;  %v1369_v23 = vadd.f32 1.0, %v4305_v21 }
 0x142   : > { %v4307_v28 = vpop.eup %4306  ;;  %v1513_v31 = vadd.f32 %v1512_v46, %v1511_v17  ;;  %4318 = vrcp.f32 %v1371_v24  ;;  %v3896_v46 = vpop.f32.mrb[0].mxu0 }
 0x143   : > { %v4309_v22 = vpop.eup %4308  ;;  %4320 = vrcp.f32 %v1369_v23  ;;  %v5192_v39 = vmul.f32 %v4307_v28, %v5087_v30 }
 0x144   : > { %v4311_v36 = vpop.eup %4310  ;;  %v5189_v16 = vmul.f32 %v4309_v22, %v5096_v53  ;;  %v1515_v26 = vadd.f32 %v1514_v19, %v1513_v31  ;;  %v693_v31 = vpop.f32.mrb[1].mxu0 }
 0x145   : > { %v4313_v41 = vpop.eup %4312  ;;  %v5200_v47 = vmul.f32 %v4311_v36, %v5099_v34  ;;  %v1520_v48 = vsel %vm1468_vm2, %v5192_v39, 0.0  ;;  %v3897_v19 = vpop.f32.mrb[2].mxu0 }
 0x146   : > { %v1516_v43 = vsel %vm1468_vm2, %v5189_v16, 0.0  ;;  %v5197_v44 = vmul.f32 %v4313_v41, %v5103_v8 }
 0x147   : > { %v1517_v45 = vadd.f32 %v1516_v43, %v1515_v26  ;;  %v1522_v54 = vsel %vm1468_vm2, %v5200_v47, 0.0  ;;  %v696_v43 = vpop.f32.mrb[3].mxu0 }
 0x148   : > { %v1518_v33 = vsel %vm1468_vm2, %v5197_v44, 0.0 }
 0x149   : > { %v1519_v53 = vadd.f32 %v1518_v33, %v1517_v45 }
 0x14a   : > { %v4315_v60 = vpop.eup %4314 }
 0x14b   : > { %v4317_v30 = vpop.eup %4316  ;;  %v1521_v11 = vadd.f32 %v1520_v48, %v1519_v53  ;;  %v5212_v3 = vmul.f32 %v4315_v60, %v5123_v50 }
 0x14c   : > { %v4319_v52 = vpop.eup %4318  ;;  %v5209_v8 = vmul.f32 %v4317_v30, %v5132_v37 }
 0x14d   : > { %v4321_v62 = vpop.eup %4320  ;;  %v1523_v34 = vadd.f32 %v1522_v54, %v1521_v11  ;;  %6331 = vst [vmem:[#allocation2_spill] sm:$0xff] %v5212_v3  ;;  %v5220_v63 = vmul.f32 %v4319_v52, %v5135_v57  ;;  %v1528_v20 = vsel %vm1468_vm2, %v5212_v3, 0.0  ;;  %v3900_v11 = vpop.f32.mrb[4].mxu0 }
 0x14e   : > { %v1524_v7 = vsel %vm1468_vm2, %v5209_v8, 0.0  ;;  %v5217_v10 = vmul.f32 %v4321_v62, %v5138_v58  ;;  %v5231_v58 = vld [vmem:[%s6275_s2] ss:$0 sm:$0xff]  ;;  %v709_v62 = vpop.f32.mrb[5].mxu0 }
 0x14f   : > { %v1525_v12 = vadd.f32 %v1524_v7, %v1523_v34  ;;  %6332 = vst [vmem:[#allocation3_spill] sm:$0xff] %v5220_v63  ;;  %v1530_v50 = vsel %vm1468_vm2, %v5220_v63, 0.0  ;;  %v5234_v28 = vadd.f32 %v3896_v46, %v5231_v58  ;;  %v5237_v22 = vadd.f32 %v5231_v58, %v693_v31  ;;  %v3901_v7 = vpop.f32.mrb[6].mxu0 }
 0x150   : > { %v1526_v59 = vsel %vm1468_vm2, %v5217_v10, 0.0  ;;  %v5241_v41 = vadd.f32 %v3897_v19, %v5231_v58  ;;  %v5245_v33 = vadd.f32 %v5231_v58, %v696_v43  ;;  %v5250_v54 = vadd.f32 %v3900_v11, %v5231_v58 }
 0x151   : > { %v1527_v37 = vadd.f32 %v1526_v59, %v1525_v12  ;;  %v3467_v26 = vmul.f32 -1.442695, %v5234_v28  ;;  %v3465_v45 = vmul.f32 -1.442695, %v5237_v22  ;;  %v5253_v34 = vadd.f32 %v5231_v58, %v709_v62 }
 0x152   : > { %v3468_v60 = vmul.f32 -1.442695, %v5241_v41  ;;  %v3466_v48 = vmul.f32 -1.442695, %v5245_v33  ;;  %v3471_v59 = vmul.f32 -1.442695, %v5250_v54 }
 0x153   : > { %v1529_v21 = vadd.f32 %v1528_v20, %v1527_v37  ;;  %4322 = vpow2.f32 %v3467_v26  ;;  %v5257_v37 = vadd.f32 %v3901_v7, %v5231_v58  ;;  %v712_v20 = vpop.f32.mrb[7].mxu0 }
 0x154   : > { %4324 = vpow2.f32 %v3465_v45  ;;  %v3904_v31 = vpop.f32.mrb[8].mxu0 }
 0x155   : > { %v1531_v17 = vadd.f32 %v1530_v50, %v1529_v21  ;;  %4326 = vpow2.f32 %v3468_v60  ;;  %v3469_v21 = vmul.f32 -1.442695, %v5253_v34  ;;  %v5261_v50 = vadd.f32 %v5231_v58, %v712_v20  ;;  %v725_v43 = vpop.f32.mrb[9].mxu0 }
 0x156   : > { %4328 = vpow2.f32 %v3466_v48  ;;  %v5267_v26 = vadd.f32 %v3904_v31, %v5231_v58  ;;  %v5270_v60 = vadd.f32 %v5231_v58, %v725_v43  ;;  %v3905_v48 = vpop.f32.mrb[10].mxu0 }
 0x157   : > { %v1532_v24 = vrot.slane %v1531_v17, 4  ;;  %4330 = vpow2.f32 %v3471_v59  ;;  %v728_v62 = vpop.f32.mrb[11].mxu0 }
 0x158   : > { %4332 = vpow2.f32 %v3469_v21  ;;  %v3475_v11 = vmul.f32 -1.442695, %v5267_v26  ;;  %v3473_v7 = vmul.f32 -1.442695, %v5270_v60 }
 0x159   : > { %v1533_v57 = vadd.f32 %v1532_v24, %v1531_v17  ;;  %v3472_v17 = vmul.f32 -1.442695, %v5257_v37  ;;  %v3470_v24 = vmul.f32 -1.442695, %v5261_v50 }
 0x15b   : > { %v1534_v23 = vrot.slane %v1533_v57, 2  ;;  %4334 = vpow2.f32 %v3472_v17 }
 0x15c   : > { %4336 = vpow2.f32 %v3470_v24 }
 0x15d   : > { %v1535_v36 = vadd.f32 %v1534_v23, %v1533_v57  ;;  %v4323_v57 = vpop.eup %4322 }
 0x15e   : > { %v4325_v46 = vpop.eup %4324  ;;  %v918_v23 = vadd.f32 1.0, %v4323_v57  ;;  %v3908_v57 = vpop.f32.mrb[12].mxu0 }
 0x15f   : > { %v1536_v53 = vrot.slane %v1535_v36, 1  ;;  %v4327_v19 = vpop.eup %4326  ;;  %v5283_v31 = vadd.f32 %v3908_v57, %v5231_v58 }
 0x160   : > { %v4329_v45 = vpop.eup %4328  ;;  %4338 = vrcp.f32 %v918_v23 }
 0x161   : > { %v1537_v30 = vadd.f32 %v1536_v53, %v1535_v36  ;;  %v916_v36 = vadd.f32 1.0, %v4325_v46  ;;  %v919_v53 = vadd.f32 1.0, %v4327_v19  ;;  %v4331_v21 = vpop.eup %4330  ;;  %v741_v19 = vpop.f32.mrb[13].mxu0 }
 0x162   : > { %v4333_v17 = vpop.eup %4332  ;;  %v922_v24 = vadd.f32 1.0, %v4331_v21 }
 0x163   : > { %v1539_v52 = vmul.f32 0.00390625, %v1537_v30  ;;  %4340 = vrcp.f32 %v916_v36  ;;  %v917_v30 = vadd.f32 1.0, %v4329_v45  ;;  %v920_v23 = vadd.f32 1.0, %v4333_v17 }
 0x164   : > { %4342 = vrcp.f32 %v919_v53  ;;  %v5286_v45 = vadd.f32 %v5231_v58, %v741_v19  ;;  %v3909_v53 = vpop.f32.mrb[14].mxu0 }
 0x165   : > { %v1540_v12 = vpack.c.bf16 %v1539_v52, %v1539_v52  ;;  %v5274_v52 = vadd.f32 %v3905_v48, %v5231_v58  ;;  %4344 = vrcp.f32 %v917_v30  ;;  %v4335_v46 = vpop.eup %4334  ;;  %v3479_v30 = vmul.f32 -1.442695, %v5283_v31 }
 0x166   : > { %4346 = vpow2.f32 %v3475_v11  ;;  %v4337_v36 = vpop.eup %4336  ;;  %v923_v43 = vadd.f32 1.0, %v4335_v46  ;;  %v5290_v11 = vadd.f32 %v3909_v53, %v5231_v58 }
 0x167   : > { %3971 = vmatmul.mubr.msk.bf16.vlgmr.msra.gmra.mrb[32].mxu0 %vm1468_vm2, %v1540_v12  ;;  %v5278_v12 = vadd.f32 %v5231_v58, %v728_v62  ;;  %v3476_v59 = vmul.f32 -1.442695, %v5274_v52  ;;  %4348 = vpow2.f32 %v3473_v7  ;;  %v921_v48 = vadd.f32 1.0, %v4337_v36  ;;  %v744_v62 = vpop.f32.mrb[15].mxu0 }
 0x169   : > { %v3474_v20 = vmul.f32 -1.442695, %v5278_v12  ;;  %4350 = vpow2.f32 %v3476_v59  ;;  %v3477_v59 = vmul.f32 -1.442695, %v5286_v45 }
 0x16a   : > { %v4339_v7 = vpop.eup %4338 }
 0x16b   : > { %4352 = vpow2.f32 %v3474_v20  ;;  %v5294_v20 = vadd.f32 %v5231_v58, %v744_v62  ;;  %v5297_v17 = vmul.f32 %v4339_v7, %v5234_v28  ;;  %v3912_v28 = vpop.f32.mrb[16].mxu0 }
 0x16c   : > { %4354 = vrcp.f32 %v922_v24  ;;  %v3480_v24 = vmul.f32 -1.442695, %v5290_v11  ;;  %v757_v7 = vpop.f32.mrb[17].mxu0 }
 0x16d   : > { %4356 = vrcp.f32 %v920_v23  ;;  %v4341_v21 = vpop.eup %4340  ;;  %6333 = vst [vmem:[#allocation4_spill] sm:$0xff] %v5297_v17  ;;  %v3478_v23 = vmul.f32 -1.442695, %v5294_v20 }
 0x16e   : > { %4358 = vrcp.f32 %v923_v43  ;;  %v4343_v57 = vpop.eup %4342  ;;  %v5301_v46 = vmul.f32 %v4341_v21, %v5237_v22 }
 0x16f   : > { %4360 = vrcp.f32 %v921_v48  ;;  %v4345_v19 = vpop.eup %4344  ;;  %v5305_v36 = vmul.f32 %v4343_v57, %v5241_v41 }
 0x170   : > { %6334 = vst [vmem:[#allocation5_spill] sm:$0xff] %v5301_v46  ;;  %4362 = vpow2.f32 %v3479_v30  ;;  %v4347_v43 = vpop.eup %4346  ;;  %v5308_v53 = vmul.f32 %v4345_v19, %v5245_v33  ;;  %v5313_v30 = vadd.f32 %v3912_v28, %v5231_v58  ;;  %v5318_v33 = vadd.f32 %v5231_v58, %v757_v7 }
 0x171   : > { %6335 = vst [vmem:[#allocation6_spill] sm:$0xff] %v5305_v36  ;;  %4364 = vpow2.f32 %v3477_v59  ;;  %v4349_v48 = vpop.eup %4348  ;;  %v926_v22 = vadd.f32 1.0, %v4347_v43 }
 0x172   : > { %6336 = vst [vmem:[#allocation7_spill] sm:$0xff] %v5308_v53  ;;  %4366 = vpow2.f32 %v3480_v24  ;;  %v924_v59 = vadd.f32 1.0, %v4349_v48  ;;  %v3913_v24 = vpop.f32.mrb[18].mxu0  ;;  %v3483_v62 = vmul.f32 -1.442695, %v5313_v30 }
 0x173   : > { %4368 = vpow2.f32 %v3478_v23  ;;  %v4351_v21 = vpop.eup %4350  ;;  %v5322_v23 = vadd.f32 %v3913_v24, %v5231_v58  ;;  %v760_v43 = vpop.f32.mrb[19].mxu0  ;;  %v3481_v36 = vmul.f32 -1.442695, %v5318_v33 }
 0x174   : > { %4370 = vrcp.f32 %v926_v22  ;;  %v927_v19 = vadd.f32 1.0, %v4351_v21  ;;  %v5326_v48 = vadd.f32 %v5231_v58, %v760_v43 }
 0x175   : > { %v4353_v57 = vpop.eup %4352  ;;  %4372 = vrcp.f32 %v924_v59  ;;  %v3484_v22 = vmul.f32 -1.442695, %v5322_v23 }
 0x176   : > { %v4355_v28 = vpop.eup %4354  ;;  %v925_v17 = vadd.f32 1.0, %v4353_v57  ;;  %4374 = vrcp.f32 %v927_v19  ;;  %v3482_v59 = vmul.f32 -1.442695, %v5326_v48 }
 0x177   : > { %v4357_v7 = vpop.eup %4356  ;;  %v5329_v41 = vmul.f32 %v4355_v28, %v5250_v54  ;;  %v3916_v54 = vpop.f32.mrb[20].mxu0 }
 0x178   : > { %v4359_v21 = vpop.eup %4358  ;;  %v5333_v24 = vmul.f32 %v4357_v7, %v5253_v34  ;;  %4376 = vrcp.f32 %v925_v17  ;;  %v5345_v17 = vadd.f32 %v3916_v54, %v5231_v58  ;;  %v773_v7 = vpop.f32.mrb[21].mxu0 }
 0x179   : > { %6337 = vst [vmem:[#allocation8_spill] sm:$0xff] %v5329_v41  ;;  %v4361_v57 = vpop.eup %4360  ;;  %v5337_v46 = vmul.f32 %v4359_v21, %v5257_v37  ;;  %4378 = vpow2.f32 %v3483_v62 }
 0x17a   : > { %6338 = vst [vmem:[#allocation9_spill] sm:$0xff] %v5333_v24  ;;  %v4363_v43 = vpop.eup %4362  ;;  %v5340_v53 = vmul.f32 %v4361_v57, %v5261_v50  ;;  %4380 = vpow2.f32 %v3481_v36  ;;  %v5350_v50 = vadd.f32 %v5231_v58, %v773_v7  ;;  %v3917_v36 = vpop.f32.mrb[22].mxu0 }
 0x17b   : > { %6339 = vst [vmem:[#allocation10_spill] sm:$0xff] %v5337_v46  ;;  %v4365_v19 = vpop.eup %4364  ;;  %v930_v34 = vadd.f32 1.0, %v4363_v43  ;;  %4382 = vpow2.f32 %v3484_v22  ;;  %v3487_v43 = vmul.f32 -1.442695, %v5345_v17  ;;  %v5354_v22 = vadd.f32 %v3917_v36, %v5231_v58  ;;  %v776_v54 = vpop.f32.mrb[23].mxu0 }
 0x17c   : > { %6340 = vst [vmem:[#allocation11_spill] sm:$0xff] %v5340_v53  ;;  %v4367_v63 = vpop.eup %4366  ;;  %v928_v62 = vadd.f32 1.0, %v4365_v19  ;;  %4384 = vpow2.f32 %v3482_v59  ;;  %v3485_v41 = vmul.f32 -1.442695, %v5350_v50  ;;  %v5358_v19 = vadd.f32 %v5231_v58, %v776_v54 }
 0x17d   : > { %v4369_v21 = vpop.eup %4368  ;;  %4386 = vrcp.f32 %v930_v34  ;;  %v931_v57 = vadd.f32 1.0, %v4367_v63  ;;  %v3488_v7 = vmul.f32 -1.442695, %v5354_v22 }
 0x17e   : > { %4388 = vrcp.f32 %v928_v62  ;;  %v929_v28 = vadd.f32 1.0, %v4369_v21  ;;  %v4371_v59 = vpop.eup %4370  ;;  %v3486_v34 = vmul.f32 -1.442695, %v5358_v19 }
 0x17f   : > { %4390 = vrcp.f32 %v931_v57  ;;  %v4373_v37 = vpop.eup %4372  ;;  %v5362_v63 = vmul.f32 %v4371_v59, %v5267_v26  ;;  %v3920_v57 = vpop.f32.mrb[24].mxu0 }
 0x180   : > { %4392 = vrcp.f32 %v929_v28  ;;  %v4375_v36 = vpop.eup %4374  ;;  %v5366_v62 = vmul.f32 %v4373_v37, %v5270_v60  ;;  %v5375_v26 = vadd.f32 %v3920_v57, %v5231_v58  ;;  %v789_v28 = vpop.f32.mrb[25].mxu0 }
 0x181   : > { %6341 = vst [vmem:[#allocation12_spill] sm:$0xff] %v5362_v63  ;;  %4394 = vpow2.f32 %v3487_v43  ;;  %v5369_v54 = vmul.f32 %v4375_v36, %v5274_v52  ;;  %v5380_v52 = vadd.f32 %v5231_v58, %v789_v28 }
 0x182   : > { %6342 = vst [vmem:[#allocation13_spill] sm:$0xff] %v5366_v62  ;;  %v4377_v21 = vpop.eup %4376  ;;  %4396 = vpow2.f32 %v3485_v41  ;;  %v3921_v41 = vpop.f32.mrb[26].mxu0  ;;  %v3491_v60 = vmul.f32 -1.442695, %v5375_v26 }
 0x183   : > { %6343 = vst [vmem:[#allocation14_spill] sm:$0xff] %v5369_v54  ;;  %v4379_v46 = vpop.eup %4378  ;;  %v5372_v24 = vmul.f32 %v4377_v21, %v5278_v12  ;;  %4398 = vpow2.f32 %v3488_v7  ;;  %v5385_v7 = vadd.f32 %v3921_v41, %v5231_v58  ;;  %v792_v21 = vpop.f32.mrb[27].mxu0  ;;  %v3489_v63 = vmul.f32 -1.442695, %v5380_v52 }
 0x184   : > { %v4381_v59 = vpop.eup %4380  ;;  %v934_v37 = vadd.f32 1.0, %v4379_v46  ;;  %4400 = vpow2.f32 %v3486_v34  ;;  %v5389_v46 = vadd.f32 %v5231_v58, %v792_v21 }
 0x185   : > { %6344 = vst [vmem:[#allocation15_spill] sm:$0xff] %v5372_v24  ;;  %v4383_v43 = vpop.eup %4382  ;;  %v932_v36 = vadd.f32 1.0, %v4381_v59  ;;  %v3492_v41 = vmul.f32 -1.442695, %v5385_v7 }
 0x186   : > { %v4385_v57 = vpop.eup %4384  ;;  %4402 = vrcp.f32 %v934_v37  ;;  %v935_v53 = vadd.f32 1.0, %v4383_v43  ;;  %v3490_v43 = vmul.f32 -1.442695, %v5389_v46 }
 0x187   : > { %v4387_v34 = vpop.eup %4386  ;;  %4404 = vrcp.f32 %v932_v36  ;;  %v933_v28 = vadd.f32 1.0, %v4385_v57  ;;  %v3924_v57 = vpop.f32.mrb[28].mxu0 }
 0x188   : > { %v4389_v54 = vpop.eup %4388  ;;  %v5393_v59 = vmul.f32 %v4387_v34, %v5283_v31  ;;  %4406 = vrcp.f32 %v935_v53  ;;  %v5407_v53 = vadd.f32 %v3924_v57, %v5231_v58  ;;  %v805_v34 = vpop.f32.mrb[29].mxu0 }
 0x189   : > { %v4391_v12 = vpop.eup %4390  ;;  %v5397_v37 = vmul.f32 %v4389_v54, %v5286_v45  ;;  %4408 = vrcp.f32 %v933_v28 }
 0x18a   : > { %6345 = vst [vmem:[#allocation16_spill] sm:$0xff] %v5393_v59  ;;  %v4393_v21 = vpop.eup %4392  ;;  %v5401_v36 = vmul.f32 %v4391_v12, %v5290_v11  ;;  %4410 = vpow2.f32 %v3491_v60  ;;  %v5412_v11 = vadd.f32 %v5231_v58, %v805_v34  ;;  %v3925_v60 = vpop.f32.mrb[30].mxu0  ;;  %v3495_v3 = vmul.f32 -1.442695, %v5407_v53 }
 0x18b   : > { %6346 = vst [vmem:[#allocation17_spill] sm:$0xff] %v5397_v37  ;;  %v4395_v62 = vpop.eup %4394  ;;  %v5404_v31 = vmul.f32 %v4393_v21, %v5294_v20  ;;  %4412 = vpow2.f32 %v3489_v63  ;;  %v808_v63 = vpop.f32.mrb[31].mxu0  ;;  %v5418_v54 = vadd.f32 %v3925_v60, %v5231_v58 }
 0x18c   : > { %6347 = vst [vmem:[#allocation18_spill] sm:$0xff] %v5401_v36  ;;  %v4397_v45 = vpop.eup %4396  ;;  %v938_v28 = vadd.f32 1.0, %v4395_v62  ;;  %4414 = vpow2.f32 %v3492_v41  ;;  %v3493_v41 = vmul.f32 -1.442695, %v5412_v11  ;;  %v5422_v34 = vadd.f32 %v5231_v58, %v808_v63 }
 0x18d   : > { %6348 = vst [vmem:[#allocation19_spill] sm:$0xff] %v5404_v31  ;;  %v4399_v12 = vpop.eup %4398  ;;  %v936_v21 = vadd.f32 1.0, %v4397_v45  ;;  %4416 = vpow2.f32 %v3490_v43  ;;  %v3496_v43 = vmul.f32 -1.442695, %v5418_v54 }
 0x18e   : > { %v4401_v57 = vpop.eup %4400  ;;  %4418 = vrcp.f32 %v938_v28  ;;  %v939_v24 = vadd.f32 1.0, %v4399_v12  ;;  %v3494_v12 = vmul.f32 -1.442695, %v5422_v34 }
 0x18f   : > { %4420 = vrcp.f32 %v936_v21  ;;  %v937_v62 = vadd.f32 1.0, %v4401_v57 }
 0x190   : > { %v4403_v59 = vpop.eup %4402  ;;  %4422 = vrcp.f32 %v939_v24 }
 0x191   : > { %v4405_v45 = vpop.eup %4404  ;;  %v5426_v28 = vmul.f32 %v4403_v59, %v5313_v30  ;;  %4424 = vrcp.f32 %v937_v62 }
 0x192   : > { %v4407_v60 = vpop.eup %4406  ;;  %v5430_v21 = vmul.f32 %v4405_v45, %v5318_v33  ;;  %4426 = vpow2.f32 %v3495_v3 }
 0x193   : > { %6349 = vst [vmem:[#allocation20_spill] sm:$0xff] %v5426_v28  ;;  %v4409_v57 = vpop.eup %4408  ;;  %v5433_v58 = vmul.f32 %v4407_v60, %v5322_v23  ;;  %4428 = vpow2.f32 %v3493_v41 }
 0x194   : > { %6350 = vst [vmem:[#allocation21_spill] sm:$0xff] %v5430_v21  ;;  %v4411_v24 = vpop.eup %4410  ;;  %v5436_v63 = vmul.f32 %v4409_v57, %v5326_v48  ;;  %4430 = vpow2.f32 %v3496_v43 }
 0x195   : > { %6351 = vst [vmem:[#allocation22_spill] sm:$0xff] %v5433_v58  ;;  %v4413_v30 = vpop.eup %4412  ;;  %v942_v62 = vadd.f32 1.0, %v4411_v24  ;;  %4432 = vpow2.f32 %v3494_v12 }
 0x196   : > { %6352 = vst [vmem:[#allocation23_spill] sm:$0xff] %v5436_v63  ;;  %v4415_v20 = vpop.eup %4414  ;;  %v940_v33 = vadd.f32 1.0, %v4413_v30 }
 0x197   : > { %v4417_v45 = vpop.eup %4416  ;;  %4434 = vrcp.f32 %v942_v62  ;;  %v943_v23 = vadd.f32 1.0, %v4415_v20 }
 0x198   : > { %v4419_v41 = vpop.eup %4418  ;;  %4436 = vrcp.f32 %v940_v33  ;;  %v941_v60 = vadd.f32 1.0, %v4417_v45 }
 0x199   : > { %v4421_v48 = vpop.eup %4420  ;;  %v5443_v43 = vmul.f32 %v4419_v41, %v5345_v17  ;;  %4438 = vrcp.f32 %v943_v23 }
 0x19a   : > { %v4423_v57 = vpop.eup %4422  ;;  %v5446_v24 = vmul.f32 %v4421_v48, %v5350_v50  ;;  %4440 = vrcp.f32 %v941_v60 }
 0x19b   : > { %6353 = vst [vmem:[#allocation24_spill] sm:$0xff] %v5443_v43  ;;  %v4425_v12 = vpop.eup %4424  ;;  %v5449_v59 = vmul.f32 %v4423_v57, %v5354_v22 }
 0x19c   : > { %6354 = vst [vmem:[#allocation25_spill] sm:$0xff] %v5446_v24  ;;  %v4427_v30 = vpop.eup %4426  ;;  %v5452_v20 = vmul.f32 %v4425_v12, %v5358_v19 }
 0x19d   : > { %6355 = vst [vmem:[#allocation26_spill] sm:$0xff] %v5449_v59  ;;  %v4429_v62 = vpop.eup %4428  ;;  %v946_v17 = vadd.f32 1.0, %v4427_v30 }
 0x19e   : > { %6356 = vst [vmem:[#allocation27_spill] sm:$0xff] %v5452_v20  ;;  %v4431_v45 = vpop.eup %4430  ;;  %v944_v50 = vadd.f32 1.0, %v4429_v62 }
 0x19f   : > { %v4433_v41 = vpop.eup %4432  ;;  %4442 = vrcp.f32 %v946_v17  ;;  %v947_v60 = vadd.f32 1.0, %v4431_v45 }
 0x1a0   : > { %4444 = vrcp.f32 %v944_v50  ;;  %v945_v22 = vadd.f32 1.0, %v4433_v41 }
 0x1a1   : > { %v4435_v48 = vpop.eup %4434  ;;  %4446 = vrcp.f32 %v947_v60 }
 0x1a2   : > { %v4437_v57 = vpop.eup %4436  ;;  %v5459_v19 = vmul.f32 %v4435_v48, %v5375_v26  ;;  %4448 = vrcp.f32 %v945_v22 }
 0x1a3   : > { %v4439_v12 = vpop.eup %4438  ;;  %v5462_v30 = vmul.f32 %v4437_v57, %v5380_v52 }
 0x1a4   : > { %6357 = vst [vmem:[#allocation28_spill] sm:$0xff] %v5459_v19  ;;  %v4441_v33 = vpop.eup %4440  ;;  %v5465_v23 = vmul.f32 %v4439_v12, %v5385_v7 }
 0x1a5   : > { %6358 = vst [vmem:[#allocation29_spill] sm:$0xff] %v5462_v30  ;;  %v5468_v62 = vmul.f32 %v4441_v33, %v5389_v46 }
 0x1a6   : > { %6359 = vst [vmem:[#allocation30_spill] sm:$0xff] %v5465_v23 }
 0x1a7   : > { %6360 = vst [vmem:[#allocation31_spill] sm:$0xff] %v5468_v62 }
 0x1a9   : > { %v4443_v26 = vpop.eup %4442 }
 0x1aa   : > { %v4445_v50 = vpop.eup %4444  ;;  %v5475_v41 = vmul.f32 %v4443_v26, %v5407_v53  ;;  %v1545_v53 = vld [vmem:[%s6279_s6] sm:$0x1] }
 0x1ab   : > { %v4447_v52 = vpop.eup %4446  ;;  %v5478_v60 = vmul.f32 %v4445_v50, %v5412_v11 }
 0x1ac   : > { %6361 = vst [vmem:[#allocation32_spill] sm:$0xff] %v5475_v41  ;;  %v4449_v7 = vpop.eup %4448  ;;  %v5481_v22 = vmul.f32 %v4447_v52, %v5418_v54 }
 0x1ad   : > { %6362 = vst [vmem:[#allocation33_spill] sm:$0xff] %v5478_v60  ;;  %v5484_v46 = vmul.f32 %v4449_v7, %v5422_v34  ;;  %v4184_v34 = vld [vmem:[%s6282_s9] sm:$0xff]   ;;  %v4185_v7 = vld [vmem:[%s6282_s9 + $0x8] sm:$0xff]  }
 0x1ae   : > { %6363 = vst [vmem:[#allocation34_spill] sm:$0xff] %v5481_v22  ;;  %3982 = vmatprep.subr.bf16.mxu1 %v4184_v34 }
 0x1af   : > { %6364 = vst [vmem:[#allocation35_spill] sm:$0xff] %v5484_v46 }
 0x23a   : > { %v1595_v57 = vpop.f32.mrb[32].mxu0 }
 0x23b   : > { %v1596_v11 = vadd.f32 %v1595_v57, %v1545_v53  ;;  %v3972_v12 = vpop.f32.mrb[33].mxu0  ;;  %v4186_v53 = vld [vmem:[%s6284_s11] sm:$0xff]  }
 0x23c   : > { %v1598_v26 = vpop.f32.mrb[34].mxu0  ;;  %v1607_v57 = vld [vmem:[%s6281_s8] sm:$0x1] }
 0x23d   : > { %v1601_v50 = vmax.f32 %v1596_v11, 0.0  ;;  %v3973_v54 = vpop.f32.mrb[35].mxu0 }
 0x23f   : > { %v1602_v52 = vpack.c.bf16 %v1601_v50, %v1601_v50 }
 0x241   : > { %3979 = vmatmul.mubr.msk.bf16.vlgmr.msra.gmra.mrb[32].mxu1 %vm1468_vm2, %v1602_v52 }
 0x242   : > { %3983 = vmatpush3.bf16.msra.mxu1 %v4184_v34 }
 0x243   : > { %3984 = vmatprep.subr.bf16.mxu1 %v4185_v7 }
 0x246   : > { %3985 = vmatpush3.bf16.msra.mxu1 %v4185_v7  ;;  %v1670_v7 = vlaneseq }
 0x247   : > { %4018 = vmatprep.subr.bf16.mxu1 %v4186_v53 }
 0x248   : > { %v1671_v48 = vshrl.u32 %v1670_v7, 7 }
 0x24a   : > { %v1672_v3 = vsub.s32 0, %v1671_v48 }
 0x314   : > { %v1657_v11 = vpop.f32.mrb[32].mxu1 }
 0x315   : > { %v1658_v12 = vadd.f32 %v1657_v11, %v1607_v57  ;;  %v3980_v26 = vpop.f32.mrb[33].mxu1 }
 0x316   : > { %v1660_v50 = vpop.f32.mrb[34].mxu1 }
 0x317   : > { %v3556_v54 = vmul.f32 -1.442695, %v1658_v12  ;;  %v3981_v52 = vpop.f32.mrb[35].mxu1 }
 0x319   : > { %4450 = vpow2.f32 %v3556_v54 }
 0x323   : > { %v4451_v34 = vpop.eup %4450 }
 0x324   : > { %v1666_v33 = vadd.f32 1.0, %v4451_v34 }
 0x326   : > { %4452 = vrcp.f32 %v1666_v33 }
 0x330   : > { %v4453_v17 = vpop.eup %4452 }
 0x331   : > { %v1669_v45 = vadd.f32 1.0, %v4453_v17 }
 0x333   : > { %v5506_v41 = vrot.slane %v1669_v45, %v1672_v3 }
 0x335   : > { %v5510_v22 = vmul.f32 %v5506_v41, %v5000_v4  ;;  %v5514_v57 = vmul.f32 %v5506_v41, %v5006_v61  ;;  %v5518_v11 = vmul.f32 %v5506_v41, %v4996_v0  ;;  %v5522_v33 = vmul.f32 %v5506_v41, %v5009_v15  ;;  %v4187_v0 = vld [vmem:[%s6284_s11 + $0x8] sm:$0xff]  }
 0x336   : > { %v5526_v3 = vmul.f32 %v5506_v41, %v5035_v42  ;;  %v5530_v4 = vmul.f32 %v5506_v41, %v5043_v49  ;;  %v5546_v42 = vmul.f32 %v5506_v41, %v5027_v38  ;;  %v5550_v49 = vmul.f32 %v5506_v41, %v5047_v55 }
 0x337   : > { %v1706_v61 = vpack.c.bf16 %v5514_v57, %v5510_v22  ;;  %v1707_v17 = vpack.c.bf16 %v5522_v33, %v5518_v11  ;;  %v5554_v45 = vmul.f32 %v5506_v41, %v5076_v29  ;;  %v5558_v48 = vmul.f32 %v5506_v41, %v5084_v56 }
 0x338   : > { %v1708_v15 = vpack.c.bf16 %v5530_v4, %v5526_v3  ;;  %v5568_v55 = vmul.f32 %v5506_v41, %v5071_v25  ;;  %v5572_v29 = vmul.f32 %v5506_v41, %v5090_v9  ;;  %v5576_v56 = vmul.f32 %v5506_v41, %v5112_v5 }
 0x339   : > { %3986 = vmatprep.mubr.msk.bf16.mxu1 %vm1468_vm2, %v1706_v61  ;;  %v1710_v38 = vpack.c.bf16 %v5558_v48, %v5554_v45  ;;  %v5580_v12 = vmul.f32 %v5506_v41, %v5120_v32  ;;  %v5590_v25 = vmul.f32 %v5506_v41, %v5106_v13  ;;  %v5594_v9 = vmul.f32 %v5506_v41, %v5126_v40 }
 0x33a   : > { %3987 = vmatmul.mubr.msk.bf16.vlgmr.msra.gmra.mrb[36].mxu1 %vm1468_vm2, %v1707_v17  ;;  %v1711_v26 = vpack.c.bf16 %v5572_v29, %v5568_v55  ;;  %v5598_v5 = vmul.f32 %v5506_v41, %v5146_v18  ;;  %v5602_v32 = vmul.f32 %v5506_v41, %v5154_v27  ;;  %v5612_v13 = vmul.f32 %v5506_v41, %v5149_v2 }
 0x33b   : > { %3990 = vmatprep.mubr.msk.bf16.mxu1 %vm1468_vm2, %v1708_v15  ;;  %4019 = vmatpush3.bf16.msra.mxu1 %v4186_v53  ;;  %v1709_v53 = vpack.c.bf16 %v5550_v49, %v5546_v42  ;;  %v1712_v50 = vpack.c.bf16 %v5580_v12, %v5576_v56  ;;  %v1713_v54 = vpack.c.bf16 %v5594_v9, %v5590_v25 }
 0x33c   : > { %4020 = vmatprep.subr.bf16.mxu1 %v4187_v0  ;;  %v1714_v52 = vpack.c.bf16 %v5602_v32, %v5598_v5  ;;  %v5616_v40 = vmul.f32 %v5506_v41, %v5157_v35  ;;  %v5620_v18 = vmul.f32 %v5506_v41, %v5169_v51  ;;  %v5624_v27 = vmul.f32 %v5506_v41, %v5177_v6 }
 0x33d   : > { %v5634_v2 = vmul.f32 %v5506_v41, %v5172_v1  ;;  %v5638_v35 = vmul.f32 %v5506_v41, %v5180_v14  ;;  %v5642_v51 = vmul.f32 %v5506_v41, %v5189_v16  ;;  %v5646_v6 = vmul.f32 %v5506_v41, %v5197_v44 }
 0x33e   : > { %v1715_v34 = vpack.c.bf16 %v5616_v40, %v5612_v13  ;;  %v1716_v7 = vpack.c.bf16 %v5624_v27, %v5620_v18  ;;  %v5656_v1 = vmul.f32 %v5506_v41, %v5192_v39  ;;  %v5660_v14 = vmul.f32 %v5506_v41, %v5200_v47  ;;  %v6368_v39 = vld [vmem:[#allocation2_spill] sm:$0xff] }
 0x33f   : > { %4021 = vmatpush3.bf16.msra.mxu1 %v4187_v0  ;;  %6365 = vst [vmem:[#allocation36_spill] sm:$0xff] %v5646_v6  ;;  %v1717_v61 = vpack.c.bf16 %v5638_v35, %v5634_v2  ;;  %v1718_v17 = vpack.c.bf16 %v5646_v6, %v5642_v51  ;;  %v5664_v16 = vmul.f32 %v5506_v41, %v5209_v8  ;;  %v6370_v8 = vld [vmem:[#allocation3_spill] sm:$0xff] }
 0x340   : > { %v5668_v44 = vmul.f32 %v5506_v41, %v5217_v10  ;;  %v1719_v0 = vpack.c.bf16 %v5660_v14, %v5656_v1  ;;  %v5678_v47 = vmul.f32 %v5506_v41, %v6368_v39 }
 0x341   : > { %6366 = vst [vmem:[#allocation37_spill] sm:$0xff] %v5664_v16 }
 0x342   : > { %3991 = vmatmul.mubr.msk.bf16.gmra.mrb[40].mxu1 %vm1468_vm2, %v1709_v53  ;;  %6367 = vst [vmem:[#allocation38_spill] sm:$0xff] %v5668_v44  ;;  %v1720_v15 = vpack.c.bf16 %v5668_v44, %v5664_v16  ;;  %6369 = vst [vmem:[#allocation2_spill] sm:$0xff] %v5678_v47  ;;  %v5682_v53 = vmul.f32 %v5506_v41, %v6370_v8  ;;  %v5696_v41 = vld [vmem:[%s6283_s10] ss:$0 sm:$0xff] }
 0x343   : > { %3994 = vmatprep.mubr.msk.bf16.mxu1 %vm1468_vm2, %v1710_v38  ;;  %v4188_v38 = vld [vmem:[%s6284_s11 + $0x10] sm:$0xff]  }
 0x344   : > { %6371 = vst [vmem:[#allocation3_spill] sm:$0xff] %v5682_v53  ;;  %v1721_v10 = vpack.c.bf16 %v5682_v53, %v5678_v47  ;;  %4022 = vmatprep.subr.bf16.mxu1 %v4188_v38 }
 0x345   : > { %4023 = vmatpush3.bf16.msra.mxu1 %v4188_v38 }
 0x34a   : > { %3995 = vmatmul.mubr.msk.bf16.gmra.mrb[44].mxu1 %vm1468_vm2, %v1711_v26  ;;  %v4189_v26 = vld [vmem:[%s6284_s11 + $0x18] sm:$0xff]  }
 0x34b   : > { %3998 = vmatprep.mubr.msk.bf16.mxu1 %vm1468_vm2, %v1712_v50  ;;  %4024 = vmatprep.subr.bf16.mxu1 %v4189_v26 }
 0x34c   : > { %4025 = vmatpush3.bf16.msra.mxu1 %v4189_v26 }
 0x352   : > { %3999 = vmatmul.mubr.msk.bf16.gmra.mrb[48].mxu1 %vm1468_vm2, %v1713_v54 }
 0x353   : > { %4002 = vmatprep.mubr.msk.bf16.mxu1 %vm1468_vm2, %v1714_v52 }
 0x35a   : > { %4003 = vmatmul.mubr.msk.bf16.gmra.mrb[52].mxu1 %vm1468_vm2, %v1715_v34 }
 0x35b   : > { %4006 = vmatprep.mubr.msk.bf16.mxu1 %vm1468_vm2, %v1716_v7 }
 0x362   : > { %4007 = vmatmul.mubr.msk.bf16.gmra.mrb[56].mxu1 %vm1468_vm2, %v1717_v61 }
 0x363   : > { %4010 = vmatprep.mubr.msk.bf16.mxu1 %vm1468_vm2, %v1718_v17 }
 0x36a   : > { %4011 = vmatmul.mubr.msk.bf16.gmra.mrb[60].mxu1 %vm1468_vm2, %v1719_v0 }
 0x36b   : > { %4014 = vmatprep.mubr.msk.bf16.mxu1 %vm1468_vm2, %v1720_v15 }
 0x372   : > { %4015 = vmatmul.mubr.msk.bf16.gmra.mrb[64].mxu1 %vm1468_vm2, %v1721_v10 }
 0x40d   : > { %v3988_v50 = vpop.f32.mrb[36].mxu1 }
 0x40e   : > { %v5699_v54 = vadd.f32 %v3988_v50, %v5696_v41  ;;  %v1827_v52 = vpop.f32.mrb[37].mxu1 }
 0x40f   : > { %v5702_v34 = vadd.f32 %v5696_v41, %v1827_v52  ;;  %v3989_v7 = vpop.f32.mrb[38].mxu1 }
 0x410   : > { %v3578_v61 = vmul.f32 -1.442695, %v5699_v54  ;;  %v5706_v17 = vadd.f32 %v3989_v7, %v5696_v41  ;;  %v1830_v0 = vpop.f32.mrb[39].mxu1 }
 0x411   : > { %v3576_v15 = vmul.f32 -1.442695, %v5702_v34  ;;  %v5710_v39 = vadd.f32 %v5696_v41, %v1830_v0 }
 0x412   : > { %4454 = vpow2.f32 %v3578_v61  ;;  %v3579_v8 = vmul.f32 -1.442695, %v5706_v17 }
 0x413   : > { %4456 = vpow2.f32 %v3576_v15  ;;  %v3577_v10 = vmul.f32 -1.442695, %v5710_v39 }
 0x414   : > { %4458 = vpow2.f32 %v3579_v8 }
 0x415   : > { %4460 = vpow2.f32 %v3577_v10  ;;  %v3992_v38 = vpop.f32.mrb[40].mxu1 }
 0x416   : > { %v5715_v26 = vadd.f32 %v3992_v38, %v5696_v41  ;;  %v1843_v50 = vpop.f32.mrb[41].mxu1 }
 0x417   : > { %v5718_v52 = vadd.f32 %v5696_v41, %v1843_v50  ;;  %v3993_v7 = vpop.f32.mrb[42].mxu1 }
 0x418   : > { %v3582_v0 = vmul.f32 -1.442695, %v5715_v26  ;;  %v5722_v61 = vadd.f32 %v3993_v7, %v5696_v41  ;;  %v1846_v60 = vpop.f32.mrb[43].mxu1 }
 0x419   : > { %v3580_v15 = vmul.f32 -1.442695, %v5718_v52  ;;  %v5726_v8 = vadd.f32 %v5696_v41, %v1846_v60 }
 0x41a   : > { %4462 = vpow2.f32 %v3582_v0  ;;  %v3583_v10 = vmul.f32 -1.442695, %v5722_v61 }
 0x41b   : > { %4464 = vpow2.f32 %v3580_v15  ;;  %v3581_v38 = vmul.f32 -1.442695, %v5726_v8 }
 0x41c   : > { %v4455_v50 = vpop.eup %4454  ;;  %4466 = vpow2.f32 %v3583_v10 }
 0x41d   : > { %v4457_v46 = vpop.eup %4456  ;;  %v2052_v19 = vadd.f32 1.0, %v4455_v50  ;;  %4468 = vpow2.f32 %v3581_v38  ;;  %v3996_v23 = vpop.f32.mrb[44].mxu1 }
 0x41e   : > { %v4459_v7 = vpop.eup %4458  ;;  %v2050_v30 = vadd.f32 1.0, %v4457_v46  ;;  %v5731_v62 = vadd.f32 %v3996_v23, %v5696_v41  ;;  %v1859_v43 = vpop.f32.mrb[45].mxu1 }
 0x41f   : > { %v4461_v60 = vpop.eup %4460  ;;  %4470 = vrcp.f32 %v2052_v19  ;;  %v2053_v0 = vadd.f32 1.0, %v4459_v7  ;;  %v5734_v59 = vadd.f32 %v5696_v41, %v1859_v43  ;;  %v3997_v15 = vpop.f32.mrb[46].mxu1 }
 0x420   : > { %4472 = vrcp.f32 %v2050_v30  ;;  %v2051_v24 = vadd.f32 1.0, %v4461_v60  ;;  %v3586_v10 = vmul.f32 -1.442695, %v5731_v62  ;;  %v5738_v38 = vadd.f32 %v3997_v15, %v5696_v41  ;;  %v1862_v50 = vpop.f32.mrb[47].mxu1 }
 0x421   : > { %4474 = vrcp.f32 %v2053_v0  ;;  %v3584_v23 = vmul.f32 -1.442695, %v5734_v59  ;;  %v5742_v46 = vadd.f32 %v5696_v41, %v1862_v50 }
 0x422   : > { %4476 = vrcp.f32 %v2051_v24  ;;  %v3587_v19 = vmul.f32 -1.442695, %v5738_v38 }
 0x423   : > { %4478 = vpow2.f32 %v3586_v10  ;;  %v3585_v43 = vmul.f32 -1.442695, %v5742_v46 }
 0x424   : > { %v4463_v30 = vpop.eup %4462  ;;  %4480 = vpow2.f32 %v3584_v23 }
 0x425   : > { %v4465_v7 = vpop.eup %4464  ;;  %v2056_v60 = vadd.f32 1.0, %v4463_v30  ;;  %4482 = vpow2.f32 %v3587_v19  ;;  %v4000_v15 = vpop.f32.mrb[48].mxu1 }
 0x426   : > { %v4467_v20 = vpop.eup %4466  ;;  %v2054_v28 = vadd.f32 1.0, %v4465_v7  ;;  %4484 = vpow2.f32 %v3585_v43  ;;  %v5747_v0 = vadd.f32 %v4000_v15, %v5696_v41  ;;  %v1875_v50 = vpop.f32.mrb[49].mxu1 }
 0x427   : > { %v4469_v58 = vpop.eup %4468  ;;  %4486 = vrcp.f32 %v2056_v60  ;;  %v2057_v24 = vadd.f32 1.0, %v4467_v20  ;;  %v5750_v10 = vadd.f32 %v5696_v41, %v1875_v50  ;;  %v4001_v21 = vpop.f32.mrb[50].mxu1 }
 0x428   : > { %4488 = vrcp.f32 %v2054_v28  ;;  %v2055_v23 = vadd.f32 1.0, %v4469_v58  ;;  %v3590_v30 = vmul.f32 -1.442695, %v5747_v0  ;;  %v5754_v19 = vadd.f32 %v4001_v21, %v5696_v41  ;;  %v1878_v7 = vpop.f32.mrb[51].mxu1 }
 0x429   : > { %v4471_v43 = vpop.eup %4470  ;;  %4490 = vrcp.f32 %v2057_v24  ;;  %v3588_v15 = vmul.f32 -1.442695, %v5750_v10  ;;  %v5758_v63 = vadd.f32 %v5696_v41, %v1878_v7 }
 0x42a   : > { %v4473_v20 = vpop.eup %4472  ;;  %4492 = vrcp.f32 %v2055_v23  ;;  %v3591_v60 = vmul.f32 -1.442695, %v5754_v19  ;;  %v2148_v21 = vmul.f32 %v4471_v43, %v5699_v54 }
 0x42b   : > { %v4475_v50 = vpop.eup %4474  ;;  %4494 = vpow2.f32 %v3590_v30  ;;  %v3589_v28 = vmul.f32 -1.442695, %v5758_v63  ;;  %v2146_v37 = vmul.f32 %v4473_v20, %v5702_v34 }
 0x42c   : > { %v4477_v58 = vpop.eup %4476  ;;  %v2149_v36 = vmul.f32 %v4475_v50, %v5706_v17  ;;  %4496 = vpow2.f32 %v3588_v15 }
 0x42d   : > { %v4479_v24 = vpop.eup %4478  ;;  %v2147_v7 = vmul.f32 %v4477_v58, %v5710_v39  ;;  %4498 = vpow2.f32 %v3591_v60  ;;  %v4004_v31 = vpop.f32.mrb[52].mxu1 }
 0x42e   : > { %v4481_v23 = vpop.eup %4480  ;;  %v2179_v44 = vpack.c.bf16 %v2149_v36, %v2148_v21  ;;  %v2060_v16 = vadd.f32 1.0, %v4479_v24  ;;  %4500 = vpow2.f32 %v3589_v28  ;;  %v5767_v30 = vadd.f32 %v4004_v31, %v5696_v41  ;;  %v1891_v53 = vpop.f32.mrb[53].mxu1 }
 0x42f   : > { %v4483_v47 = vpop.eup %4482  ;;  %v2178_v54 = vpack.c.bf16 %v2147_v7, %v2146_v37  ;;  %v2058_v43 = vadd.f32 1.0, %v4481_v23  ;;  %v5770_v17 = vadd.f32 %v5696_v41, %v1891_v53  ;;  %v4005_v15 = vpop.f32.mrb[54].mxu1 }
 0x430   : > { %v4485_v34 = vpop.eup %4484  ;;  %4502 = vrcp.f32 %v2060_v16  ;;  %v2061_v39 = vadd.f32 1.0, %v4483_v47  ;;  %v3594_v20 = vmul.f32 -1.442695, %v5767_v30  ;;  %v5774_v36 = vadd.f32 %v4005_v15, %v5696_v41  ;;  %v1894_v60 = vpop.f32.mrb[55].mxu1 }
 0x431   : > { %v4487_v50 = vpop.eup %4486  ;;  %4504 = vrcp.f32 %v2058_v43  ;;  %v2059_v31 = vadd.f32 1.0, %v4485_v34  ;;  %v3592_v28 = vmul.f32 -1.442695, %v5770_v17  ;;  %v5778_v37 = vadd.f32 %v5696_v41, %v1894_v60  ;;  %4026 = vmatprep.mubr.msk.bf16.mxu1 %vm610_vm0, %v2178_v54 }
 0x432   : > { %v4489_v53 = vpop.eup %4488  ;;  %4506 = vrcp.f32 %v2061_v39  ;;  %v3595_v16 = vmul.f32 -1.442695, %v5774_v36  ;;  %4027 = vmatmul.mubr.msk.bf16.vlgmr.msra.gmra.mrb[68].mxu1 %vm610_vm0, %v2179_v44  ;;  %v2152_v24 = vmul.f32 %v4487_v50, %v5715_v26 }
 0x433   : > { %v4491_v47 = vpop.eup %4490  ;;  %4508 = vrcp.f32 %v2059_v31  ;;  %v3593_v58 = vmul.f32 -1.442695, %v5778_v37  ;;  %v2150_v43 = vmul.f32 %v4489_v53, %v5718_v52 }
 0x434   : > { %v4493_v21 = vpop.eup %4492  ;;  %v2153_v7 = vmul.f32 %v4491_v47, %v5722_v61  ;;  %4510 = vpow2.f32 %v3594_v20 }
 0x435   : > { %v4495_v23 = vpop.eup %4494  ;;  %v2151_v54 = vmul.f32 %v4493_v21, %v5726_v8  ;;  %4512 = vpow2.f32 %v3592_v28  ;;  %v4008_v15 = vpop.f32.mrb[56].mxu1 }
 0x436   : > { %v4497_v34 = vpop.eup %4496  ;;  %v2181_v39 = vpack.c.bf16 %v2153_v7, %v2152_v24  ;;  %v2064_v44 = vadd.f32 1.0, %v4495_v23  ;;  %4514 = vpow2.f32 %v3595_v16  ;;  %v5789_v60 = vadd.f32 %v4008_v15, %v5696_v41  ;;  %v1907_v31 = vpop.f32.mrb[57].mxu1 }
 0x437   : > { %v4499_v6 = vpop.eup %4498  ;;  %v2180_v26 = vpack.c.bf16 %v2151_v54, %v2150_v43  ;;  %v2062_v50 = vadd.f32 1.0, %v4497_v34  ;;  %4516 = vpow2.f32 %v3593_v58  ;;  %v5792_v61 = vadd.f32 %v5696_v41, %v1907_v31  ;;  %v4009_v52 = vpop.f32.mrb[58].mxu1 }
 0x438   : > { %v4501_v20 = vpop.eup %4500  ;;  %4518 = vrcp.f32 %v2064_v44  ;;  %v2065_v8 = vadd.f32 1.0, %v4499_v6  ;;  %v3598_v28 = vmul.f32 -1.442695, %v5789_v60  ;;  %v5796_v53 = vadd.f32 %v4009_v52, %v5696_v41  ;;  %v1910_v16 = vpop.f32.mrb[59].mxu1 }
 0x439   : > { %4520 = vrcp.f32 %v2062_v50  ;;  %v2063_v47 = vadd.f32 1.0, %v4501_v20  ;;  %v3596_v21 = vmul.f32 -1.442695, %v5792_v61  ;;  %v5800_v24 = vadd.f32 %v5696_v41, %v1910_v16  ;;  %4030 = vmatprep.mubr.msk.bf16.mxu1 %vm610_vm0, %v2180_v26 }
 0x43a   : > { %v4503_v58 = vpop.eup %4502  ;;  %4522 = vrcp.f32 %v2065_v8  ;;  %v3599_v7 = vmul.f32 -1.442695, %v5796_v53  ;;  %4031 = vmatmul.mubr.msk.bf16.gmra.mrb[72].mxu1 %vm610_vm0, %v2181_v39 }
 0x43b   : > { %v4505_v6 = vpop.eup %4504  ;;  %4524 = vrcp.f32 %v2063_v47  ;;  %v3597_v23 = vmul.f32 -1.442695, %v5800_v24  ;;  %v2156_v15 = vmul.f32 %v4503_v58, %v5731_v62 }
 0x43c   : > { %v4507_v43 = vpop.eup %4506  ;;  %4526 = vpow2.f32 %v3598_v28  ;;  %v2154_v26 = vmul.f32 %v4505_v6, %v5734_v59 }
 0x43d   : > { %v4509_v54 = vpop.eup %4508  ;;  %v2157_v34 = vmul.f32 %v4507_v43, %v5738_v38  ;;  %4528 = vpow2.f32 %v3596_v21  ;;  %v4012_v44 = vpop.f32.mrb[60].mxu1 }
 0x43e   : > { %v4511_v31 = vpop.eup %4510  ;;  %v2155_v50 = vmul.f32 %v4509_v54, %v5742_v46  ;;  %4530 = vpow2.f32 %v3599_v7  ;;  %v5811_v39 = vadd.f32 %v4012_v44, %v5696_v41  ;;  %v1923_v52 = vpop.f32.mrb[61].mxu1 }
 0x43f   : > { %v4513_v20 = vpop.eup %4512  ;;  %v2183_v8 = vpack.c.bf16 %v2157_v34, %v2156_v15  ;;  %v2068_v28 = vadd.f32 1.0, %v4511_v31  ;;  %4532 = vpow2.f32 %v3597_v23  ;;  %v5814_v62 = vadd.f32 %v5696_v41, %v1923_v52  ;;  %v4013_v38 = vpop.f32.mrb[62].mxu1 }
 0x440   : > { %v4515_v16 = vpop.eup %4514  ;;  %v2182_v47 = vpack.c.bf16 %v2155_v50, %v2154_v26  ;;  %v2066_v21 = vadd.f32 1.0, %v4513_v20  ;;  %v5817_v59 = vadd.f32 %v4013_v38, %v5696_v41  ;;  %v1926_v46 = vpop.f32.mrb[63].mxu1  ;;  %v3602_v6 = vmul.f32 -1.442695, %v5811_v39 }
 0x441   : > { %v4517_v58 = vpop.eup %4516  ;;  %4534 = vrcp.f32 %v2068_v28  ;;  %v2069_v7 = vadd.f32 1.0, %v4515_v16  ;;  %v5821_v43 = vadd.f32 %v5696_v41, %v1926_v46  ;;  %v3600_v15 = vmul.f32 -1.442695, %v5814_v62 }
 0x442   : > { %v4519_v23 = vpop.eup %4518  ;;  %4536 = vrcp.f32 %v2066_v21  ;;  %v2067_v54 = vadd.f32 1.0, %v4517_v58  ;;  %4034 = vmatprep.mubr.msk.bf16.mxu1 %vm610_vm0, %v2182_v47  ;;  %v3603_v44 = vmul.f32 -1.442695, %v5817_v59 }
 0x443   : > { %v4521_v34 = vpop.eup %4520  ;;  %4538 = vrcp.f32 %v2069_v7  ;;  %4035 = vmatmul.mubr.msk.bf16.gmra.mrb[76].mxu1 %vm610_vm0, %v2183_v8  ;;  %v3601_v26 = vmul.f32 -1.442695, %v5821_v43  ;;  %v2160_v52 = vmul.f32 %v4519_v23, %v5747_v0 }
 0x444   : > { %v4523_v31 = vpop.eup %4522  ;;  %4540 = vrcp.f32 %v2067_v54  ;;  %v2158_v16 = vmul.f32 %v4521_v34, %v5750_v10 }
 0x445   : > { %v4525_v50 = vpop.eup %4524  ;;  %v2161_v20 = vmul.f32 %v4523_v31, %v5754_v19  ;;  %4542 = vpow2.f32 %v3602_v6  ;;  %v4016_v28 = vpop.f32.mrb[64].mxu1 }
 0x446   : > { %v4527_v38 = vpop.eup %4526  ;;  %v2159_v47 = vmul.f32 %v4525_v50, %v5758_v63  ;;  %4544 = vpow2.f32 %v3600_v15  ;;  %v5833_v21 = vadd.f32 %v4016_v28, %v5696_v41  ;;  %v1939_v8 = vpop.f32.mrb[65].mxu1 }
 0x447   : > { %v4529_v46 = vpop.eup %4528  ;;  %v2185_v58 = vpack.c.bf16 %v2161_v20, %v2160_v52  ;;  %v2072_v7 = vadd.f32 1.0, %v4527_v38  ;;  %4546 = vpow2.f32 %v3603_v44  ;;  %v5836_v0 = vadd.f32 %v5696_v41, %v1939_v8  ;;  %v4017_v19 = vpop.f32.mrb[66].mxu1 }
 0x448   : > { %v4531_v6 = vpop.eup %4530  ;;  %v2184_v23 = vpack.c.bf16 %v2159_v47, %v2158_v16  ;;  %v2070_v54 = vadd.f32 1.0, %v4529_v46  ;;  %4548 = vpow2.f32 %v3601_v26  ;;  %v1942_v10 = vpop.f32.mrb[67].mxu1  ;;  %v3606_v15 = vmul.f32 -1.442695, %v5833_v21 }
 0x449   : > { %v4533_v34 = vpop.eup %4532  ;;  %4550 = vrcp.f32 %v2072_v7  ;;  %v2073_v63 = vadd.f32 1.0, %v4531_v6  ;;  %v5840_v31 = vadd.f32 %v4017_v19, %v5696_v41  ;;  %v3604_v44 = vmul.f32 -1.442695, %v5836_v0 }
 0x44a   : > { %4552 = vrcp.f32 %v2070_v54  ;;  %v2071_v50 = vadd.f32 1.0, %v4533_v34  ;;  %v5844_v52 = vadd.f32 %v5696_v41, %v1942_v10  ;;  %4038 = vmatprep.mubr.msk.bf16.mxu1 %vm610_vm0, %v2184_v23 }
 0x44b   : > { %v4535_v20 = vpop.eup %4534  ;;  %4554 = vrcp.f32 %v2073_v63  ;;  %v3607_v26 = vmul.f32 -1.442695, %v5840_v31  ;;  %4039 = vmatmul.mubr.msk.bf16.gmra.mrb[80].mxu1 %vm610_vm0, %v2185_v58 }
 0x44c   : > { %v4537_v28 = vpop.eup %4536  ;;  %4556 = vrcp.f32 %v2071_v50  ;;  %v3605_v38 = vmul.f32 -1.442695, %v5844_v52  ;;  %v2164_v8 = vmul.f32 %v4535_v20, %v5767_v30 }
 0x44d   : > { %v4539_v16 = vpop.eup %4538  ;;  %4558 = vpow2.f32 %v3606_v15  ;;  %v2162_v7 = vmul.f32 %v4537_v28, %v5770_v17 }
 0x44e   : > { %v4541_v47 = vpop.eup %4540  ;;  %v2165_v41 = vmul.f32 %v4539_v16, %v5774_v36  ;;  %4560 = vpow2.f32 %v3604_v44 }
 0x44f   : > { %v4543_v46 = vpop.eup %4542  ;;  %v2163_v19 = vmul.f32 %v4541_v47, %v5778_v37  ;;  %4562 = vpow2.f32 %v3607_v26 }
 0x450   : > { %v4545_v6 = vpop.eup %4544  ;;  %v2187_v58 = vpack.c.bf16 %v2165_v41, %v2164_v8  ;;  %v2076_v23 = vadd.f32 1.0, %v4543_v46  ;;  %4564 = vpow2.f32 %v3605_v38 }
 0x451   : > { %v4547_v54 = vpop.eup %4546  ;;  %v2186_v10 = vpack.c.bf16 %v2163_v19, %v2162_v7  ;;  %v2074_v34 = vadd.f32 1.0, %v4545_v6 }
 0x452   : > { %v4549_v63 = vpop.eup %4548  ;;  %4566 = vrcp.f32 %v2076_v23  ;;  %v2077_v15 = vadd.f32 1.0, %v4547_v54 }
 0x453   : > { %v4551_v30 = vpop.eup %4550  ;;  %4568 = vrcp.f32 %v2074_v34  ;;  %v2075_v36 = vadd.f32 1.0, %v4549_v63  ;;  %4042 = vmatprep.mubr.msk.bf16.mxu1 %vm610_vm0, %v2186_v10 }
 0x454   : > { %v4553_v50 = vpop.eup %4552  ;;  %4570 = vrcp.f32 %v2077_v15  ;;  %4043 = vmatmul.mubr.msk.bf16.gmra.mrb[84].mxu1 %vm610_vm0, %v2187_v58  ;;  %v2168_v44 = vmul.f32 %v4551_v30, %v5789_v60 }
 0x455   : > { %v4555_v17 = vpop.eup %4554  ;;  %4572 = vrcp.f32 %v2075_v36  ;;  %v2166_v28 = vmul.f32 %v4553_v50, %v5792_v61 }
 0x456   : > { %v4557_v37 = vpop.eup %4556  ;;  %v2169_v20 = vmul.f32 %v4555_v17, %v5796_v53 }
 0x457   : > { %v4559_v26 = vpop.eup %4558  ;;  %v2167_v38 = vmul.f32 %v4557_v37, %v5800_v24 }
 0x458   : > { %v4561_v16 = vpop.eup %4560  ;;  %v2189_v47 = vpack.c.bf16 %v2169_v20, %v2168_v44  ;;  %v2080_v8 = vadd.f32 1.0, %v4559_v26  ;;  %v4190_v20 = vld [vmem:[%s6287_s14] sm:$0xff]  }
 0x459   : > { %v4563_v41 = vpop.eup %4562  ;;  %v2188_v46 = vpack.c.bf16 %v2167_v38, %v2166_v28  ;;  %v2078_v7 = vadd.f32 1.0, %v4561_v16  ;;  %4058 = vmatprep.subr.bf16.mxu0 %v4190_v20 }
 0x45a   : > { %v4565_v19 = vpop.eup %4564  ;;  %4574 = vrcp.f32 %v2080_v8  ;;  %v2081_v6 = vadd.f32 1.0, %v4563_v41  ;;  %4059 = vmatpush3.bf16.msra.mxu0 %v4190_v20 }
 0x45b   : > { %4576 = vrcp.f32 %v2078_v7  ;;  %v2079_v58 = vadd.f32 1.0, %v4565_v19  ;;  %4046 = vmatprep.mubr.msk.bf16.mxu1 %vm610_vm0, %v2188_v46 }
 0x45c   : > { %v4567_v60 = vpop.eup %4566  ;;  %4578 = vrcp.f32 %v2081_v6  ;;  %4047 = vmatmul.mubr.msk.bf16.gmra.mrb[88].mxu1 %vm610_vm0, %v2189_v47 }
 0x45d   : > { %v4569_v61 = vpop.eup %4568  ;;  %4580 = vrcp.f32 %v2079_v58  ;;  %v2172_v23 = vmul.f32 %v4567_v60, %v5811_v39 }
 0x45e   : > { %v4571_v53 = vpop.eup %4570  ;;  %v2170_v10 = vmul.f32 %v4569_v61, %v5814_v62 }
 0x45f   : > { %v4573_v24 = vpop.eup %4572  ;;  %v2173_v54 = vmul.f32 %v4571_v53, %v5817_v59 }
 0x460   : > { %v2171_v34 = vmul.f32 %v4573_v24, %v5821_v43 }
 0x461   : > { %v2191_v63 = vpack.c.bf16 %v2173_v54, %v2172_v23  ;;  %v4193_v23 = vld [vmem:[%s6286_s13 + $0x8] sm:$0xff]  }
 0x462   : > { %v2190_v15 = vpack.c.bf16 %v2171_v34, %v2170_v10 }
 0x464   : > { %v4575_v30 = vpop.eup %4574  ;;  %4050 = vmatprep.mubr.msk.bf16.mxu1 %vm610_vm0, %v2190_v15 }
 0x465   : > { %v4577_v36 = vpop.eup %4576  ;;  %4051 = vmatmul.mubr.msk.bf16.gmra.mrb[92].mxu1 %vm610_vm0, %v2191_v63  ;;  %v2176_v37 = vmul.f32 %v4575_v30, %v5833_v21  ;;  %v4191_v21 = vld [vmem:[%s6287_s14 + $0x8] sm:$0xff]  }
 0x466   : > { %v4579_v50 = vpop.eup %4578  ;;  %v2174_v59 = vmul.f32 %v4577_v36, %v5836_v0  ;;  %4060 = vmatprep.subr.bf16.mxu0 %v4191_v21  ;;  %v4192_v0 = vld [vmem:[%s6286_s13] sm:$0xff]  }
 0x467   : > { %v4581_v17 = vpop.eup %4580  ;;  %v2177_v39 = vmul.f32 %v4579_v50, %v5840_v31  ;;  %4061 = vmatpush3.bf16.msra.mxu0 %v4191_v21  ;;  %v5886_v31 = vld [vmem:[%s6285_s12] ss:$0 sm:$0xff] }
 0x468   : > { %v2175_v62 = vmul.f32 %v4581_v17, %v5844_v52  ;;  %4094 = vmatprep.subr.bf16.mxu0 %v4192_v0 }
 0x469   : > { %v2193_v44 = vpack.c.bf16 %v2177_v39, %v2176_v37 }
 0x46a   : > { %v2192_v43 = vpack.c.bf16 %v2175_v62, %v2174_v59 }
 0x46c   : > { %4054 = vmatprep.mubr.msk.bf16.mxu1 %vm610_vm0, %v2192_v43 }
 0x46d   : > { %4055 = vmatmul.mubr.msk.bf16.gmra.mrb[96].mxu1 %vm610_vm0, %v2193_v44 }
 0x505   : > { %v4028_v52 = vpop.f32.mrb[68].mxu1 }
 0x506   : > { %v2324_v26 = vadd.f32 %v4028_v52, %v5886_v31  ;;  %v2315_v28 = vpop.f32.mrb[69].mxu1 }
 0x507   : > { %v2316_v38 = vadd.f32 %v5886_v31, %v2315_v28  ;;  %v4029_v16 = vpop.f32.mrb[70].mxu1 }
 0x508   : > { %v2327_v47 = vadd.f32 %v4029_v16, %v5886_v31  ;;  %v2318_v8 = vpop.f32.mrb[71].mxu1  ;;  %v2444_v46 = vadd.f32 %v2324_v26, %v5518_v11 }
 0x509   : > { %v2319_v41 = vadd.f32 %v5886_v31, %v2318_v8  ;;  %v2442_v19 = vadd.f32 %v2316_v38, %v5510_v22 }
 0x50a   : > { %v2445_v7 = vadd.f32 %v2327_v47, %v5522_v33 }
 0x50b   : > { %v2443_v6 = vadd.f32 %v2319_v41, %v5514_v57 }
 0x50c   : > { %v2495_v58 = vpack.c.bf16 %v2445_v7, %v2444_v46 }
 0x50d   : > { %v2494_v60 = vpack.c.bf16 %v2443_v6, %v2442_v19  ;;  %v4032_v61 = vpop.f32.mrb[72].mxu1 }
 0x50e   : > { %v2340_v53 = vadd.f32 %v4032_v61, %v5886_v31  ;;  %v2331_v24 = vpop.f32.mrb[73].mxu1 }
 0x50f   : > { %v2332_v54 = vadd.f32 %v5886_v31, %v2331_v24  ;;  %v4033_v10 = vpop.f32.mrb[74].mxu1  ;;  %4062 = vmatprep.mubr.msk.bf16.mxu0 %vm1468_vm2, %v2494_v60 }
 0x510   : > { %v2343_v11 = vadd.f32 %v4033_v10, %v5886_v31  ;;  %v2334_v22 = vpop.f32.mrb[75].mxu1  ;;  %4063 = vmatmul.mubr.msk.bf16.vlgmr.msra.gmra.mrb[36].mxu0 %vm1468_vm2, %v2495_v58  ;;  %v2448_v33 = vadd.f32 %v2340_v53, %v5546_v42 }
 0x511   : > { %v2335_v57 = vadd.f32 %v5886_v31, %v2334_v22  ;;  %4095 = vmatpush3.bf16.msra.mxu0 %v4192_v0  ;;  %v2446_v63 = vadd.f32 %v2332_v54, %v5526_v3 }
 0x512   : > { %v2449_v34 = vadd.f32 %v2343_v11, %v5550_v49  ;;  %4096 = vmatprep.subr.bf16.mxu0 %v4193_v23 }
 0x513   : > { %v2447_v15 = vadd.f32 %v2335_v57, %v5530_v4 }
 0x514   : > { %v2497_v30 = vpack.c.bf16 %v2449_v34, %v2448_v33 }
 0x515   : > { %v2496_v36 = vpack.c.bf16 %v2447_v15, %v2446_v63  ;;  %4097 = vmatpush3.bf16.msra.mxu0 %v4193_v23 }
 0x516   : > { %v4036_v50 = vpop.f32.mrb[76].mxu1 }
 0x517   : > { %v2356_v17 = vadd.f32 %v4036_v50, %v5886_v31  ;;  %v2347_v37 = vpop.f32.mrb[77].mxu1  ;;  %4066 = vmatprep.mubr.msk.bf16.mxu0 %vm1468_vm2, %v2496_v36 }
 0x518   : > { %v2348_v39 = vadd.f32 %v5886_v31, %v2347_v37  ;;  %v4037_v59 = vpop.f32.mrb[78].mxu1  ;;  %4067 = vmatmul.mubr.msk.bf16.gmra.mrb[40].mxu0 %vm1468_vm2, %v2497_v30 }
 0x519   : > { %v2359_v42 = vadd.f32 %v4037_v59, %v5886_v31  ;;  %v2350_v49 = vpop.f32.mrb[79].mxu1  ;;  %v2452_v4 = vadd.f32 %v2356_v17, %v5568_v55 }
 0x51a   : > { %v2351_v3 = vadd.f32 %v5886_v31, %v2350_v49  ;;  %v2450_v44 = vadd.f32 %v2348_v39, %v5554_v45 }
 0x51b   : > { %v2453_v62 = vadd.f32 %v2359_v42, %v5572_v29 }
 0x51c   : > { %v2451_v43 = vadd.f32 %v2351_v3, %v5558_v48  ;;  %v6372_v3 = vld [vmem:[#allocation36_spill] sm:$0xff] }
 0x51d   : > { %v2499_v20 = vpack.c.bf16 %v2453_v62, %v2452_v4 }
 0x51e   : > { %v2498_v21 = vpack.c.bf16 %v2451_v43, %v2450_v44  ;;  %v4040_v0 = vpop.f32.mrb[80].mxu1 }
 0x51f   : > { %v2372_v52 = vadd.f32 %v4040_v0, %v5886_v31  ;;  %v2363_v26 = vpop.f32.mrb[81].mxu1 }
 0x520   : > { %v2364_v28 = vadd.f32 %v5886_v31, %v2363_v26  ;;  %v4041_v38 = vpop.f32.mrb[82].mxu1  ;;  %4070 = vmatprep.mubr.msk.bf16.mxu0 %vm1468_vm2, %v2498_v21 }
 0x521   : > { %v2375_v16 = vadd.f32 %v4041_v38, %v5886_v31  ;;  %v2366_v55 = vpop.f32.mrb[83].mxu1  ;;  %4071 = vmatmul.mubr.msk.bf16.gmra.mrb[44].mxu0 %vm1468_vm2, %v2499_v20  ;;  %v2456_v48 = vadd.f32 %v2372_v52, %v5590_v25  ;;  %v6374_v38 = vld [vmem:[#allocation3_spill] sm:$0xff] }
 0x522   : > { %v2367_v45 = vadd.f32 %v5886_v31, %v2366_v55  ;;  %v2454_v47 = vadd.f32 %v2364_v28, %v5576_v56  ;;  %v6375_v55 = vld [vmem:[#allocation37_spill] sm:$0xff] }
 0x523   : > { %v2457_v29 = vadd.f32 %v2375_v16, %v5594_v9 }
 0x524   : > { %v2455_v8 = vadd.f32 %v2367_v45, %v5580_v12 }
 0x525   : > { %v2501_v41 = vpack.c.bf16 %v2457_v29, %v2456_v48  ;;  %v6376_v48 = vld [vmem:[#allocation38_spill] sm:$0xff] }
 0x526   : > { %v2500_v46 = vpack.c.bf16 %v2455_v8, %v2454_v47 }
 0x527   : > { %v4044_v7 = vpop.f32.mrb[84].mxu1 }
 0x528   : > { %v2388_v19 = vadd.f32 %v4044_v7, %v5886_v31  ;;  %v2379_v6 = vpop.f32.mrb[85].mxu1  ;;  %4074 = vmatprep.mubr.msk.bf16.mxu0 %vm1468_vm2, %v2500_v46  ;;  %v6378_v46 = vld [vmem:[#allocation5_spill] sm:$0xff] }
 0x529   : > { %v2380_v58 = vadd.f32 %v5886_v31, %v2379_v6  ;;  %v4045_v60 = vpop.f32.mrb[86].mxu1  ;;  %4075 = vmatmul.mubr.msk.bf16.gmra.mrb[48].mxu0 %vm1468_vm2, %v2501_v41  ;;  %v6377_v41 = vld [vmem:[#allocation7_spill] sm:$0xff] }
 0x52a   : > { %v2391_v25 = vadd.f32 %v4045_v60, %v5886_v31  ;;  %v2382_v9 = vpop.f32.mrb[87].mxu1  ;;  %v2460_v12 = vadd.f32 %v2388_v19, %v5612_v13  ;;  %v6379_v7 = vpack.c.bf16 %v6377_v41, %v6378_v46  ;;  %v6381_v19 = vld [vmem:[#allocation4_spill] sm:$0xff]  ;;  %v6384_v60 = vld [vmem:[#allocation9_spill] sm:$0xff] }
 0x52b   : > { %v2383_v56 = vadd.f32 %v5886_v31, %v2382_v9  ;;  %v2458_v53 = vadd.f32 %v2380_v58, %v5598_v5  ;;  %v6383_v58 = vld [vmem:[#allocation11_spill] sm:$0xff]  ;;  %v6386_v9 = vld [vmem:[#allocation10_spill] sm:$0xff] }
 0x52c   : > { %v2461_v61 = vadd.f32 %v2391_v25, %v5616_v40  ;;  %v6385_v25 = vpack.c.bf16 %v6383_v58, %v6384_v60 }
 0x52d   : > { %v2459_v24 = vadd.f32 %v2383_v56, %v5602_v32  ;;  %v6387_v56 = vld [vmem:[#allocation8_spill] sm:$0xff] }
 0x52e   : > { %v2503_v23 = vpack.c.bf16 %v2461_v61, %v2460_v12  ;;  %v6388_v12 = vpack.c.bf16 %v6386_v9, %v6387_v56  ;;  %v6389_v61 = vld [vmem:[#allocation15_spill] sm:$0xff] }
 0x52f   : > { %v2502_v54 = vpack.c.bf16 %v2459_v24, %v2458_v53  ;;  %v4048_v10 = vpop.f32.mrb[88].mxu1  ;;  %v6390_v53 = vld [vmem:[#allocation13_spill] sm:$0xff] }
 0x530   : > { %v2404_v11 = vadd.f32 %v4048_v10, %v5886_v31  ;;  %v2395_v22 = vpop.f32.mrb[89].mxu1  ;;  %v6391_v24 = vpack.c.bf16 %v6389_v61, %v6390_v53 }
 0x531   : > { %v2396_v57 = vadd.f32 %v5886_v31, %v2395_v22  ;;  %v4049_v33 = vpop.f32.mrb[90].mxu1  ;;  %4078 = vmatprep.mubr.msk.bf16.mxu0 %vm1468_vm2, %v2502_v54  ;;  %v6393_v54 = vld [vmem:[#allocation12_spill] sm:$0xff]  ;;  %v6396_v22 = vld [vmem:[#allocation17_spill] sm:$0xff] }
 0x532   : > { %v2407_v34 = vadd.f32 %v4049_v33, %v5886_v31  ;;  %v2398_v13 = vpop.f32.mrb[91].mxu1  ;;  %4079 = vmatmul.mubr.msk.bf16.gmra.mrb[52].mxu0 %vm1468_vm2, %v2503_v23  ;;  %v2464_v32 = vadd.f32 %v2404_v11, %v5634_v2  ;;  %v6392_v23 = vld [vmem:[#allocation14_spill] sm:$0xff]  ;;  %v6395_v11 = vld [vmem:[#allocation19_spill] sm:$0xff] }
 0x533   : > { %v2399_v5 = vadd.f32 %v5886_v31, %v2398_v13  ;;  %v2462_v63 = vadd.f32 %v2396_v57, %v5620_v18  ;;  %v6394_v10 = vpack.c.bf16 %v6392_v23, %v6393_v54  ;;  %v6397_v57 = vpack.c.bf16 %v6395_v11, %v6396_v22  ;;  %v6398_v33 = vld [vmem:[#allocation18_spill] sm:$0xff] }
 0x534   : > { %v2465_v40 = vadd.f32 %v2407_v34, %v5638_v35  ;;  %v6399_v34 = vld [vmem:[#allocation16_spill] sm:$0xff] }
 0x535   : > { %v2463_v15 = vadd.f32 %v2399_v5, %v5624_v27  ;;  %v6400_v13 = vpack.c.bf16 %v6398_v33, %v6399_v34  ;;  %v6401_v5 = vld [vmem:[#allocation23_spill] sm:$0xff] }
 0x536   : > { %v2505_v30 = vpack.c.bf16 %v2465_v40, %v2464_v32  ;;  %v6402_v32 = vld [vmem:[#allocation21_spill] sm:$0xff] }
 0x537   : > { %v2504_v36 = vpack.c.bf16 %v2463_v15, %v2462_v63  ;;  %v6403_v40 = vpack.c.bf16 %v6401_v5, %v6402_v32  ;;  %v6404_v63 = vld [vmem:[#allocation22_spill] sm:$0xff]  ;;  %v6405_v15 = vld [vmem:[#allocation20_spill] sm:$0xff] }
 0x538   : > { %v4052_v50 = vpop.f32.mrb[92].mxu1 }
 0x539   : > { %v2420_v17 = vadd.f32 %v4052_v50, %v5886_v31  ;;  %v2411_v37 = vpop.f32.mrb[93].mxu1  ;;  %4082 = vmatprep.mubr.msk.bf16.mxu0 %vm1468_vm2, %v2504_v36  ;;  %v6407_v36 = vld [vmem:[#allocation27_spill] sm:$0xff]  ;;  %v6408_v50 = vld [vmem:[#allocation25_spill] sm:$0xff] }
 0x53a   : > { %v2412_v39 = vadd.f32 %v5886_v31, %v2411_v37  ;;  %v4053_v59 = vpop.f32.mrb[94].mxu1  ;;  %4083 = vmatmul.mubr.msk.bf16.gmra.mrb[56].mxu0 %vm1468_vm2, %v2505_v30  ;;  %v6406_v30 = vpack.c.bf16 %v6404_v63, %v6405_v15  ;;  %v6410_v37 = vld [vmem:[#allocation26_spill] sm:$0xff] }
 0x53b   : > { %v2423_v2 = vadd.f32 %v4053_v59, %v5886_v31  ;;  %v2414_v35 = vpop.f32.mrb[95].mxu1  ;;  %v2468_v27 = vadd.f32 %v2420_v17, %v5656_v1  ;;  %v6409_v17 = vpack.c.bf16 %v6407_v36, %v6408_v50 }
 0x53c   : > { %v2415_v18 = vadd.f32 %v5886_v31, %v2414_v35  ;;  %v2466_v49 = vadd.f32 %v2412_v39, %v5642_v51  ;;  %v6411_v39 = vld [vmem:[#allocation24_spill] sm:$0xff]  ;;  %v6414_v35 = vld [vmem:[#allocation29_spill] sm:$0xff] }
 0x53d   : > { %v2469_v42 = vadd.f32 %v2423_v2, %v5660_v14  ;;  %v6373_v14 = vld [vmem:[#allocation2_spill] sm:$0xff]  ;;  %v6412_v59 = vpack.c.bf16 %v6410_v37, %v6411_v39  ;;  %v6413_v2 = vld [vmem:[#allocation31_spill] sm:$0xff] }
 0x53e   : > { %v2467_v4 = vadd.f32 %v2415_v18, %v6372_v3  ;;  %v6415_v18 = vpack.c.bf16 %v6413_v2, %v6414_v35  ;;  %v6419_v3 = vld [vmem:[#allocation35_spill] sm:$0xff] }
 0x53f   : > { %v2507_v62 = vpack.c.bf16 %v2469_v42, %v2468_v27  ;;  %v6416_v27 = vld [vmem:[#allocation30_spill] sm:$0xff]  ;;  %v6417_v42 = vld [vmem:[#allocation28_spill] sm:$0xff] }
 0x540   : > { %v2506_v44 = vpack.c.bf16 %v2467_v4, %v2466_v49  ;;  %v4056_v43 = vpop.f32.mrb[96].mxu1  ;;  %v6418_v49 = vpack.c.bf16 %v6416_v27, %v6417_v42  ;;  %v6420_v4 = vld [vmem:[#allocation33_spill] sm:$0xff] }
 0x541   : > { %v2436_v20 = vadd.f32 %v4056_v43, %v5886_v31  ;;  %v2427_v21 = vpop.f32.mrb[97].mxu1  ;;  %v6423_v43 = vld [vmem:[#allocation32_spill] sm:$0xff] }
 0x542   : > { %v2428_v0 = vadd.f32 %v5886_v31, %v2427_v21  ;;  %v4057_v52 = vpop.f32.mrb[98].mxu1  ;;  %4086 = vmatprep.mubr.msk.bf16.mxu0 %vm1468_vm2, %v2506_v44  ;;  %v6422_v44 = vld [vmem:[#allocation34_spill] sm:$0xff] }
 0x543   : > { %v2439_v26 = vadd.f32 %v4057_v52, %v5886_v31  ;;  %v2430_v1 = vpop.f32.mrb[99].mxu1  ;;  %4087 = vmatmul.mubr.msk.bf16.gmra.mrb[60].mxu0 %vm1468_vm2, %v2507_v62  ;;  %v2472_v28 = vadd.f32 %v2436_v20, %v6373_v14  ;;  %v6421_v62 = vpack.c.bf16 %v6419_v3, %v6420_v4  ;;  %v6424_v20 = vpack.c.bf16 %v6422_v44, %v6423_v43  ;;  %v6038_v21 = vld [vmem:[%s6288_s15] ss:$0 sm:$0xff] }
 0x544   : > { %v2431_v51 = vadd.f32 %v5886_v31, %v2430_v1  ;;  %v2470_v45 = vadd.f32 %v2428_v0, %v6375_v55  ;;  %v6380_v31 = vld [vmem:[#allocation6_spill] sm:$0xff] }
 0x545   : > { %v2473_v16 = vadd.f32 %v2439_v26, %v6374_v38  ;;  %v6382_v6 = vpack.c.bf16 %v6380_v31, %v6381_v19 }
 0x546   : > { %v2471_v29 = vadd.f32 %v2431_v51, %v6376_v48 }
 0x547   : > { %v2509_v47 = vpack.c.bf16 %v2473_v16, %v2472_v28 }
 0x548   : > { %v2508_v8 = vpack.c.bf16 %v2471_v29, %v2470_v45 }
 0x54a   : > { %4090 = vmatprep.mubr.msk.bf16.mxu0 %vm1468_vm2, %v2508_v8 }
 0x54b   : > { %4091 = vmatmul.mubr.msk.bf16.gmra.mrb[64].mxu0 %vm1468_vm2, %v2509_v47 }
 0x54c   : > { %4098 = vmatprep.mubr.msk.bf16.mxu0 %vm1468_vm2, %v6379_v7 }
 0x553   : > { %4099 = vmatmul.mubr.msk.bf16.vlgmr.msra.gmra.mrb[36].mxu0 %vm1468_vm2, %v6382_v6 }
 0x554   : > { %4102 = vmatprep.mubr.msk.bf16.mxu0 %vm1468_vm2, %v6385_v25 }
 0x55b   : > { %4103 = vmatmul.mubr.msk.bf16.gmra.mrb[40].mxu0 %vm1468_vm2, %v6388_v12 }
 0x55c   : > { %4106 = vmatprep.mubr.msk.bf16.mxu0 %vm1468_vm2, %v6391_v24 }
 0x563   : > { %4107 = vmatmul.mubr.msk.bf16.gmra.mrb[44].mxu0 %vm1468_vm2, %v6394_v10 }
 0x564   : > { %4110 = vmatprep.mubr.msk.bf16.mxu0 %vm1468_vm2, %v6397_v57 }
 0x56b   : > { %4111 = vmatmul.mubr.msk.bf16.gmra.mrb[48].mxu0 %vm1468_vm2, %v6400_v13 }
 0x56c   : > { %4114 = vmatprep.mubr.msk.bf16.mxu0 %vm1468_vm2, %v6403_v40 }
 0x573   : > { %4115 = vmatmul.mubr.msk.bf16.gmra.mrb[52].mxu0 %vm1468_vm2, %v6406_v30 }
 0x574   : > { %4118 = vmatprep.mubr.msk.bf16.mxu0 %vm1468_vm2, %v6409_v17 }
 0x57b   : > { %4119 = vmatmul.mubr.msk.bf16.gmra.mrb[56].mxu0 %vm1468_vm2, %v6412_v59 }
 0x57c   : > { %4122 = vmatprep.mubr.msk.bf16.mxu0 %vm1468_vm2, %v6415_v18 }
 0x583   : > { %4123 = vmatmul.mubr.msk.bf16.gmra.mrb[60].mxu0 %vm1468_vm2, %v6418_v49 }
 0x584   : > { %4126 = vmatprep.mubr.msk.bf16.mxu0 %vm1468_vm2, %v6421_v62 }
 0x58b   : > { %4127 = vmatmul.mubr.msk.bf16.gmra.mrb[64].mxu0 %vm1468_vm2, %v6424_v20 }
 0x626   : > { %v4100_v0 = vpop.f32.mrb[36].mxu0 }
 0x627   : > { %v6041_v52 = vadd.f32 %v4100_v0, %v6038_v21  ;;  %v2829_v26 = vpop.f32.mrb[37].mxu0 }
 0x628   : > { %v6044_v1 = vadd.f32 %v6038_v21, %v2829_v26  ;;  %v4101_v51 = vpop.f32.mrb[38].mxu0 }
 0x629   : > { %v3668_v14 = vmul.f32 -1.442695, %v6041_v52  ;;  %v6048_v28 = vadd.f32 %v4101_v51, %v6038_v21  ;;  %v2832_v38 = vpop.f32.mrb[39].mxu0 }
 0x62a   : > { %v3666_v16 = vmul.f32 -1.442695, %v6044_v1  ;;  %v6052_v55 = vadd.f32 %v6038_v21, %v2832_v38 }
 0x62b   : > { %4582 = vpow2.f32 %v3668_v14  ;;  %v3669_v45 = vmul.f32 -1.442695, %v6048_v28 }
 0x62c   : > { %4584 = vpow2.f32 %v3666_v16  ;;  %v3667_v48 = vmul.f32 -1.442695, %v6052_v55 }
 0x62d   : > { %4586 = vpow2.f32 %v3669_v45 }
 0x62e   : > { %4588 = vpow2.f32 %v3667_v48  ;;  %v4104_v29 = vpop.f32.mrb[40].mxu0 }
 0x62f   : > { %v6057_v47 = vadd.f32 %v4104_v29, %v6038_v21  ;;  %v2845_v8 = vpop.f32.mrb[41].mxu0 }
 0x630   : > { %v6060_v41 = vadd.f32 %v6038_v21, %v2845_v8  ;;  %v4105_v46 = vpop.f32.mrb[42].mxu0 }
 0x631   : > { %v3672_v7 = vmul.f32 -1.442695, %v6057_v47  ;;  %v6064_v31 = vadd.f32 %v4105_v46, %v6038_v21  ;;  %v2848_v19 = vpop.f32.mrb[43].mxu0 }
 0x632   : > { %v3670_v6 = vmul.f32 -1.442695, %v6060_v41  ;;  %v6068_v58 = vadd.f32 %v6038_v21, %v2848_v19 }
 0x633   : > { %4590 = vpow2.f32 %v3672_v7  ;;  %v3673_v60 = vmul.f32 -1.442695, %v6064_v31 }
 0x634   : > { %4592 = vpow2.f32 %v3670_v6  ;;  %v3671_v25 = vmul.f32 -1.442695, %v6068_v58 }
 0x635   : > { %v4583_v9 = vpop.eup %4582  ;;  %4594 = vpow2.f32 %v3673_v60 }
 0x636   : > { %v4585_v56 = vpop.eup %4584  ;;  %v3093_v12 = vadd.f32 1.0, %v4583_v9  ;;  %4596 = vpow2.f32 %v3671_v25  ;;  %v4108_v61 = vpop.f32.mrb[44].mxu0 }
 0x637   : > { %v4587_v53 = vpop.eup %4586  ;;  %v3091_v24 = vadd.f32 1.0, %v4585_v56  ;;  %v6073_v23 = vadd.f32 %v4108_v61, %v6038_v21  ;;  %v2861_v54 = vpop.f32.mrb[45].mxu0 }
 0x638   : > { %v4589_v10 = vpop.eup %4588  ;;  %4598 = vrcp.f32 %v3093_v12  ;;  %v3094_v11 = vadd.f32 1.0, %v4587_v53  ;;  %v6076_v22 = vadd.f32 %v6038_v21, %v2861_v54  ;;  %v4109_v57 = vpop.f32.mrb[46].mxu0 }
 0x639   : > { %4600 = vrcp.f32 %v3091_v24  ;;  %v3092_v33 = vadd.f32 1.0, %v4589_v10  ;;  %v3676_v34 = vmul.f32 -1.442695, %v6073_v23  ;;  %v6080_v13 = vadd.f32 %v4109_v57, %v6038_v21  ;;  %v2864_v5 = vpop.f32.mrb[47].mxu0 }
 0x63a   : > { %4602 = vrcp.f32 %v3094_v11  ;;  %v3674_v32 = vmul.f32 -1.442695, %v6076_v22  ;;  %v6084_v40 = vadd.f32 %v6038_v21, %v2864_v5 }
 0x63b   : > { %4604 = vrcp.f32 %v3092_v33  ;;  %v3677_v63 = vmul.f32 -1.442695, %v6080_v13 }
 0x63c   : > { %4606 = vpow2.f32 %v3676_v34  ;;  %v3675_v15 = vmul.f32 -1.442695, %v6084_v40 }
 0x63d   : > { %v4591_v30 = vpop.eup %4590  ;;  %4608 = vpow2.f32 %v3674_v32 }
 0x63e   : > { %v4593_v36 = vpop.eup %4592  ;;  %v3097_v50 = vadd.f32 1.0, %v4591_v30  ;;  %4610 = vpow2.f32 %v3677_v63  ;;  %v4112_v17 = vpop.f32.mrb[48].mxu0 }
 0x63f   : > { %v4595_v37 = vpop.eup %4594  ;;  %v3095_v39 = vadd.f32 1.0, %v4593_v36  ;;  %4612 = vpow2.f32 %v3675_v15  ;;  %v6089_v59 = vadd.f32 %v4112_v17, %v6038_v21  ;;  %v2877_v2 = vpop.f32.mrb[49].mxu0 }
 0x640   : > { %v4597_v35 = vpop.eup %4596  ;;  %4614 = vrcp.f32 %v3097_v50  ;;  %v3098_v18 = vadd.f32 1.0, %v4595_v37  ;;  %v6092_v27 = vadd.f32 %v6038_v21, %v2877_v2  ;;  %v4113_v42 = vpop.f32.mrb[50].mxu0 }
 0x641   : > { %4616 = vrcp.f32 %v3095_v39  ;;  %v3096_v49 = vadd.f32 1.0, %v4597_v35  ;;  %v3680_v3 = vmul.f32 -1.442695, %v6089_v59  ;;  %v6097_v4 = vadd.f32 %v4113_v42, %v6038_v21  ;;  %v2880_v62 = vpop.f32.mrb[51].mxu0 }
 0x642   : > { %v4599_v44 = vpop.eup %4598  ;;  %4618 = vrcp.f32 %v3098_v18  ;;  %v3678_v43 = vmul.f32 -1.442695, %v6092_v27  ;;  %v6101_v20 = vadd.f32 %v6038_v21, %v2880_v62 }
 0x643   : > { %v4601_v0 = vpop.eup %4600  ;;  %v3189_v26 = vmul.f32 %v4599_v44, %v6041_v52  ;;  %4620 = vrcp.f32 %v3096_v49  ;;  %v3681_v51 = vmul.f32 -1.442695, %v6097_v4 }
 0x644   : > { %v4603_v14 = vpop.eup %4602  ;;  %v3187_v38 = vmul.f32 %v4601_v0, %v6044_v1  ;;  %4622 = vpow2.f32 %v3680_v3  ;;  %v3679_v16 = vmul.f32 -1.442695, %v6101_v20 }
 0x645   : > { %v4605_v45 = vpop.eup %4604  ;;  %v3736_v48 = vpack.c.bf16 %v3189_v26, %v3189_v26  ;;  %v3190_v52 = vmul.f32 %v4603_v14, %v6048_v28  ;;  %4624 = vpow2.f32 %v3678_v43 }
 0x646   : > { %v4607_v29 = vpop.eup %4606  ;;  %v3734_v8 = vpack.c.bf16 %v3187_v38, %v3187_v38  ;;  %v3188_v46 = vmul.f32 %v4605_v45, %v6052_v55  ;;  %4626 = vpow2.f32 %v3681_v51  ;;  %v4116_v7 = vpop.f32.mrb[52].mxu0 }
 0x647   : > { %v4609_v19 = vpop.eup %4608  ;;  %3350 = vst.msk [vmem:[%s6108_s23 + $0x8] sm:$0xf] %vm3347_vm3, %v3736_v48  ;;  %v3737_v1 = vpack.c.bf16 %v3190_v52, %v3190_v52  ;;  %v3101_v6 = vadd.f32 1.0, %v4607_v29  ;;  %4628 = vpow2.f32 %v3679_v16  ;;  %v6117_v60 = vadd.f32 %v4116_v7, %v6038_v21  ;;  %v2893_v25 = vpop.f32.mrb[53].mxu0 }
 0x648   : > { %v4611_v28 = vpop.eup %4610  ;;  %3348 = vst.msk [vmem:[%s6108_s23] sm:$0xf] %vm3347_vm3, %v3734_v8  ;;  %v3735_v9 = vpack.c.bf16 %v3188_v46, %v3188_v46  ;;  %v3099_v56 = vadd.f32 1.0, %v4609_v19  ;;  %v6122_v55 = vadd.f32 %v6038_v21, %v2893_v25  ;;  %v4117_v12 = vpop.f32.mrb[54].mxu0 }
 0x649   : > { %v4613_v61 = vpop.eup %4612  ;;  %3351 = vst.msk [vmem:[%s6108_s23 + $0xc] sm:$0xf] %vm3347_vm3, %v3737_v1  ;;  %4630 = vrcp.f32 %v3101_v6  ;;  %v3102_v53 = vadd.f32 1.0, %v4611_v28  ;;  %v3684_v24 = vmul.f32 -1.442695, %v6117_v60  ;;  %v6128_v54 = vadd.f32 %v4117_v12, %v6038_v21  ;;  %v2896_v10 = vpop.f32.mrb[55].mxu0 }
 0x64a   : > { %v4615_v11 = vpop.eup %4614  ;;  %3349 = vst.msk [vmem:[%s6108_s23 + $0x4] sm:$0xf] %vm3347_vm3, %v3735_v9  ;;  %4632 = vrcp.f32 %v3099_v56  ;;  %v3100_v57 = vadd.f32 1.0, %v4613_v61  ;;  %v3682_v33 = vmul.f32 -1.442695, %v6122_v55  ;;  %v6134_v34 = vadd.f32 %v6038_v21, %v2896_v10 }
 0x64b   : > { %v4617_v5 = vpop.eup %4616  ;;  %v3193_v32 = vmul.f32 %v4615_v11, %v6057_v47  ;;  %4634 = vrcp.f32 %v3102_v53  ;;  %v3685_v63 = vmul.f32 -1.442695, %v6128_v54 }
 0x64c   : > { %v4619_v15 = vpop.eup %4618  ;;  %v3191_v30 = vmul.f32 %v4617_v5, %v6060_v41  ;;  %4636 = vrcp.f32 %v3100_v57  ;;  %v3683_v36 = vmul.f32 -1.442695, %v6134_v34 }
 0x64d   : > { %v4621_v50 = vpop.eup %4620  ;;  %v3740_v17 = vpack.c.bf16 %v3193_v32, %v3193_v32  ;;  %v3194_v37 = vmul.f32 %v4619_v15, %v6064_v31  ;;  %4638 = vpow2.f32 %v3684_v24 }
 0x64e   : > { %v4623_v39 = vpop.eup %4622  ;;  %v3738_v2 = vpack.c.bf16 %v3191_v30, %v3191_v30  ;;  %v3192_v47 = vmul.f32 %v4621_v50, %v6068_v58  ;;  %4640 = vpow2.f32 %v3682_v33  ;;  %v4120_v35 = vpop.f32.mrb[56].mxu0 }
 0x64f   : > { %v4625_v18 = vpop.eup %4624  ;;  %3354 = vst.msk [vmem:[%s6108_s23 + $0x18] sm:$0xf] %vm3347_vm3, %v3740_v17  ;;  %v3741_v41 = vpack.c.bf16 %v3194_v37, %v3194_v37  ;;  %v3105_v42 = vadd.f32 1.0, %v4623_v39  ;;  %4642 = vpow2.f32 %v3685_v63  ;;  %v6145_v49 = vadd.f32 %v4120_v35, %v6038_v21  ;;  %v2909_v3 = vpop.f32.mrb[57].mxu0 }
 0x650   : > { %v4627_v31 = vpop.eup %4626  ;;  %3352 = vst.msk [vmem:[%s6108_s23 + $0x10] sm:$0xf] %vm3347_vm3, %v3738_v2  ;;  %v3739_v62 = vpack.c.bf16 %v3192_v47, %v3192_v47  ;;  %v3103_v44 = vadd.f32 1.0, %v4625_v18  ;;  %4644 = vpow2.f32 %v3683_v36  ;;  %v6150_v58 = vadd.f32 %v6038_v21, %v2909_v3  ;;  %v4121_v43 = vpop.f32.mrb[58].mxu0 }
 0x651   : > { %v4629_v0 = vpop.eup %4628  ;;  %3355 = vst.msk [vmem:[%s6108_s23 + $0x1c] sm:$0xf] %vm3347_vm3, %v3741_v41  ;;  %4646 = vrcp.f32 %v3105_v42  ;;  %v3106_v26 = vadd.f32 1.0, %v4627_v31  ;;  %v3688_v51 = vmul.f32 -1.442695, %v6145_v49  ;;  %v6156_v14 = vadd.f32 %v4121_v43, %v6038_v21  ;;  %v2912_v38 = vpop.f32.mrb[59].mxu0 }
 0x652   : > { %3353 = vst.msk [vmem:[%s6108_s23 + $0x14] sm:$0xf] %vm3347_vm3, %v3739_v62  ;;  %4648 = vrcp.f32 %v3103_v44  ;;  %v3104_v16 = vadd.f32 1.0, %v4629_v0  ;;  %v3686_v45 = vmul.f32 -1.442695, %v6150_v58  ;;  %v6162_v48 = vadd.f32 %v6038_v21, %v2912_v38 }
 0x653   : > { %v4631_v52 = vpop.eup %4630  ;;  %4650 = vrcp.f32 %v3106_v26  ;;  %v3689_v29 = vmul.f32 -1.442695, %v6156_v14 }
 0x654   : > { %v4633_v8 = vpop.eup %4632  ;;  %v3197_v46 = vmul.f32 %v4631_v52, %v6073_v23  ;;  %4652 = vrcp.f32 %v3104_v16  ;;  %v3687_v7 = vmul.f32 -1.442695, %v6162_v48 }
 0x655   : > { %v4635_v19 = vpop.eup %4634  ;;  %v3195_v1 = vmul.f32 %v4633_v8, %v6076_v22  ;;  %4654 = vpow2.f32 %v3688_v51 }
 0x656   : > { %v4637_v6 = vpop.eup %4636  ;;  %v3744_v25 = vpack.c.bf16 %v3197_v46, %v3197_v46  ;;  %v3198_v28 = vmul.f32 %v4635_v19, %v6080_v13  ;;  %4656 = vpow2.f32 %v3686_v45  ;;  %v4124_v9 = vpop.f32.mrb[60].mxu0 }
 0x657   : > { %v4639_v56 = vpop.eup %4638  ;;  %v3742_v12 = vpack.c.bf16 %v3195_v1, %v3195_v1  ;;  %v3196_v61 = vmul.f32 %v4637_v6, %v6084_v40  ;;  %4658 = vpow2.f32 %v3689_v29  ;;  %v6171_v23 = vadd.f32 %v4124_v9, %v6038_v21  ;;  %v2925_v53 = vpop.f32.mrb[61].mxu0 }
 0x658   : > { %v4641_v24 = vpop.eup %4640  ;;  %3358 = vst.msk [vmem:[%s6108_s23 + $0x28] sm:$0xf] %vm3347_vm3, %v3744_v25  ;;  %v3745_v22 = vpack.c.bf16 %v3198_v28, %v3198_v28  ;;  %v3109_v10 = vadd.f32 1.0, %v4639_v56  ;;  %4660 = vpow2.f32 %v3687_v7  ;;  %v6176_v13 = vadd.f32 %v6038_v21, %v2925_v53  ;;  %v4125_v11 = vpop.f32.mrb[62].mxu0 }
 0x659   : > { %v4643_v57 = vpop.eup %4642  ;;  %3356 = vst.msk [vmem:[%s6108_s23 + $0x20] sm:$0xf] %vm3347_vm3, %v3742_v12  ;;  %v3743_v40 = vpack.c.bf16 %v3196_v61, %v3196_v61  ;;  %v3107_v33 = vadd.f32 1.0, %v4641_v24  ;;  %v6181_v5 = vadd.f32 %v4125_v11, %v6038_v21  ;;  %v2928_v32 = vpop.f32.mrb[63].mxu0  ;;  %v3692_v30 = vmul.f32 -1.442695, %v6171_v23 }
 0x65a   : > { %v4645_v63 = vpop.eup %4644  ;;  %3359 = vst.msk [vmem:[%s6108_s23 + $0x2c] sm:$0xf] %vm3347_vm3, %v3745_v22  ;;  %4662 = vrcp.f32 %v3109_v10  ;;  %v3110_v15 = vadd.f32 1.0, %v4643_v57  ;;  %v6187_v36 = vadd.f32 %v6038_v21, %v2928_v32  ;;  %v3690_v37 = vmul.f32 -1.442695, %v6176_v13 }
 0x65b   : > { %v4647_v50 = vpop.eup %4646  ;;  %3357 = vst.msk [vmem:[%s6108_s23 + $0x24] sm:$0xf] %vm3347_vm3, %v3743_v40  ;;  %4664 = vrcp.f32 %v3107_v33  ;;  %v3108_v17 = vadd.f32 1.0, %v4645_v63  ;;  %v3693_v47 = vmul.f32 -1.442695, %v6181_v5 }
 0x65c   : > { %v4649_v39 = vpop.eup %4648  ;;  %v3201_v2 = vmul.f32 %v4647_v50, %v6089_v59  ;;  %4666 = vrcp.f32 %v3110_v15  ;;  %v3691_v41 = vmul.f32 -1.442695, %v6187_v36 }
 0x65d   : > { %v4651_v35 = vpop.eup %4650  ;;  %v3199_v18 = vmul.f32 %v4649_v39, %v6092_v27  ;;  %4668 = vrcp.f32 %v3108_v17 }
 0x65e   : > { %v4653_v42 = vpop.eup %4652  ;;  %v3748_v3 = vpack.c.bf16 %v3201_v2, %v3201_v2  ;;  %v3202_v31 = vmul.f32 %v4651_v35, %v6097_v4  ;;  %4670 = vpow2.f32 %v3692_v30  ;;  %v4128_v62 = vpop.f32.mrb[64].mxu0 }
 0x65f   : > { %v4655_v44 = vpop.eup %4654  ;;  %v3746_v43 = vpack.c.bf16 %v3199_v18, %v3199_v18  ;;  %v3200_v59 = vmul.f32 %v4653_v42, %v6101_v20  ;;  %4672 = vpow2.f32 %v3690_v37  ;;  %v6199_v0 = vadd.f32 %v4128_v62, %v6038_v21  ;;  %v2941_v27 = vpop.f32.mrb[65].mxu0 }
 0x660   : > { %v4657_v26 = vpop.eup %4656  ;;  %3362 = vst.msk [vmem:[%s6108_s23 + $0x38] sm:$0xf] %vm3347_vm3, %v3748_v3  ;;  %v3749_v51 = vpack.c.bf16 %v3202_v31, %v3202_v31  ;;  %v3113_v38 = vadd.f32 1.0, %v4655_v44  ;;  %4674 = vpow2.f32 %v3693_v47  ;;  %v6204_v4 = vadd.f32 %v6038_v21, %v2941_v27  ;;  %v4129_v16 = vpop.f32.mrb[66].mxu0 }
 0x661   : > { %v4659_v45 = vpop.eup %4658  ;;  %3360 = vst.msk [vmem:[%s6108_s23 + $0x30] sm:$0xf] %vm3347_vm3, %v3746_v43  ;;  %v3747_v20 = vpack.c.bf16 %v3200_v59, %v3200_v59  ;;  %v3111_v52 = vadd.f32 1.0, %v4657_v26  ;;  %4676 = vpow2.f32 %v3691_v41  ;;  %v2944_v29 = vpop.f32.mrb[67].mxu0  ;;  %v3696_v7 = vmul.f32 -1.442695, %v6199_v0 }
 0x662   : > { %v4661_v8 = vpop.eup %4660  ;;  %3363 = vst.msk [vmem:[%s6108_s23 + $0x3c] sm:$0xf] %vm3347_vm3, %v3749_v51  ;;  %4678 = vrcp.f32 %v3113_v38  ;;  %v3114_v46 = vadd.f32 1.0, %v4659_v45  ;;  %v6212_v19 = vadd.f32 %v4129_v16, %v6038_v21  ;;  %v3694_v6 = vmul.f32 -1.442695, %v6204_v4 }
 0x663   : > { %3361 = vst.msk [vmem:[%s6108_s23 + $0x34] sm:$0xf] %vm3347_vm3, %v3747_v20  ;;  %4680 = vrcp.f32 %v3111_v52  ;;  %v3112_v1 = vadd.f32 1.0, %v4661_v8  ;;  %v6218_v25 = vadd.f32 %v6038_v21, %v2944_v29 }
 0x664   : > { %v4663_v28 = vpop.eup %4662  ;;  %4682 = vrcp.f32 %v3114_v46  ;;  %v3697_v9 = vmul.f32 -1.442695, %v6212_v19 }
 0x665   : > { %v4665_v56 = vpop.eup %4664  ;;  %v3205_v12 = vmul.f32 %v4663_v28, %v6117_v60  ;;  %4684 = vrcp.f32 %v3112_v1  ;;  %v3695_v61 = vmul.f32 -1.442695, %v6218_v25 }
 0x666   : > { %v4667_v53 = vpop.eup %4666  ;;  %v3203_v24 = vmul.f32 %v4665_v56, %v6122_v55  ;;  %4686 = vpow2.f32 %v3696_v7 }
 0x667   : > { %v4669_v22 = vpop.eup %4668  ;;  %v3752_v10 = vpack.c.bf16 %v3205_v12, %v3205_v12  ;;  %v3206_v21 = vmul.f32 %v4667_v53, %v6128_v54  ;;  %4688 = vpow2.f32 %v3694_v6 }
 0x668   : > { %v4671_v11 = vpop.eup %4670  ;;  %v3750_v57 = vpack.c.bf16 %v3203_v24, %v3203_v24  ;;  %v3204_v40 = vmul.f32 %v4669_v22, %v6134_v34  ;;  %4690 = vpow2.f32 %v3697_v9 }
 0x669   : > { %v4673_v60 = vpop.eup %4672  ;;  %3366 = vst.msk [vmem:[%s6108_s23 + $0x48] sm:$0xf] %vm3347_vm3, %v3752_v10  ;;  %v3753_v33 = vpack.c.bf16 %v3206_v21, %v3206_v21  ;;  %v3117_v32 = vadd.f32 1.0, %v4671_v11  ;;  %4692 = vpow2.f32 %v3695_v61 }
 0x66a   : > { %v4675_v55 = vpop.eup %4674  ;;  %3364 = vst.msk [vmem:[%s6108_s23 + $0x40] sm:$0xf] %vm3347_vm3, %v3750_v57  ;;  %v3751_v63 = vpack.c.bf16 %v3204_v40, %v3204_v40  ;;  %v3115_v15 = vadd.f32 1.0, %v4673_v60 }
 0x66b   : > { %v4677_v54 = vpop.eup %4676  ;;  %3367 = vst.msk [vmem:[%s6108_s23 + $0x4c] sm:$0xf] %vm3347_vm3, %v3753_v33  ;;  %4694 = vrcp.f32 %v3117_v32  ;;  %v3118_v30 = vadd.f32 1.0, %v4675_v55 }
 0x66c   : > { %v4679_v50 = vpop.eup %4678  ;;  %3365 = vst.msk [vmem:[%s6108_s23 + $0x44] sm:$0xf] %vm3347_vm3, %v3751_v63  ;;  %4696 = vrcp.f32 %v3115_v15  ;;  %v3116_v34 = vadd.f32 1.0, %v4677_v54 }
 0x66d   : > { %v4681_v17 = vpop.eup %4680  ;;  %v3209_v37 = vmul.f32 %v4679_v50, %v6145_v49  ;;  %4698 = vrcp.f32 %v3118_v30 }
 0x66e   : > { %v4683_v39 = vpop.eup %4682  ;;  %v3207_v2 = vmul.f32 %v4681_v17, %v6150_v58  ;;  %4700 = vrcp.f32 %v3116_v34 }
 0x66f   : > { %v4685_v47 = vpop.eup %4684  ;;  %v3756_v35 = vpack.c.bf16 %v3209_v37, %v3209_v37  ;;  %v3210_v18 = vmul.f32 %v4683_v39, %v6156_v14 }
 0x670   : > { %v4687_v41 = vpop.eup %4686  ;;  %v3754_v42 = vpack.c.bf16 %v3207_v2, %v3207_v2  ;;  %v3208_v3 = vmul.f32 %v4685_v47, %v6162_v48 }
 0x671   : > { %v4689_v31 = vpop.eup %4688  ;;  %3370 = vst.msk [vmem:[%s6108_s23 + $0x58] sm:$0xf] %vm3347_vm3, %v3756_v35  ;;  %v3757_v49 = vpack.c.bf16 %v3210_v18, %v3210_v18  ;;  %v3121_v62 = vadd.f32 1.0, %v4687_v41 }
 0x672   : > { %v4691_v44 = vpop.eup %4690  ;;  %3368 = vst.msk [vmem:[%s6108_s23 + $0x50] sm:$0xf] %vm3347_vm3, %v3754_v42  ;;  %v3755_v58 = vpack.c.bf16 %v3208_v3, %v3208_v3  ;;  %v3119_v43 = vadd.f32 1.0, %v4689_v31 }
 0x673   : > { %v4693_v59 = vpop.eup %4692  ;;  %3371 = vst.msk [vmem:[%s6108_s23 + $0x5c] sm:$0xf] %vm3347_vm3, %v3757_v49  ;;  %4702 = vrcp.f32 %v3121_v62  ;;  %v3122_v14 = vadd.f32 1.0, %v4691_v44 }
 0x674   : > { %3369 = vst.msk [vmem:[%s6108_s23 + $0x54] sm:$0xf] %vm3347_vm3, %v3755_v58  ;;  %4704 = vrcp.f32 %v3119_v43  ;;  %v3120_v48 = vadd.f32 1.0, %v4693_v59 }
 0x675   : > { %v4695_v27 = vpop.eup %4694  ;;  %4706 = vrcp.f32 %v3122_v14 }
 0x676   : > { %v4697_v26 = vpop.eup %4696  ;;  %v3213_v51 = vmul.f32 %v4695_v27, %v6171_v23  ;;  %4708 = vrcp.f32 %v3120_v48 }
 0x677   : > { %v4699_v38 = vpop.eup %4698  ;;  %v3211_v16 = vmul.f32 %v4697_v26, %v6176_v13 }
 0x678   : > { %v4701_v45 = vpop.eup %4700  ;;  %v3760_v20 = vpack.c.bf16 %v3213_v51, %v3213_v51  ;;  %v3214_v52 = vmul.f32 %v4699_v38, %v6181_v5 }
 0x679   : > { %v3758_v29 = vpack.c.bf16 %v3211_v16, %v3211_v16  ;;  %v3212_v8 = vmul.f32 %v4701_v45, %v6187_v36 }
 0x67a   : > { %3374 = vst.msk [vmem:[%s6108_s23 + $0x68] sm:$0xf] %vm3347_vm3, %v3760_v20  ;;  %v3761_v46 = vpack.c.bf16 %v3214_v52, %v3214_v52 }
 0x67b   : > { %3372 = vst.msk [vmem:[%s6108_s23 + $0x60] sm:$0xf] %vm3347_vm3, %v3758_v29  ;;  %v3759_v7 = vpack.c.bf16 %v3212_v8, %v3212_v8 }
 0x67c   : > { %3375 = vst.msk [vmem:[%s6108_s23 + $0x6c] sm:$0xf] %vm3347_vm3, %v3761_v46 }
 0x67d   : > { %v4703_v23 = vpop.eup %4702  ;;  %3373 = vst.msk [vmem:[%s6108_s23 + $0x64] sm:$0xf] %vm3347_vm3, %v3759_v7 }
 0x67e   : > { %v4705_v13 = vpop.eup %4704  ;;  %v3217_v5 = vmul.f32 %v4703_v23, %v6199_v0 }
 0x67f   : > { %v4707_v1 = vpop.eup %4706  ;;  %v3215_v36 = vmul.f32 %v4705_v13, %v6204_v4 }
 0x680   : > { %v4709_v6 = vpop.eup %4708  ;;  %v3764_v28 = vpack.c.bf16 %v3217_v5, %v3217_v5  ;;  %v3218_v9 = vmul.f32 %v4707_v1, %v6212_v19 }
 0x681   : > { %v3762_v56 = vpack.c.bf16 %v3215_v36, %v3215_v36  ;;  %v3216_v12 = vmul.f32 %v4709_v6, %v6218_v25 }
 0x682   : > { %3378 = vst.msk [vmem:[%s6108_s23 + $0x78] sm:$0xf] %vm3347_vm3, %v3764_v28  ;;  %v3765_v61 = vpack.c.bf16 %v3218_v9, %v3218_v9 }
 0x683   : > { %3376 = vst.msk [vmem:[%s6108_s23 + $0x70] sm:$0xf] %vm3347_vm3, %v3762_v56  ;;  %v3763_v53 = vpack.c.bf16 %v3216_v12, %v3216_v12 }
 0x684   : > { %3379 = vst.msk [vmem:[%s6108_s23 + $0x7c] sm:$0xf] %vm3347_vm3, %v3765_v61 }
 0x685   : > { %3377 = vst.msk [vmem:[%s6108_s23 + $0x74] sm:$0xf] %vm3347_vm3, %v3763_v53 }
 0x686 PF: > { %s26_s21 = sadd.s32 1, %s4716_s21  }
 0x687   : > { %p23_p4 = scmp.ge.s32.totalorder %s26_s21, 6  }
 0x689   :  { %25 = sbr.rel (!%p23_p4) target bundleno = 2 (0x2), region = 114 }

// kernel: tpu_custom_call.1
= control target key start
LH: loop header
LB: loop body
LE: loop exit
PB: predicated region body
PF: predicated region fallthrough
CT: control target
= control target key end

     0   :  { %s4805_s21 = smov 0   ;;  %s6273_s0 = inlined_call_operand.vmem [shape: f32[4,256,64], index: 0, kind: input, shape index: {}]   ;;  %s6274_s1 = inlined_call_operand.vmem [shape: bf16[64,32], index: 1, kind: input, shape index: {}]   ;;  %s6275_s2 = inlined_call_operand.vmem [shape: f32[1,32], index: 2, kind: input, shape index: {}]   ;;  %s6276_s3 = inlined_call_operand.vmem [shape: bf16[64,32], index: 3, kind: input, shape index: {}]   ;;  %s6277_s4 = inlined_call_operand.vmem [shape: f32[1,32], index: 4, kind: input, shape index: {}]   ;;  %s6278_s5 = inlined_call_operand.vmem [shape: bf16[32,32], index: 5, kind: input, shape index: {}]   ;;  %s6279_s6 = inlined_call_operand.vmem [shape: f32[1,32], index: 6, kind: input, shape index: {}]   ;;  %s6280_s7 = inlined_call_operand.vmem [shape: bf16[32,32], index: 7, kind: input, shape index: {}]   ;;  %s6281_s8 = inlined_call_operand.vmem [shape: f32[1,32], index: 8, kind: input, shape index: {}]   ;;  %s6282_s9 = inlined_call_operand.vmem [shape: bf16[32,64], index: 9, kind: input, shape index: {}]   ;;  %s6283_s10 = inlined_call_operand.vmem [shape: f32[1,64], index: 10, kind: input, shape index: {}]   ;;  %s6284_s11 = inlined_call_operand.vmem [shape: bf16[64,32], index: 11, kind: input, shape index: {}]   ;;  %s6285_s12 = inlined_call_operand.vmem [shape: f32[1,32], index: 12, kind: input, shape index: {}]   ;;  %s6286_s13 = inlined_call_operand.vmem [shape: bf16[32,64], index: 13, kind: input, shape index: {}]   ;;  %s6287_s14 = inlined_call_operand.vmem [shape: bf16[32,64], index: 14, kind: input, shape index: {}]   ;;  %s6288_s15 = inlined_call_operand.vmem [shape: f32[1,64], index: 15, kind: input, shape index: {}]   ;;  %s6289_s16 = inlined_call_operand.vmem [shape: bf16[4,256,64], index: 16, kind: output, shape index: {}]  }
   0x1   :  { %6329 = sst [smem:[#allocation39_spill]] %s6273_s0 }
   0x2 LB: > { %s3435_s22 = sadd.s32 4294967295, %s4716_s21   ;;  %p3439_p0 = scmp.ge.s32.totalorder %s4716_s21, 1  ;;  %s4716_s21 = sphi %s4805_s21, %s26_s21  }
   0x3   : > { %p462_p1 = scmp.lt.s32.totalorder %s4716_s21, 5 }
   0x5   : > { %p463_p2 = pnand %p3439_p0, %p462_p1 }
   0x7   : > { %466 = sbr.rel (%p463_p2) target bundleno = 1670 (0x686), region = 84 }
   0xe   : > { %v4172_v0 = vld [vmem:[%s6276_s3] sm:$0xff]   ;;  %p512_p3 = scmp.lt.s32.totalorder %s3435_s22, 3  ;;  %v4173_v1 = vld [vmem:[%s6276_s3 + $0x8] sm:$0xff]   ;;  %v4174_v2 = vld [vmem:[%s6276_s3 + $0x10] sm:$0xff]   ;;  %s6330_s17 = sld [smem:[#allocation39_spill]]  ;;  %vm610_vm0 = vcmask 523264  }
   0xf   : > { %3926 = vmatprep.subr.bf16.mxu1 %v4172_v0  ;;  %v4175_v6 = vld [vmem:[%s6276_s3 + $0x18] sm:$0xff]   ;;  %v4176_v52 = vld [vmem:[%s6274_s1] sm:$0xff]   ;;  %v4177_v53 = vld [vmem:[%s6274_s1 + $0x8] sm:$0xff]   ;;  %v4718_v56 = vmov 0.0   ;;  %vm4719_vm1 = vmmov 0   ;;  %vm1468_vm2 = vcmask 261120  }
  0x10   : > { %s6426_s22 = smov (!%p512_p3, %s3435_s22), 3  ;;  %3927 = vmatpush3.bf16.msra.mxu1 %v4172_v0  ;;  %3886 = vmatprep.subr.bf16.mxu0 %v4176_v52  ;;  %v4178_v54 = vld [vmem:[%s6274_s1 + $0x10] sm:$0xff]   ;;  %v4179_v55 = vld [vmem:[%s6274_s1 + $0x18] sm:$0xff]   ;;  %v4180_v57 = vld [vmem:[%s6278_s5] sm:$0xff]   ;;  %vm3347_vm3 = vcmask 519168  }
  0x11   : > { %3928 = vmatprep.subr.bf16.mxu1 %v4173_v1  ;;  %s3732_s29 = sshll.u32 %s6426_s22, 8  ;;  %3887 = vmatpush3.bf16.msra.mxu0 %v4176_v52  ;;  %v4181_v58 = vld [vmem:[%s6278_s5 + $0x8] sm:$0xff]   ;;  %v4931_v59 = vld [vmem:[%s6277_s4] ss:$0 sm:$0xff]  ;;  %s3733_s19 = sshll.u32 %s6426_s22, 7 }
  0x12   : > { %3888 = vmatprep.subr.bf16.mxu0 %v4177_v53  ;;  %s6108_s23 = scalar_lea.vmem %s6289_s16, %s3733_s19 }
  0x14   : > { %s4828_s18 = scalar_lea.vmem %s6330_s17, %s3732_s29  ;;  %3929 = vmatpush3.bf16.msra.mxu1 %v4173_v1 }
  0x15   : > { %v523_v3 = vld [vmem:[%s4828_s18] sm:$0xff]  ;;  %v524_v4 = vld [vmem:[%s4828_s18 + $0x8] sm:$0xff]  ;;  %3930 = vmatprep.subr.bf16.mxu1 %v4174_v2  ;;  %v525_v7 = vld [vmem:[%s4828_s18 + $0x10] sm:$0xff]  ;;  %3889 = vmatpush3.bf16.msra.mxu0 %v4177_v53 }
  0x16   : > { %v555_v5 = vpack.c.bf16 %v524_v4, %v523_v3  ;;  %v526_v8 = vld [vmem:[%s4828_s18 + $0x18] sm:$0xff]  ;;  %v527_v9 = vld [vmem:[%s4828_s18 + $0x20] sm:$0xff]  ;;  %v528_v10 = vld [vmem:[%s4828_s18 + $0x28] sm:$0xff]  ;;  %3890 = vmatprep.subr.bf16.mxu0 %v4178_v54 }
  0x17   : > { %v4841_v11 = vpack.c.bf16 %v526_v8, %v525_v7  ;;  %v4843_v12 = vpack.c.bf16 %v528_v10, %v527_v9  ;;  %v529_v13 = vld [vmem:[%s4828_s18 + $0x30] sm:$0xff]  ;;  %v530_v14 = vld [vmem:[%s4828_s18 + $0x38] sm:$0xff]  ;;  %v531_v15 = vld [vmem:[%s4828_s18 + $0x40] sm:$0xff] }
  0x18   : > { %3934 = vmatprep.mubr.msk.bf16.mxu1 %vm610_vm0, %v555_v5  ;;  %3894 = vmatprep.mubr.msk.bf16.mxu0 %vm610_vm0, %v555_v5  ;;  %v532_v16 = vld [vmem:[%s4828_s18 + $0x48] sm:$0xff]  ;;  %v558_v17 = vpack.c.bf16 %v530_v14, %v529_v13  ;;  %v533_v19 = vld [vmem:[%s4828_s18 + $0x50] sm:$0xff]  ;;  %v534_v20 = vld [vmem:[%s4828_s18 + $0x58] sm:$0xff] }
  0x19   : > { %3931 = vmatpush3.bf16.msra.mxu1 %v4174_v2  ;;  %v559_v18 = vpack.c.bf16 %v532_v16, %v531_v15  ;;  %v535_v21 = vld [vmem:[%s4828_s18 + $0x60] sm:$0xff]  ;;  %v536_v22 = vld [vmem:[%s4828_s18 + $0x68] sm:$0xff]  ;;  %v560_v23 = vpack.c.bf16 %v534_v20, %v533_v19  ;;  %v537_v25 = vld [vmem:[%s4828_s18 + $0x70] sm:$0xff]  ;;  %3891 = vmatpush3.bf16.msra.mxu0 %v4178_v54 }
  0x1a   : > { %3932 = vmatprep.subr.bf16.mxu1 %v4175_v6  ;;  %v561_v24 = vpack.c.bf16 %v536_v22, %v535_v21  ;;  %v538_v26 = vld [vmem:[%s4828_s18 + $0x78] sm:$0xff]  ;;  %v539_v27 = vld [vmem:[%s4828_s18 + $0x80] sm:$0xff]  ;;  %v540_v28 = vld [vmem:[%s4828_s18 + $0x88] sm:$0xff]  ;;  %3892 = vmatprep.subr.bf16.mxu0 %v4179_v55 }
  0x1b   : > { %v562_v29 = vpack.c.bf16 %v538_v26, %v537_v25  ;;  %v563_v30 = vpack.c.bf16 %v540_v28, %v539_v27  ;;  %v541_v31 = vld [vmem:[%s4828_s18 + $0x90] sm:$0xff]  ;;  %v542_v32 = vld [vmem:[%s4828_s18 + $0x98] sm:$0xff]  ;;  %v543_v33 = vld [vmem:[%s4828_s18 + $0xa0] sm:$0xff] }
  0x1c   : > { %v544_v34 = vld [vmem:[%s4828_s18 + $0xa8] sm:$0xff]  ;;  %v564_v35 = vpack.c.bf16 %v542_v32, %v541_v31  ;;  %v545_v37 = vld [vmem:[%s4828_s18 + $0xb0] sm:$0xff]  ;;  %v546_v38 = vld [vmem:[%s4828_s18 + $0xb8] sm:$0xff] }
  0x1d   : > { %3933 = vmatpush3.bf16.msra.mxu1 %v4175_v6  ;;  %v565_v36 = vpack.c.bf16 %v544_v34, %v543_v33  ;;  %v547_v39 = vld [vmem:[%s4828_s18 + $0xc0] sm:$0xff]  ;;  %v548_v40 = vld [vmem:[%s4828_s18 + $0xc8] sm:$0xff]  ;;  %v566_v41 = vpack.c.bf16 %v546_v38, %v545_v37  ;;  %v549_v43 = vld [vmem:[%s4828_s18 + $0xd0] sm:$0xff]  ;;  %3893 = vmatpush3.bf16.msra.mxu0 %v4179_v55 }
  0x1e   : > { %v567_v42 = vpack.c.bf16 %v548_v40, %v547_v39  ;;  %v550_v44 = vld [vmem:[%s4828_s18 + $0xd8] sm:$0xff]  ;;  %v551_v45 = vld [vmem:[%s4828_s18 + $0xe0] sm:$0xff]  ;;  %v552_v46 = vld [vmem:[%s4828_s18 + $0xe8] sm:$0xff]  ;;  %3966 = vmatprep.subr.bf16.mxu0 %v4718_v56  ;;  %3974 = vmatprep.subr.bf16.mxu1 %v4718_v56 }
  0x1f   : > { %v568_v47 = vpack.c.bf16 %v550_v44, %v549_v43  ;;  %v569_v48 = vpack.c.bf16 %v552_v46, %v551_v45  ;;  %v553_v49 = vld [vmem:[%s4828_s18 + $0xf0] sm:$0xff]  ;;  %v554_v50 = vld [vmem:[%s4828_s18 + $0xf8] sm:$0xff] }
  0x20   : > { %3935 = vmatmul.mubr.msk.bf16.vlgmr.msra.gmra.mrb[0].mxu1 %vm610_vm0, %v4841_v11  ;;  %v570_v51 = vpack.c.bf16 %v554_v50, %v553_v49  ;;  %3895 = vmatmul.mubr.msk.bf16.vlgmr.msra.gmra.mrb[0].mxu0 %vm610_vm0, %v4841_v11 }
  0x21   : > { %3938 = vmatprep.mubr.msk.bf16.mxu1 %vm610_vm0, %v4843_v12  ;;  %3898 = vmatprep.mubr.msk.bf16.mxu0 %vm610_vm0, %v4843_v12 }
  0x22   : > { %3967 = vmatpush3.bf16.msra.mxu0 %v4180_v57 }
  0x23   : > { %3968 = vmatprep.subr.bf16.mxu0 %v4718_v56 }
  0x26   : > { %3969 = vmatpush3.bf16.msra.mxu0 %v4181_v58 }
  0x28   : > { %3939 = vmatmul.mubr.msk.bf16.gmra.mrb[4].mxu1 %vm610_vm0, %v558_v17  ;;  %3899 = vmatmul.mubr.msk.bf16.gmra.mrb[4].mxu0 %vm610_vm0, %v558_v17 }
  0x29   : > { %3942 = vmatprep.mubr.msk.bf16.mxu1 %vm610_vm0, %v559_v18  ;;  %3902 = vmatprep.mubr.msk.bf16.mxu0 %vm610_vm0, %v559_v18 }
  0x30   : > { %3943 = vmatmul.mubr.msk.bf16.gmra.mrb[8].mxu1 %vm610_vm0, %v560_v23  ;;  %3903 = vmatmul.mubr.msk.bf16.gmra.mrb[8].mxu0 %vm610_vm0, %v560_v23 }
  0x31   : > { %3946 = vmatprep.mubr.msk.bf16.mxu1 %vm610_vm0, %v561_v24  ;;  %3906 = vmatprep.mubr.msk.bf16.mxu0 %vm610_vm0, %v561_v24 }
  0x38   : > { %3947 = vmatmul.mubr.msk.bf16.gmra.mrb[12].mxu1 %vm610_vm0, %v562_v29  ;;  %3907 = vmatmul.mubr.msk.bf16.gmra.mrb[12].mxu0 %vm610_vm0, %v562_v29 }
  0x39   : > { %3950 = vmatprep.mubr.msk.bf16.mxu1 %vm610_vm0, %v563_v30  ;;  %3910 = vmatprep.mubr.msk.bf16.mxu0 %vm610_vm0, %v563_v30 }
  0x40   : > { %3951 = vmatmul.mubr.msk.bf16.gmra.mrb[16].mxu1 %vm610_vm0, %v564_v35  ;;  %3911 = vmatmul.mubr.msk.bf16.gmra.mrb[16].mxu0 %vm610_vm0, %v564_v35 }
  0x41   : > { %3954 = vmatprep.mubr.msk.bf16.mxu1 %vm610_vm0, %v565_v36  ;;  %3914 = vmatprep.mubr.msk.bf16.mxu0 %vm610_vm0, %v565_v36 }
  0x48   : > { %3955 = vmatmul.mubr.msk.bf16.gmra.mrb[20].mxu1 %vm610_vm0, %v566_v41  ;;  %3915 = vmatmul.mubr.msk.bf16.gmra.mrb[20].mxu0 %vm610_vm0, %v566_v41 }
  0x49   : > { %3958 = vmatprep.mubr.msk.bf16.mxu1 %vm610_vm0, %v567_v42  ;;  %3918 = vmatprep.mubr.msk.bf16.mxu0 %vm610_vm0, %v567_v42 }
  0x50   : > { %3959 = vmatmul.mubr.msk.bf16.gmra.mrb[24].mxu1 %vm610_vm0, %v568_v47  ;;  %3919 = vmatmul.mubr.msk.bf16.gmra.mrb[24].mxu0 %vm610_vm0, %v568_v47 }
  0x51   : > { %3962 = vmatprep.mubr.msk.bf16.mxu1 %vm610_vm0, %v569_v48  ;;  %3922 = vmatprep.mubr.msk.bf16.mxu0 %vm610_vm0, %v569_v48 }
  0x58   : > { %3963 = vmatmul.mubr.msk.bf16.gmra.mrb[28].mxu1 %vm610_vm0, %v570_v51  ;;  %3923 = vmatmul.mubr.msk.bf16.gmra.mrb[28].mxu0 %vm610_vm0, %v570_v51 }
  0x59   : > { %3970 = vmatprep.mubr.msk.bf16.mxu0 %vm4719_vm1, %v4718_v56  ;;  %3978 = vmatprep.mubr.msk.bf16.mxu1 %vm4719_vm1, %v4718_v56 }
  0xf3   : > { %v3936_v60 = vpop.f32.mrb[0].mxu1 }
  0xf4   : > { %v4934_v61 = vadd.f32 %v3936_v60, %v4931_v59  ;;  %v1117_v62 = vpop.f32.mrb[1].mxu1 }
  0xf5   : > { %v4937_v63 = vadd.f32 %v4931_v59, %v1117_v62  ;;  %v3937_v0 = vpop.f32.mrb[2].mxu1 }
  0xf6   : > { %v3520_v1 = vmul.f32 -1.442695, %v4934_v61  ;;  %v4941_v2 = vadd.f32 %v3937_v0, %v4931_v59  ;;  %v1120_v3 = vpop.f32.mrb[3].mxu1 }
  0xf7   : > { %v3518_v4 = vmul.f32 -1.442695, %v4937_v63  ;;  %v4945_v5 = vadd.f32 %v4931_v59, %v1120_v3 }
  0xf8   : > { %4194 = vpow2.f32 %v3520_v1  ;;  %v3521_v6 = vmul.f32 -1.442695, %v4941_v2 }
  0xf9   : > { %4196 = vpow2.f32 %v3518_v4  ;;  %v3519_v7 = vmul.f32 -1.442695, %v4945_v5 }
  0xfa   : > { %4198 = vpow2.f32 %v3521_v6 }
  0xfb   : > { %4200 = vpow2.f32 %v3519_v7  ;;  %v3940_v8 = vpop.f32.mrb[4].mxu1 }
  0xfc   : > { %v4950_v9 = vadd.f32 %v3940_v8, %v4931_v59  ;;  %v1133_v10 = vpop.f32.mrb[5].mxu1 }
  0xfd   : > { %v4953_v11 = vadd.f32 %v4931_v59, %v1133_v10  ;;  %v3941_v12 = vpop.f32.mrb[6].mxu1 }
  0xfe   : > { %v3524_v13 = vmul.f32 -1.442695, %v4950_v9  ;;  %v4957_v14 = vadd.f32 %v3941_v12, %v4931_v59  ;;  %v1136_v15 = vpop.f32.mrb[7].mxu1 }
  0xff   : > { %v3522_v16 = vmul.f32 -1.442695, %v4953_v11  ;;  %v4961_v17 = vadd.f32 %v4931_v59, %v1136_v15 }
 0x100   : > { %4202 = vpow2.f32 %v3524_v13  ;;  %v3525_v18 = vmul.f32 -1.442695, %v4957_v14 }
 0x101   : > { %4204 = vpow2.f32 %v3522_v16  ;;  %v3523_v19 = vmul.f32 -1.442695, %v4961_v17 }
 0x102   : > { %v4195_v20 = vpop.eup %4194  ;;  %4206 = vpow2.f32 %v3525_v18 }
 0x103   : > { %v4197_v21 = vpop.eup %4196  ;;  %v1342_v22 = vadd.f32 1.0, %v4195_v20  ;;  %4208 = vpow2.f32 %v3523_v19  ;;  %v3944_v23 = vpop.f32.mrb[8].mxu1 }
 0x104   : > { %v4199_v24 = vpop.eup %4198  ;;  %v1340_v25 = vadd.f32 1.0, %v4197_v21  ;;  %v4966_v26 = vadd.f32 %v3944_v23, %v4931_v59  ;;  %v1149_v27 = vpop.f32.mrb[9].mxu1 }
 0x105   : > { %v4201_v28 = vpop.eup %4200  ;;  %4210 = vrcp.f32 %v1342_v22  ;;  %v1343_v29 = vadd.f32 1.0, %v4199_v24  ;;  %v4969_v30 = vadd.f32 %v4931_v59, %v1149_v27  ;;  %v3945_v31 = vpop.f32.mrb[10].mxu1 }
 0x106   : > { %4212 = vrcp.f32 %v1340_v25  ;;  %v1341_v32 = vadd.f32 1.0, %v4201_v28  ;;  %v3528_v33 = vmul.f32 -1.442695, %v4966_v26  ;;  %v4973_v34 = vadd.f32 %v3945_v31, %v4931_v59  ;;  %v1152_v35 = vpop.f32.mrb[11].mxu1 }
 0x107   : > { %4214 = vrcp.f32 %v1343_v29  ;;  %v3526_v36 = vmul.f32 -1.442695, %v4969_v30  ;;  %v4977_v37 = vadd.f32 %v4931_v59, %v1152_v35 }
 0x108   : > { %4216 = vrcp.f32 %v1341_v32  ;;  %v3529_v38 = vmul.f32 -1.442695, %v4973_v34 }
 0x109   : > { %4218 = vpow2.f32 %v3528_v33  ;;  %v3527_v39 = vmul.f32 -1.442695, %v4977_v37 }
 0x10a   : > { %v4203_v40 = vpop.eup %4202  ;;  %4220 = vpow2.f32 %v3526_v36 }
 0x10b   : > { %v4205_v41 = vpop.eup %4204  ;;  %v1346_v42 = vadd.f32 1.0, %v4203_v40  ;;  %4222 = vpow2.f32 %v3529_v38  ;;  %v3948_v43 = vpop.f32.mrb[12].mxu1 }
 0x10c   : > { %v4207_v44 = vpop.eup %4206  ;;  %v1344_v45 = vadd.f32 1.0, %v4205_v41  ;;  %4224 = vpow2.f32 %v3527_v39  ;;  %v4982_v46 = vadd.f32 %v3948_v43, %v4931_v59  ;;  %v1165_v47 = vpop.f32.mrb[13].mxu1 }
 0x10d   : > { %v4209_v48 = vpop.eup %4208  ;;  %4226 = vrcp.f32 %v1346_v42  ;;  %v1347_v49 = vadd.f32 1.0, %v4207_v44  ;;  %v4985_v50 = vadd.f32 %v4931_v59, %v1165_v47  ;;  %v3949_v51 = vpop.f32.mrb[14].mxu1 }
 0x10e   : > { %4228 = vrcp.f32 %v1344_v45  ;;  %v1345_v52 = vadd.f32 1.0, %v4209_v48  ;;  %v3532_v53 = vmul.f32 -1.442695, %v4982_v46  ;;  %v4989_v54 = vadd.f32 %v3949_v51, %v4931_v59  ;;  %v1168_v55 = vpop.f32.mrb[15].mxu1 }
 0x10f   : > { %v4211_v57 = vpop.eup %4210  ;;  %4230 = vrcp.f32 %v1347_v49  ;;  %v3530_v58 = vmul.f32 -1.442695, %v4985_v50  ;;  %v4993_v60 = vadd.f32 %v4931_v59, %v1168_v55 }
 0x110   : > { %v4213_v62 = vpop.eup %4212  ;;  %v4996_v0 = vmul.f32 %v4211_v57, %v4934_v61  ;;  %4232 = vrcp.f32 %v1345_v52  ;;  %v3533_v1 = vmul.f32 -1.442695, %v4989_v54 }
 0x111   : > { %v4215_v3 = vpop.eup %4214  ;;  %v5000_v4 = vmul.f32 %v4213_v62, %v4937_v63  ;;  %4234 = vpow2.f32 %v3532_v53  ;;  %v3531_v6 = vmul.f32 -1.442695, %v4993_v60 }
 0x112   : > { %v4217_v7 = vpop.eup %4216  ;;  %4236 = vpow2.f32 %v3530_v58  ;;  %v1472_v10 = vsel %vm1468_vm2, %v4996_v0, 0.0  ;;  %v5009_v15 = vmul.f32 %v4215_v3, %v4941_v2 }
 0x113   : > { %v4219_v8 = vpop.eup %4218  ;;  %v5006_v61 = vmul.f32 %v4217_v7, %v4945_v5  ;;  %4238 = vpow2.f32 %v3533_v1  ;;  %v3952_v12 = vpop.f32.mrb[16].mxu1  ;;  %v1469_v20 = vsel %vm1468_vm2, %v5000_v4, 0.0 }
 0x114   : > { %v4221_v13 = vpop.eup %4220  ;;  %v1350_v63 = vadd.f32 1.0, %v4219_v8  ;;  %4240 = vpow2.f32 %v3531_v6  ;;  %v5012_v16 = vadd.f32 %v3952_v12, %v4931_v59  ;;  %v1181_v18 = vpop.f32.mrb[17].mxu1  ;;  %v1474_v41 = vsel %vm1468_vm2, %v5009_v15, 0.0 }
 0x115   : > { %v4223_v19 = vpop.eup %4222  ;;  %v1470_v5 = vsel %vm1468_vm2, %v5006_v61, 0.0  ;;  %v1348_v21 = vadd.f32 1.0, %v4221_v13  ;;  %v5019_v22 = vadd.f32 %v4931_v59, %v1181_v18  ;;  %v3953_v23 = vpop.f32.mrb[18].mxu1  ;;  %v4182_v13 = vld [vmem:[%s6280_s7] sm:$0xff]  }
 0x116   : > { %v4225_v2 = vpop.eup %4224  ;;  %v1471_v24 = vadd.f32 %v1470_v5, %v1469_v20  ;;  %4242 = vrcp.f32 %v1350_v63  ;;  %v1351_v25 = vadd.f32 1.0, %v4223_v19  ;;  %v3536_v27 = vmul.f32 -1.442695, %v5012_v16  ;;  %v1184_v28 = vpop.f32.mrb[19].mxu1  ;;  %3975 = vmatpush3.bf16.msra.mxu1 %v4182_v13 }
 0x117   : > { %v4227_v29 = vpop.eup %4226  ;;  %4244 = vrcp.f32 %v1348_v21  ;;  %v1349_v31 = vadd.f32 1.0, %v4225_v2  ;;  %v3534_v32 = vmul.f32 -1.442695, %v5019_v22  ;;  %v5024_v33 = vadd.f32 %v3953_v23, %v4931_v59  ;;  %3976 = vmatprep.subr.bf16.mxu1 %v4718_v56 }
 0x118   : > { %v4229_v35 = vpop.eup %4228  ;;  %v1473_v36 = vadd.f32 %v1472_v10, %v1471_v24  ;;  %v5027_v38 = vmul.f32 %v4227_v29, %v4950_v9  ;;  %4246 = vrcp.f32 %v1351_v25  ;;  %v5030_v39 = vadd.f32 %v4931_v59, %v1184_v28 }
 0x119   : > { %v4231_v40 = vpop.eup %4230  ;;  %v5035_v42 = vmul.f32 %v4229_v35, %v4953_v11  ;;  %4248 = vrcp.f32 %v1349_v31  ;;  %v3537_v43 = vmul.f32 -1.442695, %v5024_v33 }
 0x11a   : > { %v4233_v44 = vpop.eup %4232  ;;  %v1480_v45 = vsel %vm1468_vm2, %v5027_v38, 0.0  ;;  %v1475_v9 = vadd.f32 %v1474_v41, %v1473_v36  ;;  %4250 = vpow2.f32 %v3536_v27  ;;  %v3535_v11 = vmul.f32 -1.442695, %v5030_v39 }
 0x11b   : > { %v4235_v47 = vpop.eup %4234  ;;  %v1476_v48 = vsel %vm1468_vm2, %v5035_v42, 0.0  ;;  %v5043_v49 = vmul.f32 %v4233_v44, %v4961_v17  ;;  %4252 = vpow2.f32 %v3534_v32  ;;  %v3956_v51 = vpop.f32.mrb[20].mxu1  ;;  %v5047_v55 = vmul.f32 %v4231_v40, %v4957_v14 }
 0x11c   : > { %v4237_v52 = vpop.eup %4236  ;;  %v1477_v53 = vadd.f32 %v1476_v48, %v1475_v9  ;;  %v1354_v57 = vadd.f32 1.0, %v4235_v47  ;;  %4254 = vpow2.f32 %v3537_v43  ;;  %v1197_v58 = vpop.f32.mrb[21].mxu1  ;;  %v5052_v17 = vadd.f32 %v3956_v51, %v4931_v59 }
 0x11d   : > { %v4239_v62 = vpop.eup %4238  ;;  %v1478_v1 = vsel %vm1468_vm2, %v5043_v49, 0.0  ;;  %v1352_v3 = vadd.f32 1.0, %v4237_v52  ;;  %4256 = vpow2.f32 %v3535_v11  ;;  %v3957_v6 = vpop.f32.mrb[22].mxu1  ;;  %v5055_v14 = vadd.f32 %v4931_v59, %v1197_v58 }
 0x11e   : > { %v4241_v7 = vpop.eup %4240  ;;  %v1479_v8 = vadd.f32 %v1478_v1, %v1477_v53  ;;  %4258 = vrcp.f32 %v1354_v57  ;;  %v1355_v10 = vadd.f32 1.0, %v4239_v62  ;;  %v1200_v12 = vpop.f32.mrb[23].mxu1  ;;  %v3540_v18 = vmul.f32 -1.442695, %v5052_v17 }
 0x11f   : > { %4260 = vrcp.f32 %v1352_v3  ;;  %v1353_v63 = vadd.f32 1.0, %v4241_v7  ;;  %v5062_v19 = vadd.f32 %v3957_v6, %v4931_v59  ;;  %v3538_v21 = vmul.f32 -1.442695, %v5055_v14 }
 0x120   : > { %v4243_v20 = vpop.eup %4242  ;;  %v1481_v5 = vadd.f32 %v1480_v45, %v1479_v8  ;;  %4262 = vrcp.f32 %v1355_v10  ;;  %v5066_v23 = vadd.f32 %v4931_v59, %v1200_v12  ;;  %v1482_v24 = vsel %vm1468_vm2, %v5047_v55, 0.0 }
 0x121   : > { %v4245_v2 = vpop.eup %4244  ;;  %v5071_v25 = vmul.f32 %v4243_v20, %v4966_v26  ;;  %4264 = vrcp.f32 %v1353_v63  ;;  %v3541_v27 = vmul.f32 -1.442695, %v5062_v19 }
 0x122   : > { %v4247_v28 = vpop.eup %4246  ;;  %v5076_v29 = vmul.f32 %v4245_v2, %v4969_v30  ;;  %v1483_v31 = vadd.f32 %v1482_v24, %v1481_v5  ;;  %4266 = vpow2.f32 %v3540_v18  ;;  %v3539_v32 = vmul.f32 -1.442695, %v5066_v23 }
 0x123   : > { %v4249_v35 = vpop.eup %4248  ;;  %v1488_v36 = vsel %vm1468_vm2, %v5071_v25, 0.0  ;;  %4268 = vpow2.f32 %v3538_v21  ;;  %v3960_v26 = vpop.f32.mrb[24].mxu1  ;;  %v5090_v9 = vmul.f32 %v4247_v28, %v4973_v34 }
 0x124   : > { %v4251_v40 = vpop.eup %4250  ;;  %v1484_v41 = vsel %vm1468_vm2, %v5076_v29, 0.0  ;;  %v5084_v56 = vmul.f32 %v4249_v35, %v4977_v37  ;;  %4270 = vpow2.f32 %v3541_v27  ;;  %v5087_v30 = vadd.f32 %v3960_v26, %v4931_v59  ;;  %v1213_v43 = vpop.f32.mrb[25].mxu1 }
 0x125   : > { %v4253_v44 = vpop.eup %4252  ;;  %v1485_v45 = vadd.f32 %v1484_v41, %v1483_v31  ;;  %v1358_v47 = vadd.f32 1.0, %v4251_v40  ;;  %4272 = vpow2.f32 %v3539_v32  ;;  %v3961_v48 = vpop.f32.mrb[26].mxu1  ;;  %v5096_v53 = vadd.f32 %v4931_v59, %v1213_v43 }
 0x126   : > { %v4255_v11 = vpop.eup %4254  ;;  %v1486_v51 = vsel %vm1468_vm2, %v5084_v56, 0.0  ;;  %v1356_v52 = vadd.f32 1.0, %v4253_v44  ;;  %v3544_v37 = vmul.f32 -1.442695, %v5087_v30  ;;  %v1216_v57 = vpop.f32.mrb[27].mxu1  ;;  %v5099_v34 = vadd.f32 %v3961_v48, %v4931_v59 }
 0x127   : > { %v4257_v58 = vpop.eup %4256  ;;  %v1487_v62 = vadd.f32 %v1486_v51, %v1485_v45  ;;  %4274 = vrcp.f32 %v1358_v47  ;;  %v1359_v1 = vadd.f32 1.0, %v4255_v11  ;;  %v3542_v7 = vmul.f32 -1.442695, %v5096_v53 }
 0x128   : > { %v4259_v3 = vpop.eup %4258  ;;  %4276 = vrcp.f32 %v1356_v52  ;;  %v1357_v6 = vadd.f32 1.0, %v4257_v58  ;;  %v5103_v8 = vadd.f32 %v4931_v59, %v1216_v57  ;;  %v3545_v63 = vmul.f32 -1.442695, %v5099_v34 }
 0x129   : > { %v4261_v10 = vpop.eup %4260  ;;  %v1489_v12 = vadd.f32 %v1488_v36, %v1487_v62  ;;  %v5106_v13 = vmul.f32 %v4259_v3, %v4982_v46  ;;  %4278 = vrcp.f32 %v1359_v1  ;;  %v1490_v20 = vsel %vm1468_vm2, %v5090_v9, 0.0 }
 0x12a   : > { %v4263_v18 = vpop.eup %4262  ;;  %v5112_v5 = vmul.f32 %v4261_v10, %v4985_v50  ;;  %4280 = vrcp.f32 %v1357_v6  ;;  %v3543_v21 = vmul.f32 -1.442695, %v5103_v8 }
 0x12b   : > { %v4265_v2 = vpop.eup %4264  ;;  %v1496_v24 = vsel %vm1468_vm2, %v5106_v13, 0.0  ;;  %v1491_v27 = vadd.f32 %v1490_v20, %v1489_v12  ;;  %4282 = vpow2.f32 %v3544_v37  ;;  %v3964_v46 = vpop.f32.mrb[28].mxu1  ;;  %v5126_v40 = vmul.f32 %v4263_v18, %v4989_v54 }
 0x12c   : > { %v4267_v28 = vpop.eup %4266  ;;  %v1492_v31 = vsel %vm1468_vm2, %v5112_v5, 0.0  ;;  %v5120_v32 = vmul.f32 %v4265_v2, %v4993_v60  ;;  %4284 = vpow2.f32 %v3542_v7  ;;  %v5123_v50 = vadd.f32 %v3964_v46, %v4931_v59  ;;  %v1229_v35 = vpop.f32.mrb[29].mxu1 }
 0x12d   : > { %v4269_v36 = vpop.eup %4268  ;;  %v1493_v26 = vadd.f32 %v1492_v31, %v1491_v27  ;;  %v1362_v41 = vadd.f32 1.0, %v4267_v28  ;;  %4286 = vpow2.f32 %v3545_v63  ;;  %v3965_v43 = vpop.f32.mrb[30].mxu1  ;;  %v5132_v37 = vadd.f32 %v4931_v59, %v1229_v35 }
 0x12e   : > { %v4271_v44 = vpop.eup %4270  ;;  %v1494_v45 = vsel %vm1468_vm2, %v5120_v32, 0.0  ;;  %v1360_v47 = vadd.f32 1.0, %v4269_v36  ;;  %4288 = vpow2.f32 %v3543_v21  ;;  %v3548_v60 = vmul.f32 -1.442695, %v5123_v50  ;;  %v1232_v48 = vpop.f32.mrb[31].mxu1 }
 0x12f   : > { %v4273_v11 = vpop.eup %4272  ;;  %v1495_v51 = vadd.f32 %v1494_v45, %v1493_v26  ;;  %4290 = vrcp.f32 %v1362_v41  ;;  %v1363_v52 = vadd.f32 1.0, %v4271_v44  ;;  %v5135_v57 = vadd.f32 %v3965_v43, %v4931_v59  ;;  %v4183_v26 = vld [vmem:[%s6280_s7 + $0x8] sm:$0xff]  }
 0x130   : > { %4292 = vrcp.f32 %v1360_v47  ;;  %v1361_v54 = vadd.f32 1.0, %v4273_v11  ;;  %v5138_v58 = vadd.f32 %v4931_v59, %v1232_v48  ;;  %v3546_v3 = vmul.f32 -1.442695, %v5132_v37  ;;  %3977 = vmatpush3.bf16.msra.mxu1 %v4183_v26 }
 0x131   : > { %v4275_v62 = vpop.eup %4274  ;;  %v1497_v1 = vadd.f32 %v1496_v24, %v1495_v51  ;;  %4294 = vrcp.f32 %v1363_v52  ;;  %v1498_v7 = vsel %vm1468_vm2, %v5126_v40, 0.0  ;;  %v3549_v10 = vmul.f32 -1.442695, %v5135_v57 }
 0x132   : > { %v4277_v6 = vpop.eup %4276  ;;  %4296 = vrcp.f32 %v1361_v54  ;;  %v3547_v12 = vmul.f32 -1.442695, %v5138_v58  ;;  %v5149_v2 = vmul.f32 %v4275_v62, %v5012_v16 }
 0x133   : > { %v4279_v63 = vpop.eup %4278  ;;  %v5146_v18 = vmul.f32 %v4277_v6, %v5019_v22  ;;  %v1499_v59 = vadd.f32 %v1498_v7, %v1497_v1  ;;  %4298 = vpow2.f32 %v3548_v60 }
 0x134   : > { %v4281_v20 = vpop.eup %4280  ;;  %4300 = vpow2.f32 %v3546_v3  ;;  %v5157_v35 = vmul.f32 %v4279_v63, %v5024_v33  ;;  %v1504_v45 = vsel %vm1468_vm2, %v5149_v2, 0.0 }
 0x135   : > { %v4283_v21 = vpop.eup %4282  ;;  %v1500_v24 = vsel %vm1468_vm2, %v5146_v18, 0.0  ;;  %v5154_v27 = vmul.f32 %v4281_v20, %v5030_v39  ;;  %4302 = vpow2.f32 %v3549_v10 }
 0x136   : > { %v4285_v46 = vpop.eup %4284  ;;  %v1501_v28 = vadd.f32 %v1500_v24, %v1499_v59  ;;  %v1366_v31 = vadd.f32 1.0, %v4283_v21  ;;  %4304 = vpow2.f32 %v3547_v12  ;;  %v1506_v11 = vsel %vm1468_vm2, %v5157_v35, 0.0 }
 0x137   : > { %v4287_v22 = vpop.eup %4286  ;;  %v1502_v36 = vsel %vm1468_vm2, %v5154_v27, 0.0  ;;  %v1364_v16 = vadd.f32 1.0, %v4285_v46 }
 0x138   : > { %v4289_v41 = vpop.eup %4288  ;;  %v1503_v39 = vadd.f32 %v1502_v36, %v1501_v28  ;;  %4306 = vrcp.f32 %v1366_v31  ;;  %v1367_v43 = vadd.f32 1.0, %v4287_v22 }
 0x139   : > { %v4291_v44 = vpop.eup %4290  ;;  %4308 = vrcp.f32 %v1364_v16  ;;  %v1365_v47 = vadd.f32 1.0, %v4289_v41 }
 0x13a   : > { %v4293_v33 = vpop.eup %4292  ;;  %v1505_v60 = vadd.f32 %v1504_v45, %v1503_v39  ;;  %4310 = vrcp.f32 %v1367_v43  ;;  %v5172_v1 = vmul.f32 %v4291_v44, %v5052_v17 }
 0x13b   : > { %v4295_v48 = vpop.eup %4294  ;;  %v5169_v51 = vmul.f32 %v4293_v33, %v5055_v14  ;;  %4312 = vrcp.f32 %v1365_v47 }
 0x13c   : > { %v4297_v52 = vpop.eup %4296  ;;  %v1507_v54 = vadd.f32 %v1506_v11, %v1505_v60  ;;  %v5180_v14 = vmul.f32 %v4295_v48, %v5062_v19  ;;  %v1512_v46 = vsel %vm1468_vm2, %v5172_v1, 0.0 }
 0x13d   : > { %v4299_v62 = vpop.eup %4298  ;;  %v1508_v3 = vsel %vm1468_vm2, %v5169_v51, 0.0  ;;  %v5177_v6 = vmul.f32 %v4297_v52, %v5066_v23 }
 0x13e   : > { %v4301_v7 = vpop.eup %4300  ;;  %v1509_v10 = vadd.f32 %v1508_v3, %v1507_v54  ;;  %v1370_v12 = vadd.f32 1.0, %v4299_v62  ;;  %v1514_v19 = vsel %vm1468_vm2, %v5180_v14, 0.0 }
 0x13f   : > { %v4303_v63 = vpop.eup %4302  ;;  %v1510_v59 = vsel %vm1468_vm2, %v5177_v6, 0.0  ;;  %v1368_v20 = vadd.f32 1.0, %v4301_v7 }
 0x140   : > { %v4305_v21 = vpop.eup %4304  ;;  %v1511_v17 = vadd.f32 %v1510_v59, %v1509_v10  ;;  %4314 = vrcp.f32 %v1370_v12  ;;  %v1371_v24 = vadd.f32 1.0, %v4303_v63 }
 0x141   : > { %4316 = vrcp.f32 %v1368_v20  ;;  %v1369_v23 = vadd.f32 1.0, %v4305_v21 }
 0x142   : > { %v4307_v28 = vpop.eup %4306  ;;  %v1513_v31 = vadd.f32 %v1512_v46, %v1511_v17  ;;  %4318 = vrcp.f32 %v1371_v24  ;;  %v3896_v46 = vpop.f32.mrb[0].mxu0 }
 0x143   : > { %v4309_v22 = vpop.eup %4308  ;;  %4320 = vrcp.f32 %v1369_v23  ;;  %v5192_v39 = vmul.f32 %v4307_v28, %v5087_v30 }
 0x144   : > { %v4311_v36 = vpop.eup %4310  ;;  %v5189_v16 = vmul.f32 %v4309_v22, %v5096_v53  ;;  %v1515_v26 = vadd.f32 %v1514_v19, %v1513_v31  ;;  %v693_v31 = vpop.f32.mrb[1].mxu0 }
 0x145   : > { %v4313_v41 = vpop.eup %4312  ;;  %v5200_v47 = vmul.f32 %v4311_v36, %v5099_v34  ;;  %v1520_v48 = vsel %vm1468_vm2, %v5192_v39, 0.0  ;;  %v3897_v19 = vpop.f32.mrb[2].mxu0 }
 0x146   : > { %v1516_v43 = vsel %vm1468_vm2, %v5189_v16, 0.0  ;;  %v5197_v44 = vmul.f32 %v4313_v41, %v5103_v8 }
 0x147   : > { %v1517_v45 = vadd.f32 %v1516_v43, %v1515_v26  ;;  %v1522_v54 = vsel %vm1468_vm2, %v5200_v47, 0.0  ;;  %v696_v43 = vpop.f32.mrb[3].mxu0 }
 0x148   : > { %v1518_v33 = vsel %vm1468_vm2, %v5197_v44, 0.0 }
 0x149   : > { %v1519_v53 = vadd.f32 %v1518_v33, %v1517_v45 }
 0x14a   : > { %v4315_v60 = vpop.eup %4314 }
 0x14b   : > { %v4317_v30 = vpop.eup %4316  ;;  %v1521_v11 = vadd.f32 %v1520_v48, %v1519_v53  ;;  %v5212_v3 = vmul.f32 %v4315_v60, %v5123_v50 }
 0x14c   : > { %v4319_v52 = vpop.eup %4318  ;;  %v5209_v8 = vmul.f32 %v4317_v30, %v5132_v37 }
 0x14d   : > { %v4321_v62 = vpop.eup %4320  ;;  %v1523_v34 = vadd.f32 %v1522_v54, %v1521_v11  ;;  %6331 = vst [vmem:[#allocation2_spill] sm:$0xff] %v5212_v3  ;;  %v5220_v63 = vmul.f32 %v4319_v52, %v5135_v57  ;;  %v1528_v20 = vsel %vm1468_vm2, %v5212_v3, 0.0  ;;  %v3900_v11 = vpop.f32.mrb[4].mxu0 }
 0x14e   : > { %v1524_v7 = vsel %vm1468_vm2, %v5209_v8, 0.0  ;;  %v5217_v10 = vmul.f32 %v4321_v62, %v5138_v58  ;;  %v5231_v58 = vld [vmem:[%s6275_s2] ss:$0 sm:$0xff]  ;;  %v709_v62 = vpop.f32.mrb[5].mxu0 }
 0x14f   : > { %v1525_v12 = vadd.f32 %v1524_v7, %v1523_v34  ;;  %6332 = vst [vmem:[#allocation3_spill] sm:$0xff] %v5220_v63  ;;  %v1530_v50 = vsel %vm1468_vm2, %v5220_v63, 0.0  ;;  %v5234_v28 = vadd.f32 %v3896_v46, %v5231_v58  ;;  %v5237_v22 = vadd.f32 %v5231_v58, %v693_v31  ;;  %v3901_v7 = vpop.f32.mrb[6].mxu0 }
 0x150   : > { %v1526_v59 = vsel %vm1468_vm2, %v5217_v10, 0.0  ;;  %v5241_v41 = vadd.f32 %v3897_v19, %v5231_v58  ;;  %v5245_v33 = vadd.f32 %v5231_v58, %v696_v43  ;;  %v5250_v54 = vadd.f32 %v3900_v11, %v5231_v58 }
 0x151   : > { %v1527_v37 = vadd.f32 %v1526_v59, %v1525_v12  ;;  %v3467_v26 = vmul.f32 -1.442695, %v5234_v28  ;;  %v3465_v45 = vmul.f32 -1.442695, %v5237_v22  ;;  %v5253_v34 = vadd.f32 %v5231_v58, %v709_v62 }
 0x152   : > { %v3468_v60 = vmul.f32 -1.442695, %v5241_v41  ;;  %v3466_v48 = vmul.f32 -1.442695, %v5245_v33  ;;  %v3471_v59 = vmul.f32 -1.442695, %v5250_v54 }
 0x153   : > { %v1529_v21 = vadd.f32 %v1528_v20, %v1527_v37  ;;  %4322 = vpow2.f32 %v3467_v26  ;;  %v5257_v37 = vadd.f32 %v3901_v7, %v5231_v58  ;;  %v712_v20 = vpop.f32.mrb[7].mxu0 }
 0x154   : > { %4324 = vpow2.f32 %v3465_v45  ;;  %v3904_v31 = vpop.f32.mrb[8].mxu0 }
 0x155   : > { %v1531_v17 = vadd.f32 %v1530_v50, %v1529_v21  ;;  %4326 = vpow2.f32 %v3468_v60  ;;  %v3469_v21 = vmul.f32 -1.442695, %v5253_v34  ;;  %v5261_v50 = vadd.f32 %v5231_v58, %v712_v20  ;;  %v725_v43 = vpop.f32.mrb[9].mxu0 }
 0x156   : > { %4328 = vpow2.f32 %v3466_v48  ;;  %v5267_v26 = vadd.f32 %v3904_v31, %v5231_v58  ;;  %v5270_v60 = vadd.f32 %v5231_v58, %v725_v43  ;;  %v3905_v48 = vpop.f32.mrb[10].mxu0 }
 0x157   : > { %v1532_v24 = vrot.slane %v1531_v17, 4  ;;  %4330 = vpow2.f32 %v3471_v59  ;;  %v728_v62 = vpop.f32.mrb[11].mxu0 }
 0x158   : > { %4332 = vpow2.f32 %v3469_v21  ;;  %v3475_v11 = vmul.f32 -1.442695, %v5267_v26  ;;  %v3473_v7 = vmul.f32 -1.442695, %v5270_v60 }
 0x159   : > { %v1533_v57 = vadd.f32 %v1532_v24, %v1531_v17  ;;  %v3472_v17 = vmul.f32 -1.442695, %v5257_v37  ;;  %v3470_v24 = vmul.f32 -1.442695, %v5261_v50 }
 0x15b   : > { %v1534_v23 = vrot.slane %v1533_v57, 2  ;;  %4334 = vpow2.f32 %v3472_v17 }
 0x15c   : > { %4336 = vpow2.f32 %v3470_v24 }
 0x15d   : > { %v1535_v36 = vadd.f32 %v1534_v23, %v1533_v57  ;;  %v4323_v57 = vpop.eup %4322 }
 0x15e   : > { %v4325_v46 = vpop.eup %4324  ;;  %v918_v23 = vadd.f32 1.0, %v4323_v57  ;;  %v3908_v57 = vpop.f32.mrb[12].mxu0 }
 0x15f   : > { %v1536_v53 = vrot.slane %v1535_v36, 1  ;;  %v4327_v19 = vpop.eup %4326  ;;  %v5283_v31 = vadd.f32 %v3908_v57, %v5231_v58 }
 0x160   : > { %v4329_v45 = vpop.eup %4328  ;;  %4338 = vrcp.f32 %v918_v23 }
 0x161   : > { %v1537_v30 = vadd.f32 %v1536_v53, %v1535_v36  ;;  %v916_v36 = vadd.f32 1.0, %v4325_v46  ;;  %v919_v53 = vadd.f32 1.0, %v4327_v19  ;;  %v4331_v21 = vpop.eup %4330  ;;  %v741_v19 = vpop.f32.mrb[13].mxu0 }
 0x162   : > { %v4333_v17 = vpop.eup %4332  ;;  %v922_v24 = vadd.f32 1.0, %v4331_v21 }
 0x163   : > { %v1539_v52 = vmul.f32 0.00390625, %v1537_v30  ;;  %4340 = vrcp.f32 %v916_v36  ;;  %v917_v30 = vadd.f32 1.0, %v4329_v45  ;;  %v920_v23 = vadd.f32 1.0, %v4333_v17 }
 0x164   : > { %4342 = vrcp.f32 %v919_v53  ;;  %v5286_v45 = vadd.f32 %v5231_v58, %v741_v19  ;;  %v3909_v53 = vpop.f32.mrb[14].mxu0 }
 0x165   : > { %v1540_v12 = vpack.c.bf16 %v1539_v52, %v1539_v52  ;;  %v5274_v52 = vadd.f32 %v3905_v48, %v5231_v58  ;;  %4344 = vrcp.f32 %v917_v30  ;;  %v4335_v46 = vpop.eup %4334  ;;  %v3479_v30 = vmul.f32 -1.442695, %v5283_v31 }
 0x166   : > { %4346 = vpow2.f32 %v3475_v11  ;;  %v4337_v36 = vpop.eup %4336  ;;  %v923_v43 = vadd.f32 1.0, %v4335_v46  ;;  %v5290_v11 = vadd.f32 %v3909_v53, %v5231_v58 }
 0x167   : > { %3971 = vmatmul.mubr.msk.bf16.vlgmr.msra.gmra.mrb[32].mxu0 %vm1468_vm2, %v1540_v12  ;;  %v5278_v12 = vadd.f32 %v5231_v58, %v728_v62  ;;  %v3476_v59 = vmul.f32 -1.442695, %v5274_v52  ;;  %4348 = vpow2.f32 %v3473_v7  ;;  %v921_v48 = vadd.f32 1.0, %v4337_v36  ;;  %v744_v62 = vpop.f32.mrb[15].mxu0 }
 0x169   : > { %v3474_v20 = vmul.f32 -1.442695, %v5278_v12  ;;  %4350 = vpow2.f32 %v3476_v59  ;;  %v3477_v59 = vmul.f32 -1.442695, %v5286_v45 }
 0x16a   : > { %v4339_v7 = vpop.eup %4338 }
 0x16b   : > { %4352 = vpow2.f32 %v3474_v20  ;;  %v5294_v20 = vadd.f32 %v5231_v58, %v744_v62  ;;  %v5297_v17 = vmul.f32 %v4339_v7, %v5234_v28  ;;  %v3912_v28 = vpop.f32.mrb[16].mxu0 }
 0x16c   : > { %4354 = vrcp.f32 %v922_v24  ;;  %v3480_v24 = vmul.f32 -1.442695, %v5290_v11  ;;  %v757_v7 = vpop.f32.mrb[17].mxu0 }
 0x16d   : > { %4356 = vrcp.f32 %v920_v23  ;;  %v4341_v21 = vpop.eup %4340  ;;  %6333 = vst [vmem:[#allocation4_spill] sm:$0xff] %v5297_v17  ;;  %v3478_v23 = vmul.f32 -1.442695, %v5294_v20 }
 0x16e   : > { %4358 = vrcp.f32 %v923_v43  ;;  %v4343_v57 = vpop.eup %4342  ;;  %v5301_v46 = vmul.f32 %v4341_v21, %v5237_v22 }
 0x16f   : > { %4360 = vrcp.f32 %v921_v48  ;;  %v4345_v19 = vpop.eup %4344  ;;  %v5305_v36 = vmul.f32 %v4343_v57, %v5241_v41 }
 0x170   : > { %6334 = vst [vmem:[#allocation5_spill] sm:$0xff] %v5301_v46  ;;  %4362 = vpow2.f32 %v3479_v30  ;;  %v4347_v43 = vpop.eup %4346  ;;  %v5308_v53 = vmul.f32 %v4345_v19, %v5245_v33  ;;  %v5313_v30 = vadd.f32 %v3912_v28, %v5231_v58  ;;  %v5318_v33 = vadd.f32 %v5231_v58, %v757_v7 }
 0x171   : > { %6335 = vst [vmem:[#allocation6_spill] sm:$0xff] %v5305_v36  ;;  %4364 = vpow2.f32 %v3477_v59  ;;  %v4349_v48 = vpop.eup %4348  ;;  %v926_v22 = vadd.f32 1.0, %v4347_v43 }
 0x172   : > { %6336 = vst [vmem:[#allocation7_spill] sm:$0xff] %v5308_v53  ;;  %4366 = vpow2.f32 %v3480_v24  ;;  %v924_v59 = vadd.f32 1.0, %v4349_v48  ;;  %v3913_v24 = vpop.f32.mrb[18].mxu0  ;;  %v3483_v62 = vmul.f32 -1.442695, %v5313_v30 }
 0x173   : > { %4368 = vpow2.f32 %v3478_v23  ;;  %v4351_v21 = vpop.eup %4350  ;;  %v5322_v23 = vadd.f32 %v3913_v24, %v5231_v58  ;;  %v760_v43 = vpop.f32.mrb[19].mxu0  ;;  %v3481_v36 = vmul.f32 -1.442695, %v5318_v33 }
 0x174   : > { %4370 = vrcp.f32 %v926_v22  ;;  %v927_v19 = vadd.f32 1.0, %v4351_v21  ;;  %v5326_v48 = vadd.f32 %v5231_v58, %v760_v43 }
 0x175   : > { %v4353_v57 = vpop.eup %4352  ;;  %4372 = vrcp.f32 %v924_v59  ;;  %v3484_v22 = vmul.f32 -1.442695, %v5322_v23 }
 0x176   : > { %v4355_v28 = vpop.eup %4354  ;;  %v925_v17 = vadd.f32 1.0, %v4353_v57  ;;  %4374 = vrcp.f32 %v927_v19  ;;  %v3482_v59 = vmul.f32 -1.442695, %v5326_v48 }
 0x177   : > { %v4357_v7 = vpop.eup %4356  ;;  %v5329_v41 = vmul.f32 %v4355_v28, %v5250_v54  ;;  %v3916_v54 = vpop.f32.mrb[20].mxu0 }
 0x178   : > { %v4359_v21 = vpop.eup %4358  ;;  %v5333_v24 = vmul.f32 %v4357_v7, %v5253_v34  ;;  %4376 = vrcp.f32 %v925_v17  ;;  %v5345_v17 = vadd.f32 %v3916_v54, %v5231_v58  ;;  %v773_v7 = vpop.f32.mrb[21].mxu0 }
 0x179   : > { %6337 = vst [vmem:[#allocation8_spill] sm:$0xff] %v5329_v41  ;;  %v4361_v57 = vpop.eup %4360  ;;  %v5337_v46 = vmul.f32 %v4359_v21, %v5257_v37  ;;  %4378 = vpow2.f32 %v3483_v62 }
 0x17a   : > { %6338 = vst [vmem:[#allocation9_spill] sm:$0xff] %v5333_v24  ;;  %v4363_v43 = vpop.eup %4362  ;;  %v5340_v53 = vmul.f32 %v4361_v57, %v5261_v50  ;;  %4380 = vpow2.f32 %v3481_v36  ;;  %v5350_v50 = vadd.f32 %v5231_v58, %v773_v7  ;;  %v3917_v36 = vpop.f32.mrb[22].mxu0 }
 0x17b   : > { %6339 = vst [vmem:[#allocation10_spill] sm:$0xff] %v5337_v46  ;;  %v4365_v19 = vpop.eup %4364  ;;  %v930_v34 = vadd.f32 1.0, %v4363_v43  ;;  %4382 = vpow2.f32 %v3484_v22  ;;  %v3487_v43 = vmul.f32 -1.442695, %v5345_v17  ;;  %v5354_v22 = vadd.f32 %v3917_v36, %v5231_v58  ;;  %v776_v54 = vpop.f32.mrb[23].mxu0 }
 0x17c   : > { %6340 = vst [vmem:[#allocation11_spill] sm:$0xff] %v5340_v53  ;;  %v4367_v63 = vpop.eup %4366  ;;  %v928_v62 = vadd.f32 1.0, %v4365_v19  ;;  %4384 = vpow2.f32 %v3482_v59  ;;  %v3485_v41 = vmul.f32 -1.442695, %v5350_v50  ;;  %v5358_v19 = vadd.f32 %v5231_v58, %v776_v54 }
 0x17d   : > { %v4369_v21 = vpop.eup %4368  ;;  %4386 = vrcp.f32 %v930_v34  ;;  %v931_v57 = vadd.f32 1.0, %v4367_v63  ;;  %v3488_v7 = vmul.f32 -1.442695, %v5354_v22 }
 0x17e   : > { %4388 = vrcp.f32 %v928_v62  ;;  %v929_v28 = vadd.f32 1.0, %v4369_v21  ;;  %v4371_v59 = vpop.eup %4370  ;;  %v3486_v34 = vmul.f32 -1.442695, %v5358_v19 }
 0x17f   : > { %4390 = vrcp.f32 %v931_v57  ;;  %v4373_v37 = vpop.eup %4372  ;;  %v5362_v63 = vmul.f32 %v4371_v59, %v5267_v26  ;;  %v3920_v57 = vpop.f32.mrb[24].mxu0 }
 0x180   : > { %4392 = vrcp.f32 %v929_v28  ;;  %v4375_v36 = vpop.eup %4374  ;;  %v5366_v62 = vmul.f32 %v4373_v37, %v5270_v60  ;;  %v5375_v26 = vadd.f32 %v3920_v57, %v5231_v58  ;;  %v789_v28 = vpop.f32.mrb[25].mxu0 }
 0x181   : > { %6341 = vst [vmem:[#allocation12_spill] sm:$0xff] %v5362_v63  ;;  %4394 = vpow2.f32 %v3487_v43  ;;  %v5369_v54 = vmul.f32 %v4375_v36, %v5274_v52  ;;  %v5380_v52 = vadd.f32 %v5231_v58, %v789_v28 }
 0x182   : > { %6342 = vst [vmem:[#allocation13_spill] sm:$0xff] %v5366_v62  ;;  %v4377_v21 = vpop.eup %4376  ;;  %4396 = vpow2.f32 %v3485_v41  ;;  %v3921_v41 = vpop.f32.mrb[26].mxu0  ;;  %v3491_v60 = vmul.f32 -1.442695, %v5375_v26 }
 0x183   : > { %6343 = vst [vmem:[#allocation14_spill] sm:$0xff] %v5369_v54  ;;  %v4379_v46 = vpop.eup %4378  ;;  %v5372_v24 = vmul.f32 %v4377_v21, %v5278_v12  ;;  %4398 = vpow2.f32 %v3488_v7  ;;  %v5385_v7 = vadd.f32 %v3921_v41, %v5231_v58  ;;  %v792_v21 = vpop.f32.mrb[27].mxu0  ;;  %v3489_v63 = vmul.f32 -1.442695, %v5380_v52 }
 0x184   : > { %v4381_v59 = vpop.eup %4380  ;;  %v934_v37 = vadd.f32 1.0, %v4379_v46  ;;  %4400 = vpow2.f32 %v3486_v34  ;;  %v5389_v46 = vadd.f32 %v5231_v58, %v792_v21 }
 0x185   : > { %6344 = vst [vmem:[#allocation15_spill] sm:$0xff] %v5372_v24  ;;  %v4383_v43 = vpop.eup %4382  ;;  %v932_v36 = vadd.f32 1.0, %v4381_v59  ;;  %v3492_v41 = vmul.f32 -1.442695, %v5385_v7 }
 0x186   : > { %v4385_v57 = vpop.eup %4384  ;;  %4402 = vrcp.f32 %v934_v37  ;;  %v935_v53 = vadd.f32 1.0, %v4383_v43  ;;  %v3490_v43 = vmul.f32 -1.442695, %v5389_v46 }
 0x187   : > { %v4387_v34 = vpop.eup %4386  ;;  %4404 = vrcp.f32 %v932_v36  ;;  %v933_v28 = vadd.f32 1.0, %v4385_v57  ;;  %v3924_v57 = vpop.f32.mrb[28].mxu0 }
 0x188   : > { %v4389_v54 = vpop.eup %4388  ;;  %v5393_v59 = vmul.f32 %v4387_v34, %v5283_v31  ;;  %4406 = vrcp.f32 %v935_v53  ;;  %v5407_v53 = vadd.f32 %v3924_v57, %v5231_v58  ;;  %v805_v34 = vpop.f32.mrb[29].mxu0 }
 0x189   : > { %v4391_v12 = vpop.eup %4390  ;;  %v5397_v37 = vmul.f32 %v4389_v54, %v5286_v45  ;;  %4408 = vrcp.f32 %v933_v28 }
 0x18a   : > { %6345 = vst [vmem:[#allocation16_spill] sm:$0xff] %v5393_v59  ;;  %v4393_v21 = vpop.eup %4392  ;;  %v5401_v36 = vmul.f32 %v4391_v12, %v5290_v11  ;;  %4410 = vpow2.f32 %v3491_v60  ;;  %v5412_v11 = vadd.f32 %v5231_v58, %v805_v34  ;;  %v3925_v60 = vpop.f32.mrb[30].mxu0  ;;  %v3495_v3 = vmul.f32 -1.442695, %v5407_v53 }
 0x18b   : > { %6346 = vst [vmem:[#allocation17_spill] sm:$0xff] %v5397_v37  ;;  %v4395_v62 = vpop.eup %4394  ;;  %v5404_v31 = vmul.f32 %v4393_v21, %v5294_v20  ;;  %4412 = vpow2.f32 %v3489_v63  ;;  %v808_v63 = vpop.f32.mrb[31].mxu0  ;;  %v5418_v54 = vadd.f32 %v3925_v60, %v5231_v58 }
 0x18c   : > { %6347 = vst [vmem:[#allocation18_spill] sm:$0xff] %v5401_v36  ;;  %v4397_v45 = vpop.eup %4396  ;;  %v938_v28 = vadd.f32 1.0, %v4395_v62  ;;  %4414 = vpow2.f32 %v3492_v41  ;;  %v3493_v41 = vmul.f32 -1.442695, %v5412_v11  ;;  %v5422_v34 = vadd.f32 %v5231_v58, %v808_v63 }
 0x18d   : > { %6348 = vst [vmem:[#allocation19_spill] sm:$0xff] %v5404_v31  ;;  %v4399_v12 = vpop.eup %4398  ;;  %v936_v21 = vadd.f32 1.0, %v4397_v45  ;;  %4416 = vpow2.f32 %v3490_v43  ;;  %v3496_v43 = vmul.f32 -1.442695, %v5418_v54 }
 0x18e   : > { %v4401_v57 = vpop.eup %4400  ;;  %4418 = vrcp.f32 %v938_v28  ;;  %v939_v24 = vadd.f32 1.0, %v4399_v12  ;;  %v3494_v12 = vmul.f32 -1.442695, %v5422_v34 }
 0x18f   : > { %4420 = vrcp.f32 %v936_v21  ;;  %v937_v62 = vadd.f32 1.0, %v4401_v57 }
 0x190   : > { %v4403_v59 = vpop.eup %4402  ;;  %4422 = vrcp.f32 %v939_v24 }
 0x191   : > { %v4405_v45 = vpop.eup %4404  ;;  %v5426_v28 = vmul.f32 %v4403_v59, %v5313_v30  ;;  %4424 = vrcp.f32 %v937_v62 }
 0x192   : > { %v4407_v60 = vpop.eup %4406  ;;  %v5430_v21 = vmul.f32 %v4405_v45, %v5318_v33  ;;  %4426 = vpow2.f32 %v3495_v3 }
 0x193   : > { %6349 = vst [vmem:[#allocation20_spill] sm:$0xff] %v5426_v28  ;;  %v4409_v57 = vpop.eup %4408  ;;  %v5433_v58 = vmul.f32 %v4407_v60, %v5322_v23  ;;  %4428 = vpow2.f32 %v3493_v41 }
 0x194   : > { %6350 = vst [vmem:[#allocation21_spill] sm:$0xff] %v5430_v21  ;;  %v4411_v24 = vpop.eup %4410  ;;  %v5436_v63 = vmul.f32 %v4409_v57, %v5326_v48  ;;  %4430 = vpow2.f32 %v3496_v43 }
 0x195   : > { %6351 = vst [vmem:[#allocation22_spill] sm:$0xff] %v5433_v58  ;;  %v4413_v30 = vpop.eup %4412  ;;  %v942_v62 = vadd.f32 1.0, %v4411_v24  ;;  %4432 = vpow2.f32 %v3494_v12 }
 0x196   : > { %6352 = vst [vmem:[#allocation23_spill] sm:$0xff] %v5436_v63  ;;  %v4415_v20 = vpop.eup %4414  ;;  %v940_v33 = vadd.f32 1.0, %v4413_v30 }
 0x197   : > { %v4417_v45 = vpop.eup %4416  ;;  %4434 = vrcp.f32 %v942_v62  ;;  %v943_v23 = vadd.f32 1.0, %v4415_v20 }
 0x198   : > { %v4419_v41 = vpop.eup %4418  ;;  %4436 = vrcp.f32 %v940_v33  ;;  %v941_v60 = vadd.f32 1.0, %v4417_v45 }
 0x199   : > { %v4421_v48 = vpop.eup %4420  ;;  %v5443_v43 = vmul.f32 %v4419_v41, %v5345_v17  ;;  %4438 = vrcp.f32 %v943_v23 }
 0x19a   : > { %v4423_v57 = vpop.eup %4422  ;;  %v5446_v24 = vmul.f32 %v4421_v48, %v5350_v50  ;;  %4440 = vrcp.f32 %v941_v60 }
 0x19b   : > { %6353 = vst [vmem:[#allocation24_spill] sm:$0xff] %v5443_v43  ;;  %v4425_v12 = vpop.eup %4424  ;;  %v5449_v59 = vmul.f32 %v4423_v57, %v5354_v22 }
 0x19c   : > { %6354 = vst [vmem:[#allocation25_spill] sm:$0xff] %v5446_v24  ;;  %v4427_v30 = vpop.eup %4426  ;;  %v5452_v20 = vmul.f32 %v4425_v12, %v5358_v19 }
 0x19d   : > { %6355 = vst [vmem:[#allocation26_spill] sm:$0xff] %v5449_v59  ;;  %v4429_v62 = vpop.eup %4428  ;;  %v946_v17 = vadd.f32 1.0, %v4427_v30 }
 0x19e   : > { %6356 = vst [vmem:[#allocation27_spill] sm:$0xff] %v5452_v20  ;;  %v4431_v45 = vpop.eup %4430  ;;  %v944_v50 = vadd.f32 1.0, %v4429_v62 }
 0x19f   : > { %v4433_v41 = vpop.eup %4432  ;;  %4442 = vrcp.f32 %v946_v17  ;;  %v947_v60 = vadd.f32 1.0, %v4431_v45 }
 0x1a0   : > { %4444 = vrcp.f32 %v944_v50  ;;  %v945_v22 = vadd.f32 1.0, %v4433_v41 }
 0x1a1   : > { %v4435_v48 = vpop.eup %4434  ;;  %4446 = vrcp.f32 %v947_v60 }
 0x1a2   : > { %v4437_v57 = vpop.eup %4436  ;;  %v5459_v19 = vmul.f32 %v4435_v48, %v5375_v26  ;;  %4448 = vrcp.f32 %v945_v22 }
 0x1a3   : > { %v4439_v12 = vpop.eup %4438  ;;  %v5462_v30 = vmul.f32 %v4437_v57, %v5380_v52 }
 0x1a4   : > { %6357 = vst [vmem:[#allocation28_spill] sm:$0xff] %v5459_v19  ;;  %v4441_v33 = vpop.eup %4440  ;;  %v5465_v23 = vmul.f32 %v4439_v12, %v5385_v7 }
 0x1a5   : > { %6358 = vst [vmem:[#allocation29_spill] sm:$0xff] %v5462_v30  ;;  %v5468_v62 = vmul.f32 %v4441_v33, %v5389_v46 }
 0x1a6   : > { %6359 = vst [vmem:[#allocation30_spill] sm:$0xff] %v5465_v23 }
 0x1a7   : > { %6360 = vst [vmem:[#allocation31_spill] sm:$0xff] %v5468_v62 }
 0x1a9   : > { %v4443_v26 = vpop.eup %4442 }
 0x1aa   : > { %v4445_v50 = vpop.eup %4444  ;;  %v5475_v41 = vmul.f32 %v4443_v26, %v5407_v53  ;;  %v1545_v53 = vld [vmem:[%s6279_s6] sm:$0x1] }
 0x1ab   : > { %v4447_v52 = vpop.eup %4446  ;;  %v5478_v60 = vmul.f32 %v4445_v50, %v5412_v11 }
 0x1ac   : > { %6361 = vst [vmem:[#allocation32_spill] sm:$0xff] %v5475_v41  ;;  %v4449_v7 = vpop.eup %4448  ;;  %v5481_v22 = vmul.f32 %v4447_v52, %v5418_v54 }
 0x1ad   : > { %6362 = vst [vmem:[#allocation33_spill] sm:$0xff] %v5478_v60  ;;  %v5484_v46 = vmul.f32 %v4449_v7, %v5422_v34  ;;  %v4184_v34 = vld [vmem:[%s6282_s9] sm:$0xff]   ;;  %v4185_v7 = vld [vmem:[%s6282_s9 + $0x8] sm:$0xff]  }
 0x1ae   : > { %6363 = vst [vmem:[#allocation34_spill] sm:$0xff] %v5481_v22  ;;  %3982 = vmatprep.subr.bf16.mxu1 %v4184_v34 }
 0x1af   : > { %6364 = vst [vmem:[#allocation35_spill] sm:$0xff] %v5484_v46 }
 0x23a   : > { %v1595_v57 = vpop.f32.mrb[32].mxu0 }
 0x23b   : > { %v1596_v11 = vadd.f32 %v1595_v57, %v1545_v53  ;;  %v3972_v12 = vpop.f32.mrb[33].mxu0  ;;  %v4186_v53 = vld [vmem:[%s6284_s11] sm:$0xff]  }
 0x23c   : > { %v1598_v26 = vpop.f32.mrb[34].mxu0  ;;  %v1607_v57 = vld [vmem:[%s6281_s8] sm:$0x1] }
 0x23d   : > { %v1601_v50 = vmax.f32 %v1596_v11, 0.0  ;;  %v3973_v54 = vpop.f32.mrb[35].mxu0 }
 0x23f   : > { %v1602_v52 = vpack.c.bf16 %v1601_v50, %v1601_v50 }
 0x241   : > { %3979 = vmatmul.mubr.msk.bf16.vlgmr.msra.gmra.mrb[32].mxu1 %vm1468_vm2, %v1602_v52 }
 0x242   : > { %3983 = vmatpush3.bf16.msra.mxu1 %v4184_v34 }
 0x243   : > { %3984 = vmatprep.subr.bf16.mxu1 %v4185_v7 }
 0x246   : > { %3985 = vmatpush3.bf16.msra.mxu1 %v4185_v7  ;;  %v1670_v7 = vlaneseq }
 0x247   : > { %4018 = vmatprep.subr.bf16.mxu1 %v4186_v53 }
 0x248   : > { %v1671_v48 = vshrl.u32 %v1670_v7, 7 }
 0x24a   : > { %v1672_v3 = vsub.s32 0, %v1671_v48 }
 0x314   : > { %v1657_v11 = vpop.f32.mrb[32].mxu1 }
 0x315   : > { %v1658_v12 = vadd.f32 %v1657_v11, %v1607_v57  ;;  %v3980_v26 = vpop.f32.mrb[33].mxu1 }
 0x316   : > { %v1660_v50 = vpop.f32.mrb[34].mxu1 }
 0x317   : > { %v3556_v54 = vmul.f32 -1.442695, %v1658_v12  ;;  %v3981_v52 = vpop.f32.mrb[35].mxu1 }
 0x319   : > { %4450 = vpow2.f32 %v3556_v54 }
 0x323   : > { %v4451_v34 = vpop.eup %4450 }
 0x324   : > { %v1666_v33 = vadd.f32 1.0, %v4451_v34 }
 0x326   : > { %4452 = vrcp.f32 %v1666_v33 }
 0x330   : > { %v4453_v17 = vpop.eup %4452 }
 0x331   : > { %v1669_v45 = vadd.f32 1.0, %v4453_v17 }
 0x333   : > { %v5506_v41 = vrot.slane %v1669_v45, %v1672_v3 }
 0x335   : > { %v5510_v22 = vmul.f32 %v5506_v41, %v5000_v4  ;;  %v5514_v57 = vmul.f32 %v5506_v41, %v5006_v61  ;;  %v5518_v11 = vmul.f32 %v5506_v41, %v4996_v0  ;;  %v5522_v33 = vmul.f32 %v5506_v41, %v5009_v15  ;;  %v4187_v0 = vld [vmem:[%s6284_s11 + $0x8] sm:$0xff]  }
 0x336   : > { %v5526_v3 = vmul.f32 %v5506_v41, %v5035_v42  ;;  %v5530_v4 = vmul.f32 %v5506_v41, %v5043_v49  ;;  %v5546_v42 = vmul.f32 %v5506_v41, %v5027_v38  ;;  %v5550_v49 = vmul.f32 %v5506_v41, %v5047_v55 }
 0x337   : > { %v1706_v61 = vpack.c.bf16 %v5514_v57, %v5510_v22  ;;  %v1707_v17 = vpack.c.bf16 %v5522_v33, %v5518_v11  ;;  %v5554_v45 = vmul.f32 %v5506_v41, %v5076_v29  ;;  %v5558_v48 = vmul.f32 %v5506_v41, %v5084_v56 }
 0x338   : > { %v1708_v15 = vpack.c.bf16 %v5530_v4, %v5526_v3  ;;  %v5568_v55 = vmul.f32 %v5506_v41, %v5071_v25  ;;  %v5572_v29 = vmul.f32 %v5506_v41, %v5090_v9  ;;  %v5576_v56 = vmul.f32 %v5506_v41, %v5112_v5 }
 0x339   : > { %3986 = vmatprep.mubr.msk.bf16.mxu1 %vm1468_vm2, %v1706_v61  ;;  %v1710_v38 = vpack.c.bf16 %v5558_v48, %v5554_v45  ;;  %v5580_v12 = vmul.f32 %v5506_v41, %v5120_v32  ;;  %v5590_v25 = vmul.f32 %v5506_v41, %v5106_v13  ;;  %v5594_v9 = vmul.f32 %v5506_v41, %v5126_v40 }
 0x33a   : > { %3987 = vmatmul.mubr.msk.bf16.vlgmr.msra.gmra.mrb[36].mxu1 %vm1468_vm2, %v1707_v17  ;;  %v1711_v26 = vpack.c.bf16 %v5572_v29, %v5568_v55  ;;  %v5598_v5 = vmul.f32 %v5506_v41, %v5146_v18  ;;  %v5602_v32 = vmul.f32 %v5506_v41, %v5154_v27  ;;  %v5612_v13 = vmul.f32 %v5506_v41, %v5149_v2 }
 0x33b   : > { %3990 = vmatprep.mubr.msk.bf16.mxu1 %vm1468_vm2, %v1708_v15  ;;  %4019 = vmatpush3.bf16.msra.mxu1 %v4186_v53  ;;  %v1709_v53 = vpack.c.bf16 %v5550_v49, %v5546_v42  ;;  %v1712_v50 = vpack.c.bf16 %v5580_v12, %v5576_v56  ;;  %v1713_v54 = vpack.c.bf16 %v5594_v9, %v5590_v25 }
 0x33c   : > { %4020 = vmatprep.subr.bf16.mxu1 %v4187_v0  ;;  %v1714_v52 = vpack.c.bf16 %v5602_v32, %v5598_v5  ;;  %v5616_v40 = vmul.f32 %v5506_v41, %v5157_v35  ;;  %v5620_v18 = vmul.f32 %v5506_v41, %v5169_v51  ;;  %v5624_v27 = vmul.f32 %v5506_v41, %v5177_v6 }
 0x33d   : > { %v5634_v2 = vmul.f32 %v5506_v41, %v5172_v1  ;;  %v5638_v35 = vmul.f32 %v5506_v41, %v5180_v14  ;;  %v5642_v51 = vmul.f32 %v5506_v41, %v5189_v16  ;;  %v5646_v6 = vmul.f32 %v5506_v41, %v5197_v44 }
 0x33e   : > { %v1715_v34 = vpack.c.bf16 %v5616_v40, %v5612_v13  ;;  %v1716_v7 = vpack.c.bf16 %v5624_v27, %v5620_v18  ;;  %v5656_v1 = vmul.f32 %v5506_v41, %v5192_v39  ;;  %v5660_v14 = vmul.f32 %v5506_v41, %v5200_v47  ;;  %v6368_v39 = vld [vmem:[#allocation2_spill] sm:$0xff] }
 0x33f   : > { %4021 = vmatpush3.bf16.msra.mxu1 %v4187_v0  ;;  %6365 = vst [vmem:[#allocation36_spill] sm:$0xff] %v5646_v6  ;;  %v1717_v61 = vpack.c.bf16 %v5638_v35, %v5634_v2  ;;  %v1718_v17 = vpack.c.bf16 %v5646_v6, %v5642_v51  ;;  %v5664_v16 = vmul.f32 %v5506_v41, %v5209_v8  ;;  %v6370_v8 = vld [vmem:[#allocation3_spill] sm:$0xff] }
 0x340   : > { %v5668_v44 = vmul.f32 %v5506_v41, %v5217_v10  ;;  %v1719_v0 = vpack.c.bf16 %v5660_v14, %v5656_v1  ;;  %v5678_v47 = vmul.f32 %v5506_v41, %v6368_v39 }
 0x341   : > { %6366 = vst [vmem:[#allocation37_spill] sm:$0xff] %v5664_v16 }
 0x342   : > { %3991 = vmatmul.mubr.msk.bf16.gmra.mrb[40].mxu1 %vm1468_vm2, %v1709_v53  ;;  %6367 = vst [vmem:[#allocation38_spill] sm:$0xff] %v5668_v44  ;;  %v1720_v15 = vpack.c.bf16 %v5668_v44, %v5664_v16  ;;  %6369 = vst [vmem:[#allocation2_spill] sm:$0xff] %v5678_v47  ;;  %v5682_v53 = vmul.f32 %v5506_v41, %v6370_v8  ;;  %v5696_v41 = vld [vmem:[%s6283_s10] ss:$0 sm:$0xff] }
 0x343   : > { %3994 = vmatprep.mubr.msk.bf16.mxu1 %vm1468_vm2, %v1710_v38  ;;  %v4188_v38 = vld [vmem:[%s6284_s11 + $0x10] sm:$0xff]  }
 0x344   : > { %6371 = vst [vmem:[#allocation3_spill] sm:$0xff] %v5682_v53  ;;  %v1721_v10 = vpack.c.bf16 %v5682_v53, %v5678_v47  ;;  %4022 = vmatprep.subr.bf16.mxu1 %v4188_v38 }
 0x345   : > { %4023 = vmatpush3.bf16.msra.mxu1 %v4188_v38 }
 0x34a   : > { %3995 = vmatmul.mubr.msk.bf16.gmra.mrb[44].mxu1 %vm1468_vm2, %v1711_v26  ;;  %v4189_v26 = vld [vmem:[%s6284_s11 + $0x18] sm:$0xff]  }
 0x34b   : > { %3998 = vmatprep.mubr.msk.bf16.mxu1 %vm1468_vm2, %v1712_v50  ;;  %4024 = vmatprep.subr.bf16.mxu1 %v4189_v26 }
 0x34c   : > { %4025 = vmatpush3.bf16.msra.mxu1 %v4189_v26 }
 0x352   : > { %3999 = vmatmul.mubr.msk.bf16.gmra.mrb[48].mxu1 %vm1468_vm2, %v1713_v54 }
 0x353   : > { %4002 = vmatprep.mubr.msk.bf16.mxu1 %vm1468_vm2, %v1714_v52 }
 0x35a   : > { %4003 = vmatmul.mubr.msk.bf16.gmra.mrb[52].mxu1 %vm1468_vm2, %v1715_v34 }
 0x35b   : > { %4006 = vmatprep.mubr.msk.bf16.mxu1 %vm1468_vm2, %v1716_v7 }
 0x362   : > { %4007 = vmatmul.mubr.msk.bf16.gmra.mrb[56].mxu1 %vm1468_vm2, %v1717_v61 }
 0x363   : > { %4010 = vmatprep.mubr.msk.bf16.mxu1 %vm1468_vm2, %v1718_v17 }
 0x36a   : > { %4011 = vmatmul.mubr.msk.bf16.gmra.mrb[60].mxu1 %vm1468_vm2, %v1719_v0 }
 0x36b   : > { %4014 = vmatprep.mubr.msk.bf16.mxu1 %vm1468_vm2, %v1720_v15 }
 0x372   : > { %4015 = vmatmul.mubr.msk.bf16.gmra.mrb[64].mxu1 %vm1468_vm2, %v1721_v10 }
 0x40d   : > { %v3988_v50 = vpop.f32.mrb[36].mxu1 }
 0x40e   : > { %v5699_v54 = vadd.f32 %v3988_v50, %v5696_v41  ;;  %v1827_v52 = vpop.f32.mrb[37].mxu1 }
 0x40f   : > { %v5702_v34 = vadd.f32 %v5696_v41, %v1827_v52  ;;  %v3989_v7 = vpop.f32.mrb[38].mxu1 }
 0x410   : > { %v3578_v61 = vmul.f32 -1.442695, %v5699_v54  ;;  %v5706_v17 = vadd.f32 %v3989_v7, %v5696_v41  ;;  %v1830_v0 = vpop.f32.mrb[39].mxu1 }
 0x411   : > { %v3576_v15 = vmul.f32 -1.442695, %v5702_v34  ;;  %v5710_v39 = vadd.f32 %v5696_v41, %v1830_v0 }
 0x412   : > { %4454 = vpow2.f32 %v3578_v61  ;;  %v3579_v8 = vmul.f32 -1.442695, %v5706_v17 }
 0x413   : > { %4456 = vpow2.f32 %v3576_v15  ;;  %v3577_v10 = vmul.f32 -1.442695, %v5710_v39 }
 0x414   : > { %4458 = vpow2.f32 %v3579_v8 }
 0x415   : > { %4460 = vpow2.f32 %v3577_v10  ;;  %v3992_v38 = vpop.f32.mrb[40].mxu1 }
 0x416   : > { %v5715_v26 = vadd.f32 %v3992_v38, %v5696_v41  ;;  %v1843_v50 = vpop.f32.mrb[41].mxu1 }
 0x417   : > { %v5718_v52 = vadd.f32 %v5696_v41, %v1843_v50  ;;  %v3993_v7 = vpop.f32.mrb[42].mxu1 }
 0x418   : > { %v3582_v0 = vmul.f32 -1.442695, %v5715_v26  ;;  %v5722_v61 = vadd.f32 %v3993_v7, %v5696_v41  ;;  %v1846_v60 = vpop.f32.mrb[43].mxu1 }
 0x419   : > { %v3580_v15 = vmul.f32 -1.442695, %v5718_v52  ;;  %v5726_v8 = vadd.f32 %v5696_v41, %v1846_v60 }
 0x41a   : > { %4462 = vpow2.f32 %v3582_v0  ;;  %v3583_v10 = vmul.f32 -1.442695, %v5722_v61 }
 0x41b   : > { %4464 = vpow2.f32 %v3580_v15  ;;  %v3581_v38 = vmul.f32 -1.442695, %v5726_v8 }
 0x41c   : > { %v4455_v50 = vpop.eup %4454  ;;  %4466 = vpow2.f32 %v3583_v10 }
 0x41d   : > { %v4457_v46 = vpop.eup %4456  ;;  %v2052_v19 = vadd.f32 1.0, %v4455_v50  ;;  %4468 = vpow2.f32 %v3581_v38  ;;  %v3996_v23 = vpop.f32.mrb[44].mxu1 }
 0x41e   : > { %v4459_v7 = vpop.eup %4458  ;;  %v2050_v30 = vadd.f32 1.0, %v4457_v46  ;;  %v5731_v62 = vadd.f32 %v3996_v23, %v5696_v41  ;;  %v1859_v43 = vpop.f32.mrb[45].mxu1 }
 0x41f   : > { %v4461_v60 = vpop.eup %4460  ;;  %4470 = vrcp.f32 %v2052_v19  ;;  %v2053_v0 = vadd.f32 1.0, %v4459_v7  ;;  %v5734_v59 = vadd.f32 %v5696_v41, %v1859_v43  ;;  %v3997_v15 = vpop.f32.mrb[46].mxu1 }
 0x420   : > { %4472 = vrcp.f32 %v2050_v30  ;;  %v2051_v24 = vadd.f32 1.0, %v4461_v60  ;;  %v3586_v10 = vmul.f32 -1.442695, %v5731_v62  ;;  %v5738_v38 = vadd.f32 %v3997_v15, %v5696_v41  ;;  %v1862_v50 = vpop.f32.mrb[47].mxu1 }
 0x421   : > { %4474 = vrcp.f32 %v2053_v0  ;;  %v3584_v23 = vmul.f32 -1.442695, %v5734_v59  ;;  %v5742_v46 = vadd.f32 %v5696_v41, %v1862_v50 }
 0x422   : > { %4476 = vrcp.f32 %v2051_v24  ;;  %v3587_v19 = vmul.f32 -1.442695, %v5738_v38 }
 0x423   : > { %4478 = vpow2.f32 %v3586_v10  ;;  %v3585_v43 = vmul.f32 -1.442695, %v5742_v46 }
 0x424   : > { %v4463_v30 = vpop.eup %4462  ;;  %4480 = vpow2.f32 %v3584_v23 }
 0x425   : > { %v4465_v7 = vpop.eup %4464  ;;  %v2056_v60 = vadd.f32 1.0, %v4463_v30  ;;  %4482 = vpow2.f32 %v3587_v19  ;;  %v4000_v15 = vpop.f32.mrb[48].mxu1 }
 0x426   : > { %v4467_v20 = vpop.eup %4466  ;;  %v2054_v28 = vadd.f32 1.0, %v4465_v7  ;;  %4484 = vpow2.f32 %v3585_v43  ;;  %v5747_v0 = vadd.f32 %v4000_v15, %v5696_v41  ;;  %v1875_v50 = vpop.f32.mrb[49].mxu1 }
 0x427   : > { %v4469_v58 = vpop.eup %4468  ;;  %4486 = vrcp.f32 %v2056_v60  ;;  %v2057_v24 = vadd.f32 1.0, %v4467_v20  ;;  %v5750_v10 = vadd.f32 %v5696_v41, %v1875_v50  ;;  %v4001_v21 = vpop.f32.mrb[50].mxu1 }
 0x428   : > { %4488 = vrcp.f32 %v2054_v28  ;;  %v2055_v23 = vadd.f32 1.0, %v4469_v58  ;;  %v3590_v30 = vmul.f32 -1.442695, %v5747_v0  ;;  %v5754_v19 = vadd.f32 %v4001_v21, %v5696_v41  ;;  %v1878_v7 = vpop.f32.mrb[51].mxu1 }
 0x429   : > { %v4471_v43 = vpop.eup %4470  ;;  %4490 = vrcp.f32 %v2057_v24  ;;  %v3588_v15 = vmul.f32 -1.442695, %v5750_v10  ;;  %v5758_v63 = vadd.f32 %v5696_v41, %v1878_v7 }
 0x42a   : > { %v4473_v20 = vpop.eup %4472  ;;  %4492 = vrcp.f32 %v2055_v23  ;;  %v3591_v60 = vmul.f32 -1.442695, %v5754_v19  ;;  %v2148_v21 = vmul.f32 %v4471_v43, %v5699_v54 }
 0x42b   : > { %v4475_v50 = vpop.eup %4474  ;;  %4494 = vpow2.f32 %v3590_v30  ;;  %v3589_v28 = vmul.f32 -1.442695, %v5758_v63  ;;  %v2146_v37 = vmul.f32 %v4473_v20, %v5702_v34 }
 0x42c   : > { %v4477_v58 = vpop.eup %4476  ;;  %v2149_v36 = vmul.f32 %v4475_v50, %v5706_v17  ;;  %4496 = vpow2.f32 %v3588_v15 }
 0x42d   : > { %v4479_v24 = vpop.eup %4478  ;;  %v2147_v7 = vmul.f32 %v4477_v58, %v5710_v39  ;;  %4498 = vpow2.f32 %v3591_v60  ;;  %v4004_v31 = vpop.f32.mrb[52].mxu1 }
 0x42e   : > { %v4481_v23 = vpop.eup %4480  ;;  %v2179_v44 = vpack.c.bf16 %v2149_v36, %v2148_v21  ;;  %v2060_v16 = vadd.f32 1.0, %v4479_v24  ;;  %4500 = vpow2.f32 %v3589_v28  ;;  %v5767_v30 = vadd.f32 %v4004_v31, %v5696_v41  ;;  %v1891_v53 = vpop.f32.mrb[53].mxu1 }
 0x42f   : > { %v4483_v47 = vpop.eup %4482  ;;  %v2178_v54 = vpack.c.bf16 %v2147_v7, %v2146_v37  ;;  %v2058_v43 = vadd.f32 1.0, %v4481_v23  ;;  %v5770_v17 = vadd.f32 %v5696_v41, %v1891_v53  ;;  %v4005_v15 = vpop.f32.mrb[54].mxu1 }
 0x430   : > { %v4485_v34 = vpop.eup %4484  ;;  %4502 = vrcp.f32 %v2060_v16  ;;  %v2061_v39 = vadd.f32 1.0, %v4483_v47  ;;  %v3594_v20 = vmul.f32 -1.442695, %v5767_v30  ;;  %v5774_v36 = vadd.f32 %v4005_v15, %v5696_v41  ;;  %v1894_v60 = vpop.f32.mrb[55].mxu1 }
 0x431   : > { %v4487_v50 = vpop.eup %4486  ;;  %4504 = vrcp.f32 %v2058_v43  ;;  %v2059_v31 = vadd.f32 1.0, %v4485_v34  ;;  %v3592_v28 = vmul.f32 -1.442695, %v5770_v17  ;;  %v5778_v37 = vadd.f32 %v5696_v41, %v1894_v60  ;;  %4026 = vmatprep.mubr.msk.bf16.mxu1 %vm610_vm0, %v2178_v54 }
 0x432   : > { %v4489_v53 = vpop.eup %4488  ;;  %4506 = vrcp.f32 %v2061_v39  ;;  %v3595_v16 = vmul.f32 -1.442695, %v5774_v36  ;;  %4027 = vmatmul.mubr.msk.bf16.vlgmr.msra.gmra.mrb[68].mxu1 %vm610_vm0, %v2179_v44  ;;  %v2152_v24 = vmul.f32 %v4487_v50, %v5715_v26 }
 0x433   : > { %v4491_v47 = vpop.eup %4490  ;;  %4508 = vrcp.f32 %v2059_v31  ;;  %v3593_v58 = vmul.f32 -1.442695, %v5778_v37  ;;  %v2150_v43 = vmul.f32 %v4489_v53, %v5718_v52 }
 0x434   : > { %v4493_v21 = vpop.eup %4492  ;;  %v2153_v7 = vmul.f32 %v4491_v47, %v5722_v61  ;;  %4510 = vpow2.f32 %v3594_v20 }
 0x435   : > { %v4495_v23 = vpop.eup %4494  ;;  %v2151_v54 = vmul.f32 %v4493_v21, %v5726_v8  ;;  %4512 = vpow2.f32 %v3592_v28  ;;  %v4008_v15 = vpop.f32.mrb[56].mxu1 }
 0x436   : > { %v4497_v34 = vpop.eup %4496  ;;  %v2181_v39 = vpack.c.bf16 %v2153_v7, %v2152_v24  ;;  %v2064_v44 = vadd.f32 1.0, %v4495_v23  ;;  %4514 = vpow2.f32 %v3595_v16  ;;  %v5789_v60 = vadd.f32 %v4008_v15, %v5696_v41  ;;  %v1907_v31 = vpop.f32.mrb[57].mxu1 }
 0x437   : > { %v4499_v6 = vpop.eup %4498  ;;  %v2180_v26 = vpack.c.bf16 %v2151_v54, %v2150_v43  ;;  %v2062_v50 = vadd.f32 1.0, %v4497_v34  ;;  %4516 = vpow2.f32 %v3593_v58  ;;  %v5792_v61 = vadd.f32 %v5696_v41, %v1907_v31  ;;  %v4009_v52 = vpop.f32.mrb[58].mxu1 }
 0x438   : > { %v4501_v20 = vpop.eup %4500  ;;  %4518 = vrcp.f32 %v2064_v44  ;;  %v2065_v8 = vadd.f32 1.0, %v4499_v6  ;;  %v3598_v28 = vmul.f32 -1.442695, %v5789_v60  ;;  %v5796_v53 = vadd.f32 %v4009_v52, %v5696_v41  ;;  %v1910_v16 = vpop.f32.mrb[59].mxu1 }
 0x439   : > { %4520 = vrcp.f32 %v2062_v50  ;;  %v2063_v47 = vadd.f32 1.0, %v4501_v20  ;;  %v3596_v21 = vmul.f32 -1.442695, %v5792_v61  ;;  %v5800_v24 = vadd.f32 %v5696_v41, %v1910_v16  ;;  %4030 = vmatprep.mubr.msk.bf16.mxu1 %vm610_vm0, %v2180_v26 }
 0x43a   : > { %v4503_v58 = vpop.eup %4502  ;;  %4522 = vrcp.f32 %v2065_v8  ;;  %v3599_v7 = vmul.f32 -1.442695, %v5796_v53  ;;  %4031 = vmatmul.mubr.msk.bf16.gmra.mrb[72].mxu1 %vm610_vm0, %v2181_v39 }
 0x43b   : > { %v4505_v6 = vpop.eup %4504  ;;  %4524 = vrcp.f32 %v2063_v47  ;;  %v3597_v23 = vmul.f32 -1.442695, %v5800_v24  ;;  %v2156_v15 = vmul.f32 %v4503_v58, %v5731_v62 }
 0x43c   : > { %v4507_v43 = vpop.eup %4506  ;;  %4526 = vpow2.f32 %v3598_v28  ;;  %v2154_v26 = vmul.f32 %v4505_v6, %v5734_v59 }
 0x43d   : > { %v4509_v54 = vpop.eup %4508  ;;  %v2157_v34 = vmul.f32 %v4507_v43, %v5738_v38  ;;  %4528 = vpow2.f32 %v3596_v21  ;;  %v4012_v44 = vpop.f32.mrb[60].mxu1 }
 0x43e   : > { %v4511_v31 = vpop.eup %4510  ;;  %v2155_v50 = vmul.f32 %v4509_v54, %v5742_v46  ;;  %4530 = vpow2.f32 %v3599_v7  ;;  %v5811_v39 = vadd.f32 %v4012_v44, %v5696_v41  ;;  %v1923_v52 = vpop.f32.mrb[61].mxu1 }
 0x43f   : > { %v4513_v20 = vpop.eup %4512  ;;  %v2183_v8 = vpack.c.bf16 %v2157_v34, %v2156_v15  ;;  %v2068_v28 = vadd.f32 1.0, %v4511_v31  ;;  %4532 = vpow2.f32 %v3597_v23  ;;  %v5814_v62 = vadd.f32 %v5696_v41, %v1923_v52  ;;  %v4013_v38 = vpop.f32.mrb[62].mxu1 }
 0x440   : > { %v4515_v16 = vpop.eup %4514  ;;  %v2182_v47 = vpack.c.bf16 %v2155_v50, %v2154_v26  ;;  %v2066_v21 = vadd.f32 1.0, %v4513_v20  ;;  %v5817_v59 = vadd.f32 %v4013_v38, %v5696_v41  ;;  %v1926_v46 = vpop.f32.mrb[63].mxu1  ;;  %v3602_v6 = vmul.f32 -1.442695, %v5811_v39 }
 0x441   : > { %v4517_v58 = vpop.eup %4516  ;;  %4534 = vrcp.f32 %v2068_v28  ;;  %v2069_v7 = vadd.f32 1.0, %v4515_v16  ;;  %v5821_v43 = vadd.f32 %v5696_v41, %v1926_v46  ;;  %v3600_v15 = vmul.f32 -1.442695, %v5814_v62 }
 0x442   : > { %v4519_v23 = vpop.eup %4518  ;;  %4536 = vrcp.f32 %v2066_v21  ;;  %v2067_v54 = vadd.f32 1.0, %v4517_v58  ;;  %4034 = vmatprep.mubr.msk.bf16.mxu1 %vm610_vm0, %v2182_v47  ;;  %v3603_v44 = vmul.f32 -1.442695, %v5817_v59 }
 0x443   : > { %v4521_v34 = vpop.eup %4520  ;;  %4538 = vrcp.f32 %v2069_v7  ;;  %4035 = vmatmul.mubr.msk.bf16.gmra.mrb[76].mxu1 %vm610_vm0, %v2183_v8  ;;  %v3601_v26 = vmul.f32 -1.442695, %v5821_v43  ;;  %v2160_v52 = vmul.f32 %v4519_v23, %v5747_v0 }
 0x444   : > { %v4523_v31 = vpop.eup %4522  ;;  %4540 = vrcp.f32 %v2067_v54  ;;  %v2158_v16 = vmul.f32 %v4521_v34, %v5750_v10 }
 0x445   : > { %v4525_v50 = vpop.eup %4524  ;;  %v2161_v20 = vmul.f32 %v4523_v31, %v5754_v19  ;;  %4542 = vpow2.f32 %v3602_v6  ;;  %v4016_v28 = vpop.f32.mrb[64].mxu1 }
 0x446   : > { %v4527_v38 = vpop.eup %4526  ;;  %v2159_v47 = vmul.f32 %v4525_v50, %v5758_v63  ;;  %4544 = vpow2.f32 %v3600_v15  ;;  %v5833_v21 = vadd.f32 %v4016_v28, %v5696_v41  ;;  %v1939_v8 = vpop.f32.mrb[65].mxu1 }
 0x447   : > { %v4529_v46 = vpop.eup %4528  ;;  %v2185_v58 = vpack.c.bf16 %v2161_v20, %v2160_v52  ;;  %v2072_v7 = vadd.f32 1.0, %v4527_v38  ;;  %4546 = vpow2.f32 %v3603_v44  ;;  %v5836_v0 = vadd.f32 %v5696_v41, %v1939_v8  ;;  %v4017_v19 = vpop.f32.mrb[66].mxu1 }
 0x448   : > { %v4531_v6 = vpop.eup %4530  ;;  %v2184_v23 = vpack.c.bf16 %v2159_v47, %v2158_v16  ;;  %v2070_v54 = vadd.f32 1.0, %v4529_v46  ;;  %4548 = vpow2.f32 %v3601_v26  ;;  %v1942_v10 = vpop.f32.mrb[67].mxu1  ;;  %v3606_v15 = vmul.f32 -1.442695, %v5833_v21 }
 0x449   : > { %v4533_v34 = vpop.eup %4532  ;;  %4550 = vrcp.f32 %v2072_v7  ;;  %v2073_v63 = vadd.f32 1.0, %v4531_v6  ;;  %v5840_v31 = vadd.f32 %v4017_v19, %v5696_v41  ;;  %v3604_v44 = vmul.f32 -1.442695, %v5836_v0 }
 0x44a   : > { %4552 = vrcp.f32 %v2070_v54  ;;  %v2071_v50 = vadd.f32 1.0, %v4533_v34  ;;  %v5844_v52 = vadd.f32 %v5696_v41, %v1942_v10  ;;  %4038 = vmatprep.mubr.msk.bf16.mxu1 %vm610_vm0, %v2184_v23 }
 0x44b   : > { %v4535_v20 = vpop.eup %4534  ;;  %4554 = vrcp.f32 %v2073_v63  ;;  %v3607_v26 = vmul.f32 -1.442695, %v5840_v31  ;;  %4039 = vmatmul.mubr.msk.bf16.gmra.mrb[80].mxu1 %vm610_vm0, %v2185_v58 }
 0x44c   : > { %v4537_v28 = vpop.eup %4536  ;;  %4556 = vrcp.f32 %v2071_v50  ;;  %v3605_v38 = vmul.f32 -1.442695, %v5844_v52  ;;  %v2164_v8 = vmul.f32 %v4535_v20, %v5767_v30 }
 0x44d   : > { %v4539_v16 = vpop.eup %4538  ;;  %4558 = vpow2.f32 %v3606_v15  ;;  %v2162_v7 = vmul.f32 %v4537_v28, %v5770_v17 }
 0x44e   : > { %v4541_v47 = vpop.eup %4540  ;;  %v2165_v41 = vmul.f32 %v4539_v16, %v5774_v36  ;;  %4560 = vpow2.f32 %v3604_v44 }
 0x44f   : > { %v4543_v46 = vpop.eup %4542  ;;  %v2163_v19 = vmul.f32 %v4541_v47, %v5778_v37  ;;  %4562 = vpow2.f32 %v3607_v26 }
 0x450   : > { %v4545_v6 = vpop.eup %4544  ;;  %v2187_v58 = vpack.c.bf16 %v2165_v41, %v2164_v8  ;;  %v2076_v23 = vadd.f32 1.0, %v4543_v46  ;;  %4564 = vpow2.f32 %v3605_v38 }
 0x451   : > { %v4547_v54 = vpop.eup %4546  ;;  %v2186_v10 = vpack.c.bf16 %v2163_v19, %v2162_v7  ;;  %v2074_v34 = vadd.f32 1.0, %v4545_v6 }
 0x452   : > { %v4549_v63 = vpop.eup %4548  ;;  %4566 = vrcp.f32 %v2076_v23  ;;  %v2077_v15 = vadd.f32 1.0, %v4547_v54 }
 0x453   : > { %v4551_v30 = vpop.eup %4550  ;;  %4568 = vrcp.f32 %v2074_v34  ;;  %v2075_v36 = vadd.f32 1.0, %v4549_v63  ;;  %4042 = vmatprep.mubr.msk.bf16.mxu1 %vm610_vm0, %v2186_v10 }
 0x454   : > { %v4553_v50 = vpop.eup %4552  ;;  %4570 = vrcp.f32 %v2077_v15  ;;  %4043 = vmatmul.mubr.msk.bf16.gmra.mrb[84].mxu1 %vm610_vm0, %v2187_v58  ;;  %v2168_v44 = vmul.f32 %v4551_v30, %v5789_v60 }
 0x455   : > { %v4555_v17 = vpop.eup %4554  ;;  %4572 = vrcp.f32 %v2075_v36  ;;  %v2166_v28 = vmul.f32 %v4553_v50, %v5792_v61 }
 0x456   : > { %v4557_v37 = vpop.eup %4556  ;;  %v2169_v20 = vmul.f32 %v4555_v17, %v5796_v53 }
 0x457   : > { %v4559_v26 = vpop.eup %4558  ;;  %v2167_v38 = vmul.f32 %v4557_v37, %v5800_v24 }
 0x458   : > { %v4561_v16 = vpop.eup %4560  ;;  %v2189_v47 = vpack.c.bf16 %v2169_v20, %v2168_v44  ;;  %v2080_v8 = vadd.f32 1.0, %v4559_v26  ;;  %v4190_v20 = vld [vmem:[%s6287_s14] sm:$0xff]  }
 0x459   : > { %v4563_v41 = vpop.eup %4562  ;;  %v2188_v46 = vpack.c.bf16 %v2167_v38, %v2166_v28  ;;  %v2078_v7 = vadd.f32 1.0, %v4561_v16  ;;  %4058 = vmatprep.subr.bf16.mxu0 %v4190_v20 }
 0x45a   : > { %v4565_v19 = vpop.eup %4564  ;;  %4574 = vrcp.f32 %v2080_v8  ;;  %v2081_v6 = vadd.f32 1.0, %v4563_v41  ;;  %4059 = vmatpush3.bf16.msra.mxu0 %v4190_v20 }
 0x45b   : > { %4576 = vrcp.f32 %v2078_v7  ;;  %v2079_v58 = vadd.f32 1.0, %v4565_v19  ;;  %4046 = vmatprep.mubr.msk.bf16.mxu1 %vm610_vm0, %v2188_v46 }
 0x45c   : > { %v4567_v60 = vpop.eup %4566  ;;  %4578 = vrcp.f32 %v2081_v6  ;;  %4047 = vmatmul.mubr.msk.bf16.gmra.mrb[88].mxu1 %vm610_vm0, %v2189_v47 }
 0x45d   : > { %v4569_v61 = vpop.eup %4568  ;;  %4580 = vrcp.f32 %v2079_v58  ;;  %v2172_v23 = vmul.f32 %v4567_v60, %v5811_v39 }
 0x45e   : > { %v4571_v53 = vpop.eup %4570  ;;  %v2170_v10 = vmul.f32 %v4569_v61, %v5814_v62 }
 0x45f   : > { %v4573_v24 = vpop.eup %4572  ;;  %v2173_v54 = vmul.f32 %v4571_v53, %v5817_v59 }
 0x460   : > { %v2171_v34 = vmul.f32 %v4573_v24, %v5821_v43 }
 0x461   : > { %v2191_v63 = vpack.c.bf16 %v2173_v54, %v2172_v23  ;;  %v4193_v23 = vld [vmem:[%s6286_s13 + $0x8] sm:$0xff]  }
 0x462   : > { %v2190_v15 = vpack.c.bf16 %v2171_v34, %v2170_v10 }
 0x464   : > { %v4575_v30 = vpop.eup %4574  ;;  %4050 = vmatprep.mubr.msk.bf16.mxu1 %vm610_vm0, %v2190_v15 }
 0x465   : > { %v4577_v36 = vpop.eup %4576  ;;  %4051 = vmatmul.mubr.msk.bf16.gmra.mrb[92].mxu1 %vm610_vm0, %v2191_v63  ;;  %v2176_v37 = vmul.f32 %v4575_v30, %v5833_v21  ;;  %v4191_v21 = vld [vmem:[%s6287_s14 + $0x8] sm:$0xff]  }
 0x466   : > { %v4579_v50 = vpop.eup %4578  ;;  %v2174_v59 = vmul.f32 %v4577_v36, %v5836_v0  ;;  %4060 = vmatprep.subr.bf16.mxu0 %v4191_v21  ;;  %v4192_v0 = vld [vmem:[%s6286_s13] sm:$0xff]  }
 0x467   : > { %v4581_v17 = vpop.eup %4580  ;;  %v2177_v39 = vmul.f32 %v4579_v50, %v5840_v31  ;;  %4061 = vmatpush3.bf16.msra.mxu0 %v4191_v21  ;;  %v5886_v31 = vld [vmem:[%s6285_s12] ss:$0 sm:$0xff] }
 0x468   : > { %v2175_v62 = vmul.f32 %v4581_v17, %v5844_v52  ;;  %4094 = vmatprep.subr.bf16.mxu0 %v4192_v0 }
 0x469   : > { %v2193_v44 = vpack.c.bf16 %v2177_v39, %v2176_v37 }
 0x46a   : > { %v2192_v43 = vpack.c.bf16 %v2175_v62, %v2174_v59 }
 0x46c   : > { %4054 = vmatprep.mubr.msk.bf16.mxu1 %vm610_vm0, %v2192_v43 }
 0x46d   : > { %4055 = vmatmul.mubr.msk.bf16.gmra.mrb[96].mxu1 %vm610_vm0, %v2193_v44 }
 0x505   : > { %v4028_v52 = vpop.f32.mrb[68].mxu1 }
 0x506   : > { %v2324_v26 = vadd.f32 %v4028_v52, %v5886_v31  ;;  %v2315_v28 = vpop.f32.mrb[69].mxu1 }
 0x507   : > { %v2316_v38 = vadd.f32 %v5886_v31, %v2315_v28  ;;  %v4029_v16 = vpop.f32.mrb[70].mxu1 }
 0x508   : > { %v2327_v47 = vadd.f32 %v4029_v16, %v5886_v31  ;;  %v2318_v8 = vpop.f32.mrb[71].mxu1  ;;  %v2444_v46 = vadd.f32 %v2324_v26, %v5518_v11 }
 0x509   : > { %v2319_v41 = vadd.f32 %v5886_v31, %v2318_v8  ;;  %v2442_v19 = vadd.f32 %v2316_v38, %v5510_v22 }
 0x50a   : > { %v2445_v7 = vadd.f32 %v2327_v47, %v5522_v33 }
 0x50b   : > { %v2443_v6 = vadd.f32 %v2319_v41, %v5514_v57 }
 0x50c   : > { %v2495_v58 = vpack.c.bf16 %v2445_v7, %v2444_v46 }
 0x50d   : > { %v2494_v60 = vpack.c.bf16 %v2443_v6, %v2442_v19  ;;  %v4032_v61 = vpop.f32.mrb[72].mxu1 }
 0x50e   : > { %v2340_v53 = vadd.f32 %v4032_v61, %v5886_v31  ;;  %v2331_v24 = vpop.f32.mrb[73].mxu1 }
 0x50f   : > { %v2332_v54 = vadd.f32 %v5886_v31, %v2331_v24  ;;  %v4033_v10 = vpop.f32.mrb[74].mxu1  ;;  %4062 = vmatprep.mubr.msk.bf16.mxu0 %vm1468_vm2, %v2494_v60 }
 0x510   : > { %v2343_v11 = vadd.f32 %v4033_v10, %v5886_v31  ;;  %v2334_v22 = vpop.f32.mrb[75].mxu1  ;;  %4063 = vmatmul.mubr.msk.bf16.vlgmr.msra.gmra.mrb[36].mxu0 %vm1468_vm2, %v2495_v58  ;;  %v2448_v33 = vadd.f32 %v2340_v53, %v5546_v42 }
 0x511   : > { %v2335_v57 = vadd.f32 %v5886_v31, %v2334_v22  ;;  %4095 = vmatpush3.bf16.msra.mxu0 %v4192_v0  ;;  %v2446_v63 = vadd.f32 %v2332_v54, %v5526_v3 }
 0x512   : > { %v2449_v34 = vadd.f32 %v2343_v11, %v5550_v49  ;;  %4096 = vmatprep.subr.bf16.mxu0 %v4193_v23 }
 0x513   : > { %v2447_v15 = vadd.f32 %v2335_v57, %v5530_v4 }
 0x514   : > { %v2497_v30 = vpack.c.bf16 %v2449_v34, %v2448_v33 }
 0x515   : > { %v2496_v36 = vpack.c.bf16 %v2447_v15, %v2446_v63  ;;  %4097 = vmatpush3.bf16.msra.mxu0 %v4193_v23 }
 0x516   : > { %v4036_v50 = vpop.f32.mrb[76].mxu1 }
 0x517   : > { %v2356_v17 = vadd.f32 %v4036_v50, %v5886_v31  ;;  %v2347_v37 = vpop.f32.mrb[77].mxu1  ;;  %4066 = vmatprep.mubr.msk.bf16.mxu0 %vm1468_vm2, %v2496_v36 }
 0x518   : > { %v2348_v39 = vadd.f32 %v5886_v31, %v2347_v37  ;;  %v4037_v59 = vpop.f32.mrb[78].mxu1  ;;  %4067 = vmatmul.mubr.msk.bf16.gmra.mrb[40].mxu0 %vm1468_vm2, %v2497_v30 }
 0x519   : > { %v2359_v42 = vadd.f32 %v4037_v59, %v5886_v31  ;;  %v2350_v49 = vpop.f32.mrb[79].mxu1  ;;  %v2452_v4 = vadd.f32 %v2356_v17, %v5568_v55 }
 0x51a   : > { %v2351_v3 = vadd.f32 %v5886_v31, %v2350_v49  ;;  %v2450_v44 = vadd.f32 %v2348_v39, %v5554_v45 }
 0x51b   : > { %v2453_v62 = vadd.f32 %v2359_v42, %v5572_v29 }
 0x51c   : > { %v2451_v43 = vadd.f32 %v2351_v3, %v5558_v48  ;;  %v6372_v3 = vld [vmem:[#allocation36_spill] sm:$0xff] }
 0x51d   : > { %v2499_v20 = vpack.c.bf16 %v2453_v62, %v2452_v4 }
 0x51e   : > { %v2498_v21 = vpack.c.bf16 %v2451_v43, %v2450_v44  ;;  %v4040_v0 = vpop.f32.mrb[80].mxu1 }
 0x51f   : > { %v2372_v52 = vadd.f32 %v4040_v0, %v5886_v31  ;;  %v2363_v26 = vpop.f32.mrb[81].mxu1 }
 0x520   : > { %v2364_v28 = vadd.f32 %v5886_v31, %v2363_v26  ;;  %v4041_v38 = vpop.f32.mrb[82].mxu1  ;;  %4070 = vmatprep.mubr.msk.bf16.mxu0 %vm1468_vm2, %v2498_v21 }
 0x521   : > { %v2375_v16 = vadd.f32 %v4041_v38, %v5886_v31  ;;  %v2366_v55 = vpop.f32.mrb[83].mxu1  ;;  %4071 = vmatmul.mubr.msk.bf16.gmra.mrb[44].mxu0 %vm1468_vm2, %v2499_v20  ;;  %v2456_v48 = vadd.f32 %v2372_v52, %v5590_v25  ;;  %v6374_v38 = vld [vmem:[#allocation3_spill] sm:$0xff] }
 0x522   : > { %v2367_v45 = vadd.f32 %v5886_v31, %v2366_v55  ;;  %v2454_v47 = vadd.f32 %v2364_v28, %v5576_v56  ;;  %v6375_v55 = vld [vmem:[#allocation37_spill] sm:$0xff] }
 0x523   : > { %v2457_v29 = vadd.f32 %v2375_v16, %v5594_v9 }
 0x524   : > { %v2455_v8 = vadd.f32 %v2367_v45, %v5580_v12 }
 0x525   : > { %v2501_v41 = vpack.c.bf16 %v2457_v29, %v2456_v48  ;;  %v6376_v48 = vld [vmem:[#allocation38_spill] sm:$0xff] }
 0x526   : > { %v2500_v46 = vpack.c.bf16 %v2455_v8, %v2454_v47 }
 0x527   : > { %v4044_v7 = vpop.f32.mrb[84].mxu1 }
 0x528   : > { %v2388_v19 = vadd.f32 %v4044_v7, %v5886_v31  ;;  %v2379_v6 = vpop.f32.mrb[85].mxu1  ;;  %4074 = vmatprep.mubr.msk.bf16.mxu0 %vm1468_vm2, %v2500_v46  ;;  %v6378_v46 = vld [vmem:[#allocation5_spill] sm:$0xff] }
 0x529   : > { %v2380_v58 = vadd.f32 %v5886_v31, %v2379_v6  ;;  %v4045_v60 = vpop.f32.mrb[86].mxu1  ;;  %4075 = vmatmul.mubr.msk.bf16.gmra.mrb[48].mxu0 %vm1468_vm2, %v2501_v41  ;;  %v6377_v41 = vld [vmem:[#allocation7_spill] sm:$0xff] }
 0x52a   : > { %v2391_v25 = vadd.f32 %v4045_v60, %v5886_v31  ;;  %v2382_v9 = vpop.f32.mrb[87].mxu1  ;;  %v2460_v12 = vadd.f32 %v2388_v19, %v5612_v13  ;;  %v6379_v7 = vpack.c.bf16 %v6377_v41, %v6378_v46  ;;  %v6381_v19 = vld [vmem:[#allocation4_spill] sm:$0xff]  ;;  %v6384_v60 = vld [vmem:[#allocation9_spill] sm:$0xff] }
 0x52b   : > { %v2383_v56 = vadd.f32 %v5886_v31, %v2382_v9  ;;  %v2458_v53 = vadd.f32 %v2380_v58, %v5598_v5  ;;  %v6383_v58 = vld [vmem:[#allocation11_spill] sm:$0xff]  ;;  %v6386_v9 = vld [vmem:[#allocation10_spill] sm:$0xff] }
 0x52c   : > { %v2461_v61 = vadd.f32 %v2391_v25, %v5616_v40  ;;  %v6385_v25 = vpack.c.bf16 %v6383_v58, %v6384_v60 }
 0x52d   : > { %v2459_v24 = vadd.f32 %v2383_v56, %v5602_v32  ;;  %v6387_v56 = vld [vmem:[#allocation8_spill] sm:$0xff] }
 0x52e   : > { %v2503_v23 = vpack.c.bf16 %v2461_v61, %v2460_v12  ;;  %v6388_v12 = vpack.c.bf16 %v6386_v9, %v6387_v56  ;;  %v6389_v61 = vld [vmem:[#allocation15_spill] sm:$0xff] }
 0x52f   : > { %v2502_v54 = vpack.c.bf16 %v2459_v24, %v2458_v53  ;;  %v4048_v10 = vpop.f32.mrb[88].mxu1  ;;  %v6390_v53 = vld [vmem:[#allocation13_spill] sm:$0xff] }
 0x530   : > { %v2404_v11 = vadd.f32 %v4048_v10, %v5886_v31  ;;  %v2395_v22 = vpop.f32.mrb[89].mxu1  ;;  %v6391_v24 = vpack.c.bf16 %v6389_v61, %v6390_v53 }
 0x531   : > { %v2396_v57 = vadd.f32 %v5886_v31, %v2395_v22  ;;  %v4049_v33 = vpop.f32.mrb[90].mxu1  ;;  %4078 = vmatprep.mubr.msk.bf16.mxu0 %vm1468_vm2, %v2502_v54  ;;  %v6393_v54 = vld [vmem:[#allocation12_spill] sm:$0xff]  ;;  %v6396_v22 = vld [vmem:[#allocation17_spill] sm:$0xff] }
 0x532   : > { %v2407_v34 = vadd.f32 %v4049_v33, %v5886_v31  ;;  %v2398_v13 = vpop.f32.mrb[91].mxu1  ;;  %4079 = vmatmul.mubr.msk.bf16.gmra.mrb[52].mxu0 %vm1468_vm2, %v2503_v23  ;;  %v2464_v32 = vadd.f32 %v2404_v11, %v5634_v2  ;;  %v6392_v23 = vld [vmem:[#allocation14_spill] sm:$0xff]  ;;  %v6395_v11 = vld [vmem:[#allocation19_spill] sm:$0xff] }
 0x533   : > { %v2399_v5 = vadd.f32 %v5886_v31, %v2398_v13  ;;  %v2462_v63 = vadd.f32 %v2396_v57, %v5620_v18  ;;  %v6394_v10 = vpack.c.bf16 %v6392_v23, %v6393_v54  ;;  %v6397_v57 = vpack.c.bf16 %v6395_v11, %v6396_v22  ;;  %v6398_v33 = vld [vmem:[#allocation18_spill] sm:$0xff] }
 0x534   : > { %v2465_v40 = vadd.f32 %v2407_v34, %v5638_v35  ;;  %v6399_v34 = vld [vmem:[#allocation16_spill] sm:$0xff] }
 0x535   : > { %v2463_v15 = vadd.f32 %v2399_v5, %v5624_v27  ;;  %v6400_v13 = vpack.c.bf16 %v6398_v33, %v6399_v34  ;;  %v6401_v5 = vld [vmem:[#allocation23_spill] sm:$0xff] }
 0x536   : > { %v2505_v30 = vpack.c.bf16 %v2465_v40, %v2464_v32  ;;  %v6402_v32 = vld [vmem:[#allocation21_spill] sm:$0xff] }
 0x537   : > { %v2504_v36 = vpack.c.bf16 %v2463_v15, %v2462_v63  ;;  %v6403_v40 = vpack.c.bf16 %v6401_v5, %v6402_v32  ;;  %v6404_v63 = vld [vmem:[#allocation22_spill] sm:$0xff]  ;;  %v6405_v15 = vld [vmem:[#allocation20_spill] sm:$0xff] }
 0x538   : > { %v4052_v50 = vpop.f32.mrb[92].mxu1 }
 0x539   : > { %v2420_v17 = vadd.f32 %v4052_v50, %v5886_v31  ;;  %v2411_v37 = vpop.f32.mrb[93].mxu1  ;;  %4082 = vmatprep.mubr.msk.bf16.mxu0 %vm1468_vm2, %v2504_v36  ;;  %v6407_v36 = vld [vmem:[#allocation27_spill] sm:$0xff]  ;;  %v6408_v50 = vld [vmem:[#allocation25_spill] sm:$0xff] }
 0x53a   : > { %v2412_v39 = vadd.f32 %v5886_v31, %v2411_v37  ;;  %v4053_v59 = vpop.f32.mrb[94].mxu1  ;;  %4083 = vmatmul.mubr.msk.bf16.gmra.mrb[56].mxu0 %vm1468_vm2, %v2505_v30  ;;  %v6406_v30 = vpack.c.bf16 %v6404_v63, %v6405_v15  ;;  %v6410_v37 = vld [vmem:[#allocation26_spill] sm:$0xff] }
 0x53b   : > { %v2423_v2 = vadd.f32 %v4053_v59, %v5886_v31  ;;  %v2414_v35 = vpop.f32.mrb[95].mxu1  ;;  %v2468_v27 = vadd.f32 %v2420_v17, %v5656_v1  ;;  %v6409_v17 = vpack.c.bf16 %v6407_v36, %v6408_v50 }
 0x53c   : > { %v2415_v18 = vadd.f32 %v5886_v31, %v2414_v35  ;;  %v2466_v49 = vadd.f32 %v2412_v39, %v5642_v51  ;;  %v6411_v39 = vld [vmem:[#allocation24_spill] sm:$0xff]  ;;  %v6414_v35 = vld [vmem:[#allocation29_spill] sm:$0xff] }
 0x53d   : > { %v2469_v42 = vadd.f32 %v2423_v2, %v5660_v14  ;;  %v6373_v14 = vld [vmem:[#allocation2_spill] sm:$0xff]  ;;  %v6412_v59 = vpack.c.bf16 %v6410_v37, %v6411_v39  ;;  %v6413_v2 = vld [vmem:[#allocation31_spill] sm:$0xff] }
 0x53e   : > { %v2467_v4 = vadd.f32 %v2415_v18, %v6372_v3  ;;  %v6415_v18 = vpack.c.bf16 %v6413_v2, %v6414_v35  ;;  %v6419_v3 = vld [vmem:[#allocation35_spill] sm:$0xff] }
 0x53f   : > { %v2507_v62 = vpack.c.bf16 %v2469_v42, %v2468_v27  ;;  %v6416_v27 = vld [vmem:[#allocation30_spill] sm:$0xff]  ;;  %v6417_v42 = vld [vmem:[#allocation28_spill] sm:$0xff] }
 0x540   : > { %v2506_v44 = vpack.c.bf16 %v2467_v4, %v2466_v49  ;;  %v4056_v43 = vpop.f32.mrb[96].mxu1  ;;  %v6418_v49 = vpack.c.bf16 %v6416_v27, %v6417_v42  ;;  %v6420_v4 = vld [vmem:[#allocation33_spill] sm:$0xff] }
 0x541   : > { %v2436_v20 = vadd.f32 %v4056_v43, %v5886_v31  ;;  %v2427_v21 = vpop.f32.mrb[97].mxu1  ;;  %v6423_v43 = vld [vmem:[#allocation32_spill] sm:$0xff] }
 0x542   : > { %v2428_v0 = vadd.f32 %v5886_v31, %v2427_v21  ;;  %v4057_v52 = vpop.f32.mrb[98].mxu1  ;;  %4086 = vmatprep.mubr.msk.bf16.mxu0 %vm1468_vm2, %v2506_v44  ;;  %v6422_v44 = vld [vmem:[#allocation34_spill] sm:$0xff] }
 0x543   : > { %v2439_v26 = vadd.f32 %v4057_v52, %v5886_v31  ;;  %v2430_v1 = vpop.f32.mrb[99].mxu1  ;;  %4087 = vmatmul.mubr.msk.bf16.gmra.mrb[60].mxu0 %vm1468_vm2, %v2507_v62  ;;  %v2472_v28 = vadd.f32 %v2436_v20, %v6373_v14  ;;  %v6421_v62 = vpack.c.bf16 %v6419_v3, %v6420_v4  ;;  %v6424_v20 = vpack.c.bf16 %v6422_v44, %v6423_v43  ;;  %v6038_v21 = vld [vmem:[%s6288_s15] ss:$0 sm:$0xff] }
 0x544   : > { %v2431_v51 = vadd.f32 %v5886_v31, %v2430_v1  ;;  %v2470_v45 = vadd.f32 %v2428_v0, %v6375_v55  ;;  %v6380_v31 = vld [vmem:[#allocation6_spill] sm:$0xff] }
 0x545   : > { %v2473_v16 = vadd.f32 %v2439_v26, %v6374_v38  ;;  %v6382_v6 = vpack.c.bf16 %v6380_v31, %v6381_v19 }
 0x546   : > { %v2471_v29 = vadd.f32 %v2431_v51, %v6376_v48 }
 0x547   : > { %v2509_v47 = vpack.c.bf16 %v2473_v16, %v2472_v28 }
 0x548   : > { %v2508_v8 = vpack.c.bf16 %v2471_v29, %v2470_v45 }
 0x54a   : > { %4090 = vmatprep.mubr.msk.bf16.mxu0 %vm1468_vm2, %v2508_v8 }
 0x54b   : > { %4091 = vmatmul.mubr.msk.bf16.gmra.mrb[64].mxu0 %vm1468_vm2, %v2509_v47 }
 0x54c   : > { %4098 = vmatprep.mubr.msk.bf16.mxu0 %vm1468_vm2, %v6379_v7 }
 0x553   : > { %4099 = vmatmul.mubr.msk.bf16.vlgmr.msra.gmra.mrb[36].mxu0 %vm1468_vm2, %v6382_v6 }
 0x554   : > { %4102 = vmatprep.mubr.msk.bf16.mxu0 %vm1468_vm2, %v6385_v25 }
 0x55b   : > { %4103 = vmatmul.mubr.msk.bf16.gmra.mrb[40].mxu0 %vm1468_vm2, %v6388_v12 }
 0x55c   : > { %4106 = vmatprep.mubr.msk.bf16.mxu0 %vm1468_vm2, %v6391_v24 }
 0x563   : > { %4107 = vmatmul.mubr.msk.bf16.gmra.mrb[44].mxu0 %vm1468_vm2, %v6394_v10 }
 0x564   : > { %4110 = vmatprep.mubr.msk.bf16.mxu0 %vm1468_vm2, %v6397_v57 }
 0x56b   : > { %4111 = vmatmul.mubr.msk.bf16.gmra.mrb[48].mxu0 %vm1468_vm2, %v6400_v13 }
 0x56c   : > { %4114 = vmatprep.mubr.msk.bf16.mxu0 %vm1468_vm2, %v6403_v40 }
 0x573   : > { %4115 = vmatmul.mubr.msk.bf16.gmra.mrb[52].mxu0 %vm1468_vm2, %v6406_v30 }
 0x574   : > { %4118 = vmatprep.mubr.msk.bf16.mxu0 %vm1468_vm2, %v6409_v17 }
 0x57b   : > { %4119 = vmatmul.mubr.msk.bf16.gmra.mrb[56].mxu0 %vm1468_vm2, %v6412_v59 }
 0x57c   : > { %4122 = vmatprep.mubr.msk.bf16.mxu0 %vm1468_vm2, %v6415_v18 }
 0x583   : > { %4123 = vmatmul.mubr.msk.bf16.gmra.mrb[60].mxu0 %vm1468_vm2, %v6418_v49 }
 0x584   : > { %4126 = vmatprep.mubr.msk.bf16.mxu0 %vm1468_vm2, %v6421_v62 }
 0x58b   : > { %4127 = vmatmul.mubr.msk.bf16.gmra.mrb[64].mxu0 %vm1468_vm2, %v6424_v20 }
 0x626   : > { %v4100_v0 = vpop.f32.mrb[36].mxu0 }
 0x627   : > { %v6041_v52 = vadd.f32 %v4100_v0, %v6038_v21  ;;  %v2829_v26 = vpop.f32.mrb[37].mxu0 }
 0x628   : > { %v6044_v1 = vadd.f32 %v6038_v21, %v2829_v26  ;;  %v4101_v51 = vpop.f32.mrb[38].mxu0 }
 0x629   : > { %v3668_v14 = vmul.f32 -1.442695, %v6041_v52  ;;  %v6048_v28 = vadd.f32 %v4101_v51, %v6038_v21  ;;  %v2832_v38 = vpop.f32.mrb[39].mxu0 }
 0x62a   : > { %v3666_v16 = vmul.f32 -1.442695, %v6044_v1  ;;  %v6052_v55 = vadd.f32 %v6038_v21, %v2832_v38 }
 0x62b   : > { %4582 = vpow2.f32 %v3668_v14  ;;  %v3669_v45 = vmul.f32 -1.442695, %v6048_v28 }
 0x62c   : > { %4584 = vpow2.f32 %v3666_v16  ;;  %v3667_v48 = vmul.f32 -1.442695, %v6052_v55 }
 0x62d   : > { %4586 = vpow2.f32 %v3669_v45 }
 0x62e   : > { %4588 = vpow2.f32 %v3667_v48  ;;  %v4104_v29 = vpop.f32.mrb[40].mxu0 }
 0x62f   : > { %v6057_v47 = vadd.f32 %v4104_v29, %v6038_v21  ;;  %v2845_v8 = vpop.f32.mrb[41].mxu0 }
 0x630   : > { %v6060_v41 = vadd.f32 %v6038_v21, %v2845_v8  ;;  %v4105_v46 = vpop.f32.mrb[42].mxu0 }
 0x631   : > { %v3672_v7 = vmul.f32 -1.442695, %v6057_v47  ;;  %v6064_v31 = vadd.f32 %v4105_v46, %v6038_v21  ;;  %v2848_v19 = vpop.f32.mrb[43].mxu0 }
 0x632   : > { %v3670_v6 = vmul.f32 -1.442695, %v6060_v41  ;;  %v6068_v58 = vadd.f32 %v6038_v21, %v2848_v19 }
 0x633   : > { %4590 = vpow2.f32 %v3672_v7  ;;  %v3673_v60 = vmul.f32 -1.442695, %v6064_v31 }
 0x634   : > { %4592 = vpow2.f32 %v3670_v6  ;;  %v3671_v25 = vmul.f32 -1.442695, %v6068_v58 }
 0x635   : > { %v4583_v9 = vpop.eup %4582  ;;  %4594 = vpow2.f32 %v3673_v60 }
 0x636   : > { %v4585_v56 = vpop.eup %4584  ;;  %v3093_v12 = vadd.f32 1.0, %v4583_v9  ;;  %4596 = vpow2.f32 %v3671_v25  ;;  %v4108_v61 = vpop.f32.mrb[44].mxu0 }
 0x637   : > { %v4587_v53 = vpop.eup %4586  ;;  %v3091_v24 = vadd.f32 1.0, %v4585_v56  ;;  %v6073_v23 = vadd.f32 %v4108_v61, %v6038_v21  ;;  %v2861_v54 = vpop.f32.mrb[45].mxu0 }
 0x638   : > { %v4589_v10 = vpop.eup %4588  ;;  %4598 = vrcp.f32 %v3093_v12  ;;  %v3094_v11 = vadd.f32 1.0, %v4587_v53  ;;  %v6076_v22 = vadd.f32 %v6038_v21, %v2861_v54  ;;  %v4109_v57 = vpop.f32.mrb[46].mxu0 }
 0x639   : > { %4600 = vrcp.f32 %v3091_v24  ;;  %v3092_v33 = vadd.f32 1.0, %v4589_v10  ;;  %v3676_v34 = vmul.f32 -1.442695, %v6073_v23  ;;  %v6080_v13 = vadd.f32 %v4109_v57, %v6038_v21  ;;  %v2864_v5 = vpop.f32.mrb[47].mxu0 }
 0x63a   : > { %4602 = vrcp.f32 %v3094_v11  ;;  %v3674_v32 = vmul.f32 -1.442695, %v6076_v22  ;;  %v6084_v40 = vadd.f32 %v6038_v21, %v2864_v5 }
 0x63b   : > { %4604 = vrcp.f32 %v3092_v33  ;;  %v3677_v63 = vmul.f32 -1.442695, %v6080_v13 }
 0x63c   : > { %4606 = vpow2.f32 %v3676_v34  ;;  %v3675_v15 = vmul.f32 -1.442695, %v6084_v40 }
 0x63d   : > { %v4591_v30 = vpop.eup %4590  ;;  %4608 = vpow2.f32 %v3674_v32 }
 0x63e   : > { %v4593_v36 = vpop.eup %4592  ;;  %v3097_v50 = vadd.f32 1.0, %v4591_v30  ;;  %4610 = vpow2.f32 %v3677_v63  ;;  %v4112_v17 = vpop.f32.mrb[48].mxu0 }
 0x63f   : > { %v4595_v37 = vpop.eup %4594  ;;  %v3095_v39 = vadd.f32 1.0, %v4593_v36  ;;  %4612 = vpow2.f32 %v3675_v15  ;;  %v6089_v59 = vadd.f32 %v4112_v17, %v6038_v21  ;;  %v2877_v2 = vpop.f32.mrb[49].mxu0 }
 0x640   : > { %v4597_v35 = vpop.eup %4596  ;;  %4614 = vrcp.f32 %v3097_v50  ;;  %v3098_v18 = vadd.f32 1.0, %v4595_v37  ;;  %v6092_v27 = vadd.f32 %v6038_v21, %v2877_v2  ;;  %v4113_v42 = vpop.f32.mrb[50].mxu0 }
 0x641   : > { %4616 = vrcp.f32 %v3095_v39  ;;  %v3096_v49 = vadd.f32 1.0, %v4597_v35  ;;  %v3680_v3 = vmul.f32 -1.442695, %v6089_v59  ;;  %v6097_v4 = vadd.f32 %v4113_v42, %v6038_v21  ;;  %v2880_v62 = vpop.f32.mrb[51].mxu0 }
 0x642   : > { %v4599_v44 = vpop.eup %4598  ;;  %4618 = vrcp.f32 %v3098_v18  ;;  %v3678_v43 = vmul.f32 -1.442695, %v6092_v27  ;;  %v6101_v20 = vadd.f32 %v6038_v21, %v2880_v62 }
 0x643   : > { %v4601_v0 = vpop.eup %4600  ;;  %v3189_v26 = vmul.f32 %v4599_v44, %v6041_v52  ;;  %4620 = vrcp.f32 %v3096_v49  ;;  %v3681_v51 = vmul.f32 -1.442695, %v6097_v4 }
 0x644   : > { %v4603_v14 = vpop.eup %4602  ;;  %v3187_v38 = vmul.f32 %v4601_v0, %v6044_v1  ;;  %4622 = vpow2.f32 %v3680_v3  ;;  %v3679_v16 = vmul.f32 -1.442695, %v6101_v20 }
 0x645   : > { %v4605_v45 = vpop.eup %4604  ;;  %v3736_v48 = vpack.c.bf16 %v3189_v26, %v3189_v26  ;;  %v3190_v52 = vmul.f32 %v4603_v14, %v6048_v28  ;;  %4624 = vpow2.f32 %v3678_v43 }
 0x646   : > { %v4607_v29 = vpop.eup %4606  ;;  %v3734_v8 = vpack.c.bf16 %v3187_v38, %v3187_v38  ;;  %v3188_v46 = vmul.f32 %v4605_v45, %v6052_v55  ;;  %4626 = vpow2.f32 %v3681_v51  ;;  %v4116_v7 = vpop.f32.mrb[52].mxu0 }
 0x647   : > { %v4609_v19 = vpop.eup %4608  ;;  %3350 = vst.msk [vmem:[%s6108_s23 + $0x8] sm:$0xf] %vm3347_vm3, %v3736_v48  ;;  %v3737_v1 = vpack.c.bf16 %v3190_v52, %v3190_v52  ;;  %v3101_v6 = vadd.f32 1.0, %v4607_v29  ;;  %4628 = vpow2.f32 %v3679_v16  ;;  %v6117_v60 = vadd.f32 %v4116_v7, %v6038_v21  ;;  %v2893_v25 = vpop.f32.mrb[53].mxu0 }
 0x648   : > { %v4611_v28 = vpop.eup %4610  ;;  %3348 = vst.msk [vmem:[%s6108_s23] sm:$0xf] %vm3347_vm3, %v3734_v8  ;;  %v3735_v9 = vpack.c.bf16 %v3188_v46, %v3188_v46  ;;  %v3099_v56 = vadd.f32 1.0, %v4609_v19  ;;  %v6122_v55 = vadd.f32 %v6038_v21, %v2893_v25  ;;  %v4117_v12 = vpop.f32.mrb[54].mxu0 }
 0x649   : > { %v4613_v61 = vpop.eup %4612  ;;  %3351 = vst.msk [vmem:[%s6108_s23 + $0xc] sm:$0xf] %vm3347_vm3, %v3737_v1  ;;  %4630 = vrcp.f32 %v3101_v6  ;;  %v3102_v53 = vadd.f32 1.0, %v4611_v28  ;;  %v3684_v24 = vmul.f32 -1.442695, %v6117_v60  ;;  %v6128_v54 = vadd.f32 %v4117_v12, %v6038_v21  ;;  %v2896_v10 = vpop.f32.mrb[55].mxu0 }
 0x64a   : > { %v4615_v11 = vpop.eup %4614  ;;  %3349 = vst.msk [vmem:[%s6108_s23 + $0x4] sm:$0xf] %vm3347_vm3, %v3735_v9  ;;  %4632 = vrcp.f32 %v3099_v56  ;;  %v3100_v57 = vadd.f32 1.0, %v4613_v61  ;;  %v3682_v33 = vmul.f32 -1.442695, %v6122_v55  ;;  %v6134_v34 = vadd.f32 %v6038_v21, %v2896_v10 }
 0x64b   : > { %v4617_v5 = vpop.eup %4616  ;;  %v3193_v32 = vmul.f32 %v4615_v11, %v6057_v47  ;;  %4634 = vrcp.f32 %v3102_v53  ;;  %v3685_v63 = vmul.f32 -1.442695, %v6128_v54 }
 0x64c   : > { %v4619_v15 = vpop.eup %4618  ;;  %v3191_v30 = vmul.f32 %v4617_v5, %v6060_v41  ;;  %4636 = vrcp.f32 %v3100_v57  ;;  %v3683_v36 = vmul.f32 -1.442695, %v6134_v34 }
 0x64d   : > { %v4621_v50 = vpop.eup %4620  ;;  %v3740_v17 = vpack.c.bf16 %v3193_v32, %v3193_v32  ;;  %v3194_v37 = vmul.f32 %v4619_v15, %v6064_v31  ;;  %4638 = vpow2.f32 %v3684_v24 }
 0x64e   : > { %v4623_v39 = vpop.eup %4622  ;;  %v3738_v2 = vpack.c.bf16 %v3191_v30, %v3191_v30  ;;  %v3192_v47 = vmul.f32 %v4621_v50, %v6068_v58  ;;  %4640 = vpow2.f32 %v3682_v33  ;;  %v4120_v35 = vpop.f32.mrb[56].mxu0 }
 0x64f   : > { %v4625_v18 = vpop.eup %4624  ;;  %3354 = vst.msk [vmem:[%s6108_s23 + $0x18] sm:$0xf] %vm3347_vm3, %v3740_v17  ;;  %v3741_v41 = vpack.c.bf16 %v3194_v37, %v3194_v37  ;;  %v3105_v42 = vadd.f32 1.0, %v4623_v39  ;;  %4642 = vpow2.f32 %v3685_v63  ;;  %v6145_v49 = vadd.f32 %v4120_v35, %v6038_v21  ;;  %v2909_v3 = vpop.f32.mrb[57].mxu0 }
 0x650   : > { %v4627_v31 = vpop.eup %4626  ;;  %3352 = vst.msk [vmem:[%s6108_s23 + $0x10] sm:$0xf] %vm3347_vm3, %v3738_v2  ;;  %v3739_v62 = vpack.c.bf16 %v3192_v47, %v3192_v47  ;;  %v3103_v44 = vadd.f32 1.0, %v4625_v18  ;;  %4644 = vpow2.f32 %v3683_v36  ;;  %v6150_v58 = vadd.f32 %v6038_v21, %v2909_v3  ;;  %v4121_v43 = vpop.f32.mrb[58].mxu0 }
 0x651   : > { %v4629_v0 = vpop.eup %4628  ;;  %3355 = vst.msk [vmem:[%s6108_s23 + $0x1c] sm:$0xf] %vm3347_vm3, %v3741_v41  ;;  %4646 = vrcp.f32 %v3105_v42  ;;  %v3106_v26 = vadd.f32 1.0, %v4627_v31  ;;  %v3688_v51 = vmul.f32 -1.442695, %v6145_v49  ;;  %v6156_v14 = vadd.f32 %v4121_v43, %v6038_v21  ;;  %v2912_v38 = vpop.f32.mrb[59].mxu0 }
 0x652   : > { %3353 = vst.msk [vmem:[%s6108_s23 + $0x14] sm:$0xf] %vm3347_vm3, %v3739_v62  ;;  %4648 = vrcp.f32 %v3103_v44  ;;  %v3104_v16 = vadd.f32 1.0, %v4629_v0  ;;  %v3686_v45 = vmul.f32 -1.442695, %v6150_v58  ;;  %v6162_v48 = vadd.f32 %v6038_v21, %v2912_v38 }
 0x653   : > { %v4631_v52 = vpop.eup %4630  ;;  %4650 = vrcp.f32 %v3106_v26  ;;  %v3689_v29 = vmul.f32 -1.442695, %v6156_v14 }
 0x654   : > { %v4633_v8 = vpop.eup %4632  ;;  %v3197_v46 = vmul.f32 %v4631_v52, %v6073_v23  ;;  %4652 = vrcp.f32 %v3104_v16  ;;  %v3687_v7 = vmul.f32 -1.442695, %v6162_v48 }
 0x655   : > { %v4635_v19 = vpop.eup %4634  ;;  %v3195_v1 = vmul.f32 %v4633_v8, %v6076_v22  ;;  %4654 = vpow2.f32 %v3688_v51 }
 0x656   : > { %v4637_v6 = vpop.eup %4636  ;;  %v3744_v25 = vpack.c.bf16 %v3197_v46, %v3197_v46  ;;  %v3198_v28 = vmul.f32 %v4635_v19, %v6080_v13  ;;  %4656 = vpow2.f32 %v3686_v45  ;;  %v4124_v9 = vpop.f32.mrb[60].mxu0 }
 0x657   : > { %v4639_v56 = vpop.eup %4638  ;;  %v3742_v12 = vpack.c.bf16 %v3195_v1, %v3195_v1  ;;  %v3196_v61 = vmul.f32 %v4637_v6, %v6084_v40  ;;  %4658 = vpow2.f32 %v3689_v29  ;;  %v6171_v23 = vadd.f32 %v4124_v9, %v6038_v21  ;;  %v2925_v53 = vpop.f32.mrb[61].mxu0 }
 0x658   : > { %v4641_v24 = vpop.eup %4640  ;;  %3358 = vst.msk [vmem:[%s6108_s23 + $0x28] sm:$0xf] %vm3347_vm3, %v3744_v25  ;;  %v3745_v22 = vpack.c.bf16 %v3198_v28, %v3198_v28  ;;  %v3109_v10 = vadd.f32 1.0, %v4639_v56  ;;  %4660 = vpow2.f32 %v3687_v7  ;;  %v6176_v13 = vadd.f32 %v6038_v21, %v2925_v53  ;;  %v4125_v11 = vpop.f32.mrb[62].mxu0 }
 0x659   : > { %v4643_v57 = vpop.eup %4642  ;;  %3356 = vst.msk [vmem:[%s6108_s23 + $0x20] sm:$0xf] %vm3347_vm3, %v3742_v12  ;;  %v3743_v40 = vpack.c.bf16 %v3196_v61, %v3196_v61  ;;  %v3107_v33 = vadd.f32 1.0, %v4641_v24  ;;  %v6181_v5 = vadd.f32 %v4125_v11, %v6038_v21  ;;  %v2928_v32 = vpop.f32.mrb[63].mxu0  ;;  %v3692_v30 = vmul.f32 -1.442695, %v6171_v23 }
 0x65a   : > { %v4645_v63 = vpop.eup %4644  ;;  %3359 = vst.msk [vmem:[%s6108_s23 + $0x2c] sm:$0xf] %vm3347_vm3, %v3745_v22  ;;  %4662 = vrcp.f32 %v3109_v10  ;;  %v3110_v15 = vadd.f32 1.0, %v4643_v57  ;;  %v6187_v36 = vadd.f32 %v6038_v21, %v2928_v32  ;;  %v3690_v37 = vmul.f32 -1.442695, %v6176_v13 }
 0x65b   : > { %v4647_v50 = vpop.eup %4646  ;;  %3357 = vst.msk [vmem:[%s6108_s23 + $0x24] sm:$0xf] %vm3347_vm3, %v3743_v40  ;;  %4664 = vrcp.f32 %v3107_v33  ;;  %v3108_v17 = vadd.f32 1.0, %v4645_v63  ;;  %v3693_v47 = vmul.f32 -1.442695, %v6181_v5 }
 0x65c   : > { %v4649_v39 = vpop.eup %4648  ;;  %v3201_v2 = vmul.f32 %v4647_v50, %v6089_v59  ;;  %4666 = vrcp.f32 %v3110_v15  ;;  %v3691_v41 = vmul.f32 -1.442695, %v6187_v36 }
 0x65d   : > { %v4651_v35 = vpop.eup %4650  ;;  %v3199_v18 = vmul.f32 %v4649_v39, %v6092_v27  ;;  %4668 = vrcp.f32 %v3108_v17 }
 0x65e   : > { %v4653_v42 = vpop.eup %4652  ;;  %v3748_v3 = vpack.c.bf16 %v3201_v2, %v3201_v2  ;;  %v3202_v31 = vmul.f32 %v4651_v35, %v6097_v4  ;;  %4670 = vpow2.f32 %v3692_v30  ;;  %v4128_v62 = vpop.f32.mrb[64].mxu0 }
 0x65f   : > { %v4655_v44 = vpop.eup %4654  ;;  %v3746_v43 = vpack.c.bf16 %v3199_v18, %v3199_v18  ;;  %v3200_v59 = vmul.f32 %v4653_v42, %v6101_v20  ;;  %4672 = vpow2.f32 %v3690_v37  ;;  %v6199_v0 = vadd.f32 %v4128_v62, %v6038_v21  ;;  %v2941_v27 = vpop.f32.mrb[65].mxu0 }
 0x660   : > { %v4657_v26 = vpop.eup %4656  ;;  %3362 = vst.msk [vmem:[%s6108_s23 + $0x38] sm:$0xf] %vm3347_vm3, %v3748_v3  ;;  %v3749_v51 = vpack.c.bf16 %v3202_v31, %v3202_v31  ;;  %v3113_v38 = vadd.f32 1.0, %v4655_v44  ;;  %4674 = vpow2.f32 %v3693_v47  ;;  %v6204_v4 = vadd.f32 %v6038_v21, %v2941_v27  ;;  %v4129_v16 = vpop.f32.mrb[66].mxu0 }
 0x661   : > { %v4659_v45 = vpop.eup %4658  ;;  %3360 = vst.msk [vmem:[%s6108_s23 + $0x30] sm:$0xf] %vm3347_vm3, %v3746_v43  ;;  %v3747_v20 = vpack.c.bf16 %v3200_v59, %v3200_v59  ;;  %v3111_v52 = vadd.f32 1.0, %v4657_v26  ;;  %4676 = vpow2.f32 %v3691_v41  ;;  %v2944_v29 = vpop.f32.mrb[67].mxu0  ;;  %v3696_v7 = vmul.f32 -1.442695, %v6199_v0 }
 0x662   : > { %v4661_v8 = vpop.eup %4660  ;;  %3363 = vst.msk [vmem:[%s6108_s23 + $0x3c] sm:$0xf] %vm3347_vm3, %v3749_v51  ;;  %4678 = vrcp.f32 %v3113_v38  ;;  %v3114_v46 = vadd.f32 1.0, %v4659_v45  ;;  %v6212_v19 = vadd.f32 %v4129_v16, %v6038_v21  ;;  %v3694_v6 = vmul.f32 -1.442695, %v6204_v4 }
 0x663   : > { %3361 = vst.msk [vmem:[%s6108_s23 + $0x34] sm:$0xf] %vm3347_vm3, %v3747_v20  ;;  %4680 = vrcp.f32 %v3111_v52  ;;  %v3112_v1 = vadd.f32 1.0, %v4661_v8  ;;  %v6218_v25 = vadd.f32 %v6038_v21, %v2944_v29 }
 0x664   : > { %v4663_v28 = vpop.eup %4662  ;;  %4682 = vrcp.f32 %v3114_v46  ;;  %v3697_v9 = vmul.f32 -1.442695, %v6212_v19 }
 0x665   : > { %v4665_v56 = vpop.eup %4664  ;;  %v3205_v12 = vmul.f32 %v4663_v28, %v6117_v60  ;;  %4684 = vrcp.f32 %v3112_v1  ;;  %v3695_v61 = vmul.f32 -1.442695, %v6218_v25 }
 0x666   : > { %v4667_v53 = vpop.eup %4666  ;;  %v3203_v24 = vmul.f32 %v4665_v56, %v6122_v55  ;;  %4686 = vpow2.f32 %v3696_v7 }
 0x667   : > { %v4669_v22 = vpop.eup %4668  ;;  %v3752_v10 = vpack.c.bf16 %v3205_v12, %v3205_v12  ;;  %v3206_v21 = vmul.f32 %v4667_v53, %v6128_v54  ;;  %4688 = vpow2.f32 %v3694_v6 }
 0x668   : > { %v4671_v11 = vpop.eup %4670  ;;  %v3750_v57 = vpack.c.bf16 %v3203_v24, %v3203_v24  ;;  %v3204_v40 = vmul.f32 %v4669_v22, %v6134_v34  ;;  %4690 = vpow2.f32 %v3697_v9 }
 0x669   : > { %v4673_v60 = vpop.eup %4672  ;;  %3366 = vst.msk [vmem:[%s6108_s23 + $0x48] sm:$0xf] %vm3347_vm3, %v3752_v10  ;;  %v3753_v33 = vpack.c.bf16 %v3206_v21, %v3206_v21  ;;  %v3117_v32 = vadd.f32 1.0, %v4671_v11  ;;  %4692 = vpow2.f32 %v3695_v61 }
 0x66a   : > { %v4675_v55 = vpop.eup %4674  ;;  %3364 = vst.msk [vmem:[%s6108_s23 + $0x40] sm:$0xf] %vm3347_vm3, %v3750_v57  ;;  %v3751_v63 = vpack.c.bf16 %v3204_v40, %v3204_v40  ;;  %v3115_v15 = vadd.f32 1.0, %v4673_v60 }
 0x66b   : > { %v4677_v54 = vpop.eup %4676  ;;  %3367 = vst.msk [vmem:[%s6108_s23 + $0x4c] sm:$0xf] %vm3347_vm3, %v3753_v33  ;;  %4694 = vrcp.f32 %v3117_v32  ;;  %v3118_v30 = vadd.f32 1.0, %v4675_v55 }
 0x66c   : > { %v4679_v50 = vpop.eup %4678  ;;  %3365 = vst.msk [vmem:[%s6108_s23 + $0x44] sm:$0xf] %vm3347_vm3, %v3751_v63  ;;  %4696 = vrcp.f32 %v3115_v15  ;;  %v3116_v34 = vadd.f32 1.0, %v4677_v54 }
 0x66d   : > { %v4681_v17 = vpop.eup %4680  ;;  %v3209_v37 = vmul.f32 %v4679_v50, %v6145_v49  ;;  %4698 = vrcp.f32 %v3118_v30 }
 0x66e   : > { %v4683_v39 = vpop.eup %4682  ;;  %v3207_v2 = vmul.f32 %v4681_v17, %v6150_v58  ;;  %4700 = vrcp.f32 %v3116_v34 }
 0x66f   : > { %v4685_v47 = vpop.eup %4684  ;;  %v3756_v35 = vpack.c.bf16 %v3209_v37, %v3209_v37  ;;  %v3210_v18 = vmul.f32 %v4683_v39, %v6156_v14 }
 0x670   : > { %v4687_v41 = vpop.eup %4686  ;;  %v3754_v42 = vpack.c.bf16 %v3207_v2, %v3207_v2  ;;  %v3208_v3 = vmul.f32 %v4685_v47, %v6162_v48 }
 0x671   : > { %v4689_v31 = vpop.eup %4688  ;;  %3370 = vst.msk [vmem:[%s6108_s23 + $0x58] sm:$0xf] %vm3347_vm3, %v3756_v35  ;;  %v3757_v49 = vpack.c.bf16 %v3210_v18, %v3210_v18  ;;  %v3121_v62 = vadd.f32 1.0, %v4687_v41 }
 0x672   : > { %v4691_v44 = vpop.eup %4690  ;;  %3368 = vst.msk [vmem:[%s6108_s23 + $0x50] sm:$0xf] %vm3347_vm3, %v3754_v42  ;;  %v3755_v58 = vpack.c.bf16 %v3208_v3, %v3208_v3  ;;  %v3119_v43 = vadd.f32 1.0, %v4689_v31 }
 0x673   : > { %v4693_v59 = vpop.eup %4692  ;;  %3371 = vst.msk [vmem:[%s6108_s23 + $0x5c] sm:$0xf] %vm3347_vm3, %v3757_v49  ;;  %4702 = vrcp.f32 %v3121_v62  ;;  %v3122_v14 = vadd.f32 1.0, %v4691_v44 }
 0x674   : > { %3369 = vst.msk [vmem:[%s6108_s23 + $0x54] sm:$0xf] %vm3347_vm3, %v3755_v58  ;;  %4704 = vrcp.f32 %v3119_v43  ;;  %v3120_v48 = vadd.f32 1.0, %v4693_v59 }
 0x675   : > { %v4695_v27 = vpop.eup %4694  ;;  %4706 = vrcp.f32 %v3122_v14 }
 0x676   : > { %v4697_v26 = vpop.eup %4696  ;;  %v3213_v51 = vmul.f32 %v4695_v27, %v6171_v23  ;;  %4708 = vrcp.f32 %v3120_v48 }
 0x677   : > { %v4699_v38 = vpop.eup %4698  ;;  %v3211_v16 = vmul.f32 %v4697_v26, %v6176_v13 }
 0x678   : > { %v4701_v45 = vpop.eup %4700  ;;  %v3760_v20 = vpack.c.bf16 %v3213_v51, %v3213_v51  ;;  %v3214_v52 = vmul.f32 %v4699_v38, %v6181_v5 }
 0x679   : > { %v3758_v29 = vpack.c.bf16 %v3211_v16, %v3211_v16  ;;  %v3212_v8 = vmul.f32 %v4701_v45, %v6187_v36 }
 0x67a   : > { %3374 = vst.msk [vmem:[%s6108_s23 + $0x68] sm:$0xf] %vm3347_vm3, %v3760_v20  ;;  %v3761_v46 = vpack.c.bf16 %v3214_v52, %v3214_v52 }
 0x67b   : > { %3372 = vst.msk [vmem:[%s6108_s23 + $0x60] sm:$0xf] %vm3347_vm3, %v3758_v29  ;;  %v3759_v7 = vpack.c.bf16 %v3212_v8, %v3212_v8 }
 0x67c   : > { %3375 = vst.msk [vmem:[%s6108_s23 + $0x6c] sm:$0xf] %vm3347_vm3, %v3761_v46 }
 0x67d   : > { %v4703_v23 = vpop.eup %4702  ;;  %3373 = vst.msk [vmem:[%s6108_s23 + $0x64] sm:$0xf] %vm3347_vm3, %v3759_v7 }
 0x67e   : > { %v4705_v13 = vpop.eup %4704  ;;  %v3217_v5 = vmul.f32 %v4703_v23, %v6199_v0 }
 0x67f   : > { %v4707_v1 = vpop.eup %4706  ;;  %v3215_v36 = vmul.f32 %v4705_v13, %v6204_v4 }
 0x680   : > { %v4709_v6 = vpop.eup %4708  ;;  %v3764_v28 = vpack.c.bf16 %v3217_v5, %v3217_v5  ;;  %v3218_v9 = vmul.f32 %v4707_v1, %v6212_v19 }
 0x681   : > { %v3762_v56 = vpack.c.bf16 %v3215_v36, %v3215_v36  ;;  %v3216_v12 = vmul.f32 %v4709_v6, %v6218_v25 }
 0x682   : > { %3378 = vst.msk [vmem:[%s6108_s23 + $0x78] sm:$0xf] %vm3347_vm3, %v3764_v28  ;;  %v3765_v61 = vpack.c.bf16 %v3218_v9, %v3218_v9 }
 0x683   : > { %3376 = vst.msk [vmem:[%s6108_s23 + $0x70] sm:$0xf] %vm3347_vm3, %v3762_v56  ;;  %v3763_v53 = vpack.c.bf16 %v3216_v12, %v3216_v12 }
 0x684   : > { %3379 = vst.msk [vmem:[%s6108_s23 + $0x7c] sm:$0xf] %vm3347_vm3, %v3765_v61 }
 0x685   : > { %3377 = vst.msk [vmem:[%s6108_s23 + $0x74] sm:$0xf] %vm3347_vm3, %v3763_v53 }
 0x686 PF: > { %s26_s21 = sadd.s32 1, %s4716_s21  }
 0x687   : > { %p23_p4 = scmp.ge.s32.totalorder %s26_s21, 6  }
 0x689   :  { %25 = sbr.rel (!%p23_p4) target bundleno = 2 (0x2), region = 114 }

</bundles_post_ra>
